<compile_context>
chip_gen: v5e
topology: v5e:2x2
jax: 0.10.0
libtpu: 0.0.40
codegen_flags: <defaults>
</compile_context>

<pallas_src>
import functools

import jax
import jax.numpy as jnp
import numpy as np
from jax.experimental import pallas as pl
from jax.experimental.pallas import tpu as pltpu

LANES = 128
N_CLASSES = 10
IN_FEATURES = 28 * 28        # 784
HIDDEN = 800


@functools.lru_cache(maxsize=None)
def _tpu_config():
    """(vmem_limit_bytes, hidden_pad, tile_b_max_bf16) for the local TPU gen."""
    try:
        vmem_cap = int(pltpu.get_tpu_info().vmem_capacity_bytes)
    except Exception:
        vmem_cap = 64 * 1024 * 1024                 # conservative (v7x-like)
    try:
        kind = jax.devices()[0].device_kind.lower()
    except Exception:
        kind = ""
    # 128-wide-MXU generations (v2-v5): pad hidden to 896; 256-wide (v6e/v7x): 1024.
    hidden_pad = 896 if any(g in kind for g in ("v2", "v3", "v4", "v5")) else 1024
    # ~75% of physical VMEM, clamped to [32, 96] MiB, never above physical.
    vmem_limit = min(max(vmem_cap * 3 // 4, 32 * 1024 * 1024), 96 * 1024 * 1024)
    vmem_limit = min(vmem_limit, vmem_cap)
    # Batch tile large enough to amortize the ~0.35us/step pipeline overhead.
    tile_b_max = 2048 if vmem_limit >= 48 * 1024 * 1024 else 1024
    return vmem_limit, hidden_pad, tile_b_max


try:
    _SINGLE_BUFFERED = pl.Buffered(1)   # resident operands need only one buffer
except Exception:                       # older jax without pl.Buffered
    _SINGLE_BUFFERED = None


def _resident_spec(block_shape):
    """BlockSpec for an operand DMA'd once that stays resident in VMEM."""
    index_map = lambda i: (0, 0)
    if _SINGLE_BUFFERED is not None:
        try:
            return pl.BlockSpec(block_shape, index_map,
                                pipeline_mode=_SINGLE_BUFFERED)
        except TypeError:
            pass
    return pl.BlockSpec(block_shape, index_map)


def manhattan_kernel(x_ref, w1_ref, b1_ref, w2_ref, b2_ref, o_ref):
    """One batch tile of the fused two-layer two-rail MLP.

    x_ref : (tile_b, 784)   activations (bf16 or f32, same dtype as weights)
    w1_ref: (784, Hp)       pre-differenced W1p - W1n, hidden-padded
    b1_ref: (1, Hp)         f32
    w2_ref: (Hp, 128)       pre-differenced, hidden/lane-padded
    b2_ref: (1, 128)        f32, lane-padded
    o_ref : (tile_b, 128)   f32
    """
    h = jnp.dot(x_ref[...], w1_ref[...],
                preferred_element_type=jnp.float32) + b1_ref[...]
    h = jnp.maximum(h, 0.0)                                   # ReLU
    y = jnp.dot(h.astype(w2_ref.dtype), w2_ref[...],
                preferred_element_type=jnp.float32) + b2_ref[...]
    o_ref[...] = y.astype(o_ref.dtype)


def prepare_params(params, param_dtype=jnp.bfloat16):
    """One-time parameter prep (model-load time, NOT per forward call).

    - Two-rail differencing: W = Wp - Wn, b = bp - bn (halves weight traffic,
      removes per-step VPU subtracts).  Tolerance-level (not bitwise) match.
    - Transpose weights to (in, out) for row-major MXU matmuls.
    - Zero-pad HIDDEN 800 -> 896/1024 (MXU-aligned, numerically a no-op) and
      the layer-2 output 10 -> 128 so output stores are lane-dense.
    - Optional bf16 weight storage (biases and accumulation stay f32).
    """
    _, hidden_pad, _ = _tpu_config()
    hp = hidden_pad - HIDDEN
    (w1p, b1p, w1n, b1n, w2p, b2p, w2n, b2n) = params
    w1 = (w1p - w1n).T.astype(jnp.float32)                    # (784, 800)
    b1 = (b1p - b1n).reshape(1, -1).astype(jnp.float32)       # (1, 800)
    w2 = (w2p - w2n).T.astype(jnp.float32)                    # (800, 10)
    b2 = (b2p - b2n).reshape(1, -1).astype(jnp.float32)       # (1, 10)
    w1 = jnp.pad(w1, ((0, 0), (0, hp))).astype(param_dtype)                  # (784, Hp)
    b1 = jnp.pad(b1, ((0, 0), (0, hp)))                                       # (1, Hp)
    w2 = jnp.pad(w2, ((0, hp), (0, LANES - N_CLASSES))).astype(param_dtype)   # (Hp, 128)
    b2 = jnp.pad(b2, ((0, 0), (0, LANES - N_CLASSES)))                        # (1, 128)
    return (w1, b1, w2, b2)


def _pick_tile_b(batch, tile_b_max):
    """Batch tile: full batch when small; otherwise >= 2 grid steps (megacore)."""
    if batch <= 256:
        return min(batch, tile_b_max)
    half = -(-batch // 2)                     # ceil(batch / 2)
    half = ((half + 7) // 8) * 8              # sublane multiple
    return min(tile_b_max, half)


@jax.jit
def manhattan_net_forward(x, prepared_params):
    """x: (B, 1, 28, 28) or (B, 784). Returns logits (B, 10) in f32."""
    w1, b1, w2, b2 = prepared_params
    hidden_pad = w1.shape[1]
    param_dtype = w1.dtype
    vmem_limit, _, tile_b_max_bf16 = _tpu_config()
    tile_b_max = (tile_b_max_bf16 if param_dtype == jnp.bfloat16
                  else tile_b_max_bf16 // 2)

    # Cast the activation stream once in the wrapper (no in-kernel cast).
    x2d = x.reshape(-1, IN_FEATURES).astype(param_dtype)
    B = x2d.shape[0]
    tile_b = _pick_tile_b(B, tile_b_max)
    grid = (pl.cdiv(B, tile_b),)

    out = pl.pallas_call(
        manhattan_kernel,
        out_shape=jax.ShapeDtypeStruct((B, LANES), jnp.float32),
        grid=grid,
        in_specs=[
            pl.BlockSpec((tile_b, IN_FEATURES), lambda i: (i, 0)),  # x (pipelined)
            _resident_spec((IN_FEATURES, hidden_pad)),              # W1 (resident)
            _resident_spec((1, hidden_pad)),                        # b1
            _resident_spec((hidden_pad, LANES)),                    # W2 (padded)
            _resident_spec((1, LANES)),                             # b2 (padded)
        ],
        out_specs=pl.BlockSpec((tile_b, LANES), lambda i: (i, 0)),
        compiler_params=pltpu.CompilerParams(
            dimension_semantics=("parallel",),      # shard batch across TCs
            vmem_limit_bytes=vmem_limit,            # generation-aware budget
        ),
    )(x2d, w1, b1, w2, b2)
    return out[:, :N_CLASSES]


def init_memristor_layer(key, in_features, out_features):
    """Mimics Memristor_layer.reset_parameters deterministically."""
    kw, kb = jax.random.split(key)
    # kaiming_uniform_(a=sqrt(5)) -> U(-1/sqrt(fan_in), 1/sqrt(fan_in))
    bound = 1.0 / np.sqrt(in_features)
    w = jax.random.uniform(kw, (out_features, in_features),
                           minval=-bound, maxval=bound, dtype=jnp.float32)
    # bias ~ U(0, 2/sqrt(fan_in))
    b = jax.random.uniform(kb, (out_features,),
                           minval=0.0, maxval=2.0 * bound, dtype=jnp.float32)
    return w, b


def reference_forward(x, params):
    (w1p, b1p, w1n, b1n, w2p, b2p, w2n, b2n) = params
    x2d = x.reshape(-1, IN_FEATURES).astype(jnp.float32)
    h = jnp.maximum((x2d @ w1p.T + b1p) - (x2d @ w1n.T + b1n), 0.0)
    return (h @ w2p.T + b2p) - (h @ w2n.T + b2n)


if __name__ == "__main__":
    key = jax.random.PRNGKey(0)
    k_x, k_xb, k1p, k1n, k2p, k2n = jax.random.split(key, 6)

    w1p, b1p = init_memristor_layer(k1p, IN_FEATURES, HIDDEN)
    w1n, b1n = init_memristor_layer(k1n, IN_FEATURES, HIDDEN)
    w2p, b2p = init_memristor_layer(k2p, HIDDEN, N_CLASSES)
    w2n, b2n = init_memristor_layer(k2n, HIDDEN, N_CLASSES)
    params = (w1p, b1p, w1n, b1n, w2p, b2p, w2n, b2n)

    # Small batch, MNIST-like input consistent with the module.
    x_small = jax.random.normal(k_x, (2, 1, 28, 28), dtype=jnp.float32)
    ref_small = reference_forward(x_small, params)

    # f32 weights: matches the PyTorch reference to tight tolerance.
    prepared_f32 = prepare_params(params, jnp.float32)
    out_f32 = jax.block_until_ready(manhattan_net_forward(x_small, prepared_f32))
    assert out_f32.shape == (2, N_CLASSES), out_f32.shape
    np.testing.assert_allclose(np.asarray(out_f32), np.asarray(ref_small),
                               rtol=1e-5, atol=1e-5)

    # bf16 default path (f32 accumulation): halves the x + weight HBM stream
    # and runs the MXU at its native bf16 rate; explicit accuracy trade.
    prepared_bf16 = prepare_params(params)                     # default bf16
    out_bf16 = jax.block_until_ready(manhattan_net_forward(x_small, prepared_bf16))
    np.testing.assert_allclose(np.asarray(out_bf16), np.asarray(ref_small),
                               rtol=5e-2, atol=5e-2)

    # Moderate batch: exercises the multi-step grid (>= 2 steps so both
    # TensorCores participate) and the masked partial final tile.
    x_big = jax.random.normal(k_xb, (300, 1, 28, 28), dtype=jnp.float32)
    ref_big = reference_forward(x_big, params)
    out_big = jax.block_until_ready(manhattan_net_forward(x_big, prepared_f32))
    assert out_big.shape == (300, N_CLASSES), out_big.shape
    np.testing.assert_allclose(np.asarray(out_big), np.asarray(ref_big),
                               rtol=1e-4, atol=1e-4)

    print("KERNEL_OK")
</pallas_src>

<mosaic_0001>
module attributes {stable_mosaic.version = 11 : i64} {
  func.func @manhattan_kernel(%arg0: i32, %arg1: memref<2x784xf32, #tpu.memory_space<vmem>>, %arg2: memref<784x1024xf32, #tpu.memory_space<vmem>>, %arg3: memref<1x1024xf32, #tpu.memory_space<vmem>>, %arg4: memref<1024x128xf32, #tpu.memory_space<vmem>>, %arg5: memref<1x128xf32, #tpu.memory_space<vmem>>, %arg6: memref<2x128xf32, #tpu.memory_space<vmem>>) attributes {dimension_semantics = [#tpu.dimension_semantics<parallel>], iteration_bounds = array<i64: 1>, scalar_prefetch = 0 : i64, scratch_operands = 0 : i64, tpu.core_type = #tpu.core_type<tc>, window_params = [{transform_indices = @transform_0, window_bounds = array<i64: 2, 784>}, {pipeline_mode = #tpu.pipeline_mode<synchronous>, transform_indices = @transform_1, window_bounds = array<i64: 784, 1024>}, {pipeline_mode = #tpu.pipeline_mode<synchronous>, transform_indices = @transform_2, window_bounds = array<i64: 1, 1024>}, {pipeline_mode = #tpu.pipeline_mode<synchronous>, transform_indices = @transform_3, window_bounds = array<i64: 1024, 128>}, {pipeline_mode = #tpu.pipeline_mode<synchronous>, transform_indices = @transform_4, window_bounds = array<i64: 1, 128>}, {transform_indices = @transform_5, window_bounds = array<i64: 2, 128>}]} {
    %c0 = arith.constant 0 : index
    %c0_0 = arith.constant 0 : index
    %0 = vector.load %arg1[%c0, %c0_0] : memref<2x784xf32, #tpu.memory_space<vmem>>, vector<2x784xf32>
    %c0_1 = arith.constant 0 : index
    %c0_2 = arith.constant 0 : index
    %1 = vector.load %arg2[%c0_1, %c0_2] : memref<784x1024xf32, #tpu.memory_space<vmem>>, vector<784x1024xf32>
    %cst = arith.constant dense<0.000000e+00> : vector<2x1024xf32>
    %2 = tpu.matmul %0, %1, %cst {dimension_numbers = #tpu.dot_dimension_numbers<[1], [0], [0], [1], [0, 0, 1, 1], [], []>} : vector<2x784xf32>, vector<784x1024xf32>, vector<2x1024xf32> -> vector<2x1024xf32>
    %c0_3 = arith.constant 0 : index
    %c0_4 = arith.constant 0 : index
    %3 = vector.load %arg3[%c0_3, %c0_4] : memref<1x1024xf32, #tpu.memory_space<vmem>>, vector<1x1024xf32>
    %4 = vector.broadcast %3 : vector<1x1024xf32> to vector<2x1024xf32>
    %5 = arith.addf %2, %4 : vector<2x1024xf32>
    %cst_5 = arith.constant 0.000000e+00 : f32
    %6 = vector.broadcast %cst_5 : f32 to vector<2x1024xf32>
    %7 = arith.maximumf %5, %6 : vector<2x1024xf32>
    %c0_6 = arith.constant 0 : index
    %c0_7 = arith.constant 0 : index
    %8 = vector.load %arg4[%c0_6, %c0_7] : memref<1024x128xf32, #tpu.memory_space<vmem>>, vector<1024x128xf32>
    %cst_8 = arith.constant dense<0.000000e+00> : vector<2x128xf32>
    %9 = tpu.matmul %7, %8, %cst_8 {dimension_numbers = #tpu.dot_dimension_numbers<[1], [0], [0], [1], [0, 0, 1, 1], [], []>} : vector<2x1024xf32>, vector<1024x128xf32>, vector<2x128xf32> -> vector<2x128xf32>
    %c0_9 = arith.constant 0 : index
    %c0_10 = arith.constant 0 : index
    %10 = vector.load %arg5[%c0_9, %c0_10] : memref<1x128xf32, #tpu.memory_space<vmem>>, vector<1x128xf32>
    %11 = vector.broadcast %10 : vector<1x128xf32> to vector<2x128xf32>
    %12 = arith.addf %9, %11 : vector<2x128xf32>
    %c0_11 = arith.constant 0 : index
    %c0_12 = arith.constant 0 : index
    %13 = vector.load %arg6[%c0_11, %c0_12] : memref<2x128xf32, #tpu.memory_space<vmem>>, vector<2x128xf32>
    tpu.vector_store %arg6[%c0_11, %c0_12], %12 {strides = array<i32>} : memref<2x128xf32, #tpu.memory_space<vmem>>, vector<2x128xf32>,
    return
  }
  func.func @transform_0(%arg0: i32) -> (i32, i32) {
    %c0_i32 = arith.constant 0 : i32
    %c0_i32_0 = arith.constant 0 : i32
    return %arg0, %c0_i32 : i32, i32
  }
  func.func @transform_1(%arg0: i32) -> (i32, i32) {
    %c0_i32 = arith.constant 0 : i32
    %c0_i32_0 = arith.constant 0 : i32
    %c0_i32_1 = arith.constant 0 : i32
    return %c0_i32, %c0_i32_0 : i32, i32
  }
  func.func @transform_2(%arg0: i32) -> (i32, i32) {
    %c0_i32 = arith.constant 0 : i32
    %c0_i32_0 = arith.constant 0 : i32
    %c0_i32_1 = arith.constant 0 : i32
    return %c0_i32, %c0_i32_0 : i32, i32
  }
  func.func @transform_3(%arg0: i32) -> (i32, i32) {
    %c0_i32 = arith.constant 0 : i32
    %c0_i32_0 = arith.constant 0 : i32
    %c0_i32_1 = arith.constant 0 : i32
    return %c0_i32, %c0_i32_0 : i32, i32
  }
  func.func @transform_4(%arg0: i32) -> (i32, i32) {
    %c0_i32 = arith.constant 0 : i32
    %c0_i32_0 = arith.constant 0 : i32
    %c0_i32_1 = arith.constant 0 : i32
    return %c0_i32, %c0_i32_0 : i32, i32
  }
  func.func @transform_5(%arg0: i32) -> (i32, i32) {
    %c0_i32 = arith.constant 0 : i32
    %c0_i32_0 = arith.constant 0 : i32
    return %arg0, %c0_i32 : i32, i32
  }
}

</mosaic_0001>

<bundles_post_ra>
// kernel: manhattan_net_forward.1
= control target key start
LH: loop header
LB: loop body
LE: loop exit
PB: predicated region body
PF: predicated region fallthrough
CT: control target
= control target key end

     0   :  { %10 = vsyncpa [#allocation3], 0  ;;  %s2759_s0 = inlined_call_operand.vmem [shape: f32[2,784], index: 0, kind: input, shape index: {}]   ;;  %s2760_s1 = inlined_call_operand.hbm [shape: f32[784,1024], index: 1, kind: input, shape index: {}]   ;;  %s2761_s2 = inlined_call_operand.hbm [shape: f32[1,1024], index: 2, kind: input, shape index: {}]   ;;  %s2762_s3 = inlined_call_operand.hbm [shape: f32[1024,128], index: 3, kind: input, shape index: {}]   ;;  %s2763_s4 = inlined_call_operand.hbm [shape: f32[1,128], index: 4, kind: input, shape index: {}]   ;;  %s2764_s5 = inlined_call_operand.hbm [shape: f32[2,128], index: 5, kind: output, shape index: {}]  }
   0x1   :  { %11 = vsyncpa [#allocation6], 0 }
   0x2   :  { %12 = vsyncpa [#allocation9], 0  ;;  %s34_s20 = sshll.u32 %s2761_s2, 4  ;;  %s35_s20 = int_to_ptr.hbm [resolvable:$true] %s34_s20 }
   0x3   :  { %13 = vsyncpa [#allocation4], 0  ;;  %s2505_s21 = smov [#allocation5]   ;;  %s20_s25 = sshll.u32 %s2760_s1, 4  ;;  %s21_s25 = int_to_ptr.hbm [resolvable:$true] %s20_s25 }
   0x4   :  { %s36_s22 = sshll.u32 %s2505_s21, 4  ;;  %s2506_s26 = smov [#allocation2]   ;;  %s37_s22 = int_to_ptr.vmem [resolvable:$true] %s36_s22 }
   0x5   :  { %39 = dma.hbm_to_vmem [thread:$0]  %s35_s20, 128, %s37_s22, [#allocation6]  }
   0x6   :  { %s22_s27 = sshll.u32 %s2506_s26, 4  ;;  %s2507_s28 = smov 1024   ;;  %s23_s27 = int_to_ptr.vmem [resolvable:$true] %s22_s27 }
   0x7   :  { %s2508_s29 = smov 64   ;;  %s44_s2 = sshll.u32 %s2762_s3, 4  ;;  %s45_s2 = int_to_ptr.hbm [resolvable:$true] %s44_s2 }
   0x8   :  { %28 = dma.hbm_to_vmem [thread:$0]  %s21_s25, 100352, %s23_s27, [#allocation3], %s2507_s28, %s2507_s28, %s2508_s29  }
   0x9   :  { %s2509_s7 = smov [#allocation7]   ;;  %s58_s1 = sshll.u32 %s2763_s4, 4  ;;  %s59_s1 = int_to_ptr.hbm [resolvable:$true] %s58_s1 }
   0xa   :  { %s46_s8 = sshll.u32 %s2509_s7, 4  ;;  %s2510_s11 = smov 128   ;;  %s47_s8 = int_to_ptr.vmem [resolvable:$true] %s46_s8 }
   0xb   :  { %s2511_s12 = smov 8   ;;  %s2512_s13 = smov [#allocation8]  }
   0xc   :  { %52 = dma.hbm_to_vmem [thread:$0]  %s45_s2, 16384, %s47_s8, [#allocation6], %s2510_s11, %s2510_s11, %s2511_s12  }
   0xd   :  { %s60_s14 = sshll.u32 %s2512_s13, 4  ;;  %s61_s14 = int_to_ptr.vmem [resolvable:$true] %s60_s14 }
   0xe   :  { %63 = dma.hbm_to_vmem [thread:$0]  %s59_s1, 16, %s61_s14, [#allocation9]  }
   0xf   :  { %2497 = dma.done.wait [#allocation3], 100352  }
  0x10   :  { %2498 = vsyncadd [#allocation3], 4294866944 }
  0x11   :  { %2499 = dma.done.wait [#allocation6], 16512  }
  0x12   :  { %2500 = vsyncadd [#allocation6], 4294950784 }
  0x13   :  { %2501 = dma.done.wait [#allocation9], 16  }
  0x14   :  { %2502 = vsyncadd [#allocation9], 4294967280  ;;  %v202_v0 = vld [vmem:[#allocation2 + $0x3c0] sm:$0xff]  ;;  %v80_v54 = vld [vmem:[%s2759_s0] sm:$0xff]  ;;  %vm902_vm0 = vcmask 130048   ;;  %s2333_s20 = sshll.u32 %s2764_s5, 4  ;;  %s2334_s20 = int_to_ptr.hbm [resolvable:$true] %s2333_s20 }
  0x15   :  { %v330_v1 = vld [vmem:[#allocation2 + $0x7c0] sm:$0xff]  ;;  %905 = vmatpush.msra.mxu0 %v202_v0  ;;  %886 = vst [vmem:[#allocation1] ss:$4 sm:$0xff] %v80_v54  ;;  %v251_v54 = vld [vmem:[#allocation2 + $0x548] sm:$0xff] }
  0x16   :  { %v458_v2 = vld [vmem:[#allocation2 + $0xbc0] sm:$0xff]  ;;  %925 = vmatpush.msra.mxu1 %v330_v1 }
  0x17   :  { %v586_v3 = vld [vmem:[#allocation2 + $0xfc0] sm:$0xff]  ;;  %945 = vmatpush.msra.mxu2 %v458_v2 }
  0x18   :  { %v194_v4 = vld [vmem:[#allocation2 + $0x380] sm:$0xff]  ;;  %965 = vmatpush.msra.mxu3 %v586_v3 }
  0x19   :  { %v322_v5 = vld [vmem:[#allocation2 + $0x780] sm:$0xff]  ;;  %906 = vmatpush.msra.mxu0 %v194_v4  ;;  %v203_v4 = vld [vmem:[#allocation2 + $0x3c8] sm:$0xff] }
  0x1a   :  { %v450_v6 = vld [vmem:[#allocation2 + $0xb80] sm:$0xff]  ;;  %926 = vmatpush.msra.mxu1 %v322_v5 }
  0x1b   :  { %v578_v7 = vld [vmem:[#allocation2 + $0xf80] sm:$0xff]  ;;  %946 = vmatpush.msra.mxu2 %v450_v6 }
  0x1c   :  { %v186_v8 = vld [vmem:[#allocation2 + $0x340] sm:$0xff]  ;;  %966 = vmatpush.msra.mxu3 %v578_v7 }
  0x1d   :  { %v314_v9 = vld [vmem:[#allocation2 + $0x740] sm:$0xff]  ;;  %907 = vmatpush.msra.mxu0 %v186_v8  ;;  %v195_v8 = vld [vmem:[#allocation2 + $0x388] sm:$0xff] }
  0x1e   :  { %v442_v10 = vld [vmem:[#allocation2 + $0xb40] sm:$0xff]  ;;  %927 = vmatpush.msra.mxu1 %v314_v9  ;;  %v2559_v9 = vld.sshfl [vmem:[#allocation1 + $0x10] sm:$0xff pattern:$0x73625140] }
  0x1f   :  { %v570_v11 = vld [vmem:[#allocation2 + $0xf40] sm:$0xff]  ;;  %947 = vmatpush.msra.mxu2 %v442_v10 }
  0x20   :  { %v178_v12 = vld [vmem:[#allocation2 + $0x300] sm:$0xff]  ;;  %967 = vmatpush.msra.mxu3 %v570_v11  ;;  %v331_v11 = vld [vmem:[#allocation2 + $0x7c8] sm:$0xff] }
  0x21   :  { %v306_v13 = vld [vmem:[#allocation2 + $0x700] sm:$0xff]  ;;  %908 = vmatpush.msra.mxu0 %v178_v12 }
  0x22   :  { %v434_v14 = vld [vmem:[#allocation2 + $0xb00] sm:$0xff]  ;;  %928 = vmatpush.msra.mxu1 %v306_v13  ;;  %v187_v13 = vld [vmem:[#allocation2 + $0x348] sm:$0xff] }
  0x23   :  { %v562_v15 = vld [vmem:[#allocation2 + $0xf00] sm:$0xff]  ;;  %948 = vmatpush.msra.mxu2 %v434_v14 }
  0x24   :  { %v170_v16 = vld [vmem:[#allocation2 + $0x2c0] sm:$0xff]  ;;  %968 = vmatpush.msra.mxu3 %v562_v15  ;;  %v323_v15 = vld [vmem:[#allocation2 + $0x788] sm:$0xff] }
  0x25   :  { %v298_v17 = vld [vmem:[#allocation2 + $0x6c0] sm:$0xff]  ;;  %909 = vmatpush.msra.mxu0 %v170_v16 }
  0x26   :  { %v426_v18 = vld [vmem:[#allocation2 + $0xac0] sm:$0xff]  ;;  %929 = vmatpush.msra.mxu1 %v298_v17  ;;  %v179_v17 = vld [vmem:[#allocation2 + $0x308] sm:$0xff] }
  0x27   :  { %v554_v19 = vld [vmem:[#allocation2 + $0xec0] sm:$0xff]  ;;  %949 = vmatpush.msra.mxu2 %v426_v18  ;;  %v2562_v18 = vld.sshfl [vmem:[#allocation1] sm:$0xff pattern:$0x73625140] }
  0x28   :  { %v162_v20 = vld [vmem:[#allocation2 + $0x280] sm:$0xff]  ;;  %969 = vmatpush.msra.mxu3 %v554_v19  ;;  %v2564_v19 = vld.sshfl [vmem:[#allocation1 + $0x18] sm:$0xff pattern:$0x73625140] }
  0x29   :  { %v290_v21 = vld [vmem:[#allocation2 + $0x680] sm:$0xff]  ;;  %910 = vmatpush.msra.mxu0 %v162_v20  ;;  %v315_v20 = vld [vmem:[#allocation2 + $0x748] sm:$0xff] }
  0x2a   :  { %v418_v22 = vld [vmem:[#allocation2 + $0xa80] sm:$0xff]  ;;  %930 = vmatpush.msra.mxu1 %v290_v21 }
  0x2b   :  { %v546_v23 = vld [vmem:[#allocation2 + $0xe80] sm:$0xff]  ;;  %950 = vmatpush.msra.mxu2 %v418_v22 }
  0x2c   :  { %v154_v24 = vld [vmem:[#allocation2 + $0x240] sm:$0xff]  ;;  %970 = vmatpush.msra.mxu3 %v546_v23  ;;  %v171_v23 = vld [vmem:[#allocation2 + $0x2c8] sm:$0xff] }
  0x2d   :  { %v282_v25 = vld [vmem:[#allocation2 + $0x640] sm:$0xff]  ;;  %911 = vmatpush.msra.mxu0 %v154_v24 }
  0x2e   :  { %v410_v26 = vld [vmem:[#allocation2 + $0xa40] sm:$0xff]  ;;  %931 = vmatpush.msra.mxu1 %v282_v25  ;;  %v307_v25 = vld [vmem:[#allocation2 + $0x708] sm:$0xff] }
  0x2f   :  { %v538_v27 = vld [vmem:[#allocation2 + $0xe40] sm:$0xff]  ;;  %951 = vmatpush.msra.mxu2 %v410_v26 }
  0x30   :  { %v146_v28 = vld [vmem:[#allocation2 + $0x200] sm:$0xff]  ;;  %971 = vmatpush.msra.mxu3 %v538_v27 }
  0x31   :  { %v274_v29 = vld [vmem:[#allocation2 + $0x600] sm:$0xff]  ;;  %912 = vmatpush.msra.mxu0 %v146_v28  ;;  %v163_v28 = vld [vmem:[#allocation2 + $0x288] sm:$0xff] }
  0x32   :  { %v402_v30 = vld [vmem:[#allocation2 + $0xa00] sm:$0xff]  ;;  %932 = vmatpush.msra.mxu1 %v274_v29 }
  0x33   :  { %v530_v31 = vld [vmem:[#allocation2 + $0xe00] sm:$0xff]  ;;  %952 = vmatpush.msra.mxu2 %v402_v30  ;;  %v299_v30 = vld [vmem:[#allocation2 + $0x6c8] sm:$0xff] }
  0x34   :  { %v138_v32 = vld [vmem:[#allocation2 + $0x1c0] sm:$0xff]  ;;  %972 = vmatpush.msra.mxu3 %v530_v31 }
  0x35   :  { %v266_v33 = vld [vmem:[#allocation2 + $0x5c0] sm:$0xff]  ;;  %913 = vmatpush.msra.mxu0 %v138_v32 }
  0x36   :  { %v394_v34 = vld [vmem:[#allocation2 + $0x9c0] sm:$0xff]  ;;  %933 = vmatpush.msra.mxu1 %v266_v33  ;;  %v155_v33 = vld [vmem:[#allocation2 + $0x248] sm:$0xff] }
  0x37   :  { %v522_v35 = vld [vmem:[#allocation2 + $0xdc0] sm:$0xff]  ;;  %953 = vmatpush.msra.mxu2 %v394_v34  ;;  %v291_v34 = vld [vmem:[#allocation2 + $0x688] sm:$0xff] }
  0x38   :  { %v130_v36 = vld [vmem:[#allocation2 + $0x180] sm:$0xff]  ;;  %973 = vmatpush.msra.mxu3 %v522_v35 }
  0x39   :  { %v258_v37 = vld [vmem:[#allocation2 + $0x580] sm:$0xff]  ;;  %914 = vmatpush.msra.mxu0 %v130_v36 }
  0x3a   :  { %v386_v38 = vld [vmem:[#allocation2 + $0x980] sm:$0xff]  ;;  %934 = vmatpush.msra.mxu1 %v258_v37  ;;  %v147_v37 = vld [vmem:[#allocation2 + $0x208] sm:$0xff] }
  0x3b   :  { %v514_v39 = vld [vmem:[#allocation2 + $0xd80] sm:$0xff]  ;;  %954 = vmatpush.msra.mxu2 %v386_v38  ;;  %v283_v38 = vld [vmem:[#allocation2 + $0x648] sm:$0xff] }
  0x3c   :  { %v122_v40 = vld [vmem:[#allocation2 + $0x140] sm:$0xff]  ;;  %974 = vmatpush.msra.mxu3 %v514_v39 }
  0x3d   :  { %v250_v41 = vld [vmem:[#allocation2 + $0x540] sm:$0xff]  ;;  %915 = vmatpush.msra.mxu0 %v122_v40 }
  0x3e   :  { %v378_v42 = vld [vmem:[#allocation2 + $0x940] sm:$0xff]  ;;  %935 = vmatpush.msra.mxu1 %v250_v41  ;;  %v139_v41 = vld [vmem:[#allocation2 + $0x1c8] sm:$0xff] }
  0x3f   :  { %v506_v43 = vld [vmem:[#allocation2 + $0xd40] sm:$0xff]  ;;  %955 = vmatpush.msra.mxu2 %v378_v42  ;;  %v275_v42 = vld [vmem:[#allocation2 + $0x608] sm:$0xff] }
  0x40   :  { %v114_v44 = vld [vmem:[#allocation2 + $0x100] sm:$0xff]  ;;  %975 = vmatpush.msra.mxu3 %v506_v43 }
  0x41   :  { %v242_v45 = vld [vmem:[#allocation2 + $0x500] sm:$0xff]  ;;  %916 = vmatpush.msra.mxu0 %v114_v44 }
  0x42   :  { %v370_v46 = vld [vmem:[#allocation2 + $0x900] sm:$0xff]  ;;  %936 = vmatpush.msra.mxu1 %v242_v45  ;;  %v131_v45 = vld [vmem:[#allocation2 + $0x188] sm:$0xff] }
  0x43   :  { %v498_v47 = vld [vmem:[#allocation2 + $0xd00] sm:$0xff]  ;;  %956 = vmatpush.msra.mxu2 %v370_v46  ;;  %v267_v46 = vld [vmem:[#allocation2 + $0x5c8] sm:$0xff] }
  0x44   :  { %v106_v48 = vld [vmem:[#allocation2 + $0xc0] sm:$0xff]  ;;  %976 = vmatpush.msra.mxu3 %v498_v47 }
  0x45   :  { %v234_v49 = vld [vmem:[#allocation2 + $0x4c0] sm:$0xff]  ;;  %917 = vmatpush.msra.mxu0 %v106_v48 }
  0x46   :  { %v362_v50 = vld [vmem:[#allocation2 + $0x8c0] sm:$0xff]  ;;  %937 = vmatpush.msra.mxu1 %v234_v49  ;;  %v123_v49 = vld [vmem:[#allocation2 + $0x148] sm:$0xff] }
  0x47   :  { %v490_v51 = vld [vmem:[#allocation2 + $0xcc0] sm:$0xff]  ;;  %957 = vmatpush.msra.mxu2 %v362_v50  ;;  %v259_v50 = vld [vmem:[#allocation2 + $0x588] sm:$0xff] }
  0x48   :  { %v98_v52 = vld [vmem:[#allocation2 + $0x80] sm:$0xff]  ;;  %977 = vmatpush.msra.mxu3 %v490_v51 }
  0x49   :  { %v226_v53 = vld [vmem:[#allocation2 + $0x480] sm:$0xff]  ;;  %918 = vmatpush.msra.mxu0 %v98_v52 }
  0x4a   :  { %v354_v55 = vld [vmem:[#allocation2 + $0x880] sm:$0xff]  ;;  %938 = vmatpush.msra.mxu1 %v226_v53  ;;  %v115_v53 = vld [vmem:[#allocation2 + $0x108] sm:$0xff] }
  0x4b   :  { %v482_v56 = vld [vmem:[#allocation2 + $0xc80] sm:$0xff]  ;;  %958 = vmatpush.msra.mxu2 %v354_v55 }
  0x4c   :  { %v90_v57 = vld [vmem:[#allocation2 + $0x40] sm:$0xff]  ;;  %978 = vmatpush.msra.mxu3 %v482_v56 }
  0x4d   :  { %v218_v58 = vld [vmem:[#allocation2 + $0x440] sm:$0xff]  ;;  %919 = vmatpush.msra.mxu0 %v90_v57  ;;  %v107_v57 = vld [vmem:[#allocation2 + $0xc8] sm:$0xff] }
  0x4e   :  { %v346_v59 = vld [vmem:[#allocation2 + $0x840] sm:$0xff]  ;;  %939 = vmatpush.msra.mxu1 %v218_v58  ;;  %v243_v58 = vld [vmem:[#allocation2 + $0x508] sm:$0xff] }
  0x4f   :  { %v474_v60 = vld [vmem:[#allocation2 + $0xc40] sm:$0xff]  ;;  %959 = vmatpush.msra.mxu2 %v346_v59 }
  0x50   :  { %v82_v61 = vld [vmem:[#allocation2] sm:$0xff]  ;;  %979 = vmatpush.msra.mxu3 %v474_v60 }
  0x51   :  { %v210_v62 = vld [vmem:[#allocation2 + $0x400] sm:$0xff]  ;;  %920 = vmatpush.msra.mxu0 %v82_v61  ;;  %v99_v61 = vld [vmem:[#allocation2 + $0x88] sm:$0xff] }
  0x52   :  { %v338_v63 = vld [vmem:[#allocation2 + $0x800] sm:$0xff]  ;;  %940 = vmatpush.msra.mxu1 %v210_v62  ;;  %921 = vmatmul.f32.vlgmr.msra.gmra.mxu0 %v2562_v18  ;;  %v235_v62 = vld [vmem:[#allocation2 + $0x4c8] sm:$0xff] }
  0x53   :  { %v466_v0 = vld [vmem:[#allocation2 + $0xc00] sm:$0xff]  ;;  %960 = vmatpush.msra.mxu2 %v338_v63 }
  0x54   :  { %v714_v1 = vld [vmem:[#allocation2 + $0x13c0] sm:$0xff]  ;;  %980 = vmatpush.msra.mxu3 %v466_v0  ;;  %961 = vmatmul.f32.vlgmr.msra.gmra.mxu2 %v2559_v9 }
  0x55   :  { %v842_v2 = vld [vmem:[#allocation2 + $0x17c0] sm:$0xff]  ;;  %985 = vmatpush.msrb.mxu0 %v714_v1  ;;  %981 = vmatmul.f32.vlgmr.msra.gmra.mxu3 %v2564_v19  ;;  %v91_v1 = vld [vmem:[#allocation2 + $0x48] sm:$0xff] }
  0x56   :  { %v858_v3 = vld [vmem:[#allocation2 + $0x1840] sm:$0xff]  ;;  %1005 = vmatpush.msrb.mxu1 %v842_v2  ;;  %1045 = vmatpush.msrb.mxu3 %v203_v4  ;;  %v227_v4 = vld [vmem:[#allocation2 + $0x488] sm:$0xff] }
  0x57   :  { %v706_v5 = vld [vmem:[#allocation2 + $0x1380] sm:$0xff]  ;;  %1039 = vmatpush.msrb.mxu2 %v858_v3 }
  0x58   :  { %v834_v6 = vld [vmem:[#allocation2 + $0x1780] sm:$0xff]  ;;  %986 = vmatpush.msrb.mxu0 %v706_v5  ;;  %1046 = vmatpush.msrb.mxu3 %v195_v8  ;;  %v219_v8 = vld [vmem:[#allocation2 + $0x448] sm:$0xff] }
  0x59   :  { %v850_v7 = vld [vmem:[#allocation2 + $0x1800] sm:$0xff]  ;;  %1006 = vmatpush.msrb.mxu1 %v834_v6  ;;  %v83_v6 = vld [vmem:[#allocation2 + $0x8] sm:$0xff] }
  0x5a   :  { %v698_v10 = vld [vmem:[#allocation2 + $0x1340] sm:$0xff]  ;;  %1040 = vmatpush.msrb.mxu2 %v850_v7  ;;  %1047 = vmatpush.msrb.mxu3 %v187_v13 }
  0x5b   :  { %v826_v12 = vld [vmem:[#allocation2 + $0x1740] sm:$0xff]  ;;  %987 = vmatpush.msrb.mxu0 %v698_v10  ;;  %v459_v10 = vld [vmem:[#allocation2 + $0xbc8] sm:$0xff] }
  0x5c   :  { %v690_v14 = vld [vmem:[#allocation2 + $0x1300] sm:$0xff]  ;;  %1065 = vmatpush.msra.mxu2 %v331_v11  ;;  %1007 = vmatpush.msrb.mxu1 %v826_v12  ;;  %v587_v11 = vld [vmem:[#allocation2 + $0xfc8] sm:$0xff] }
  0x5d   :  { %v818_v16 = vld [vmem:[#allocation2 + $0x1700] sm:$0xff]  ;;  %988 = vmatpush.msrb.mxu0 %v690_v14  ;;  %1048 = vmatpush.msrb.mxu3 %v179_v17  ;;  %v715_v12 = vld [vmem:[#allocation2 + $0x13c8] sm:$0xff] }
  0x5e   :  { %1066 = vmatpush.msra.mxu2 %v323_v15  ;;  %1008 = vmatpush.msrb.mxu1 %v818_v16  ;;  %v682_v21 = vld [vmem:[#allocation2 + $0x12c0] sm:$0xff]  ;;  %v211_v14 = vld [vmem:[#allocation2 + $0x408] sm:$0xff] }
  0x5f   :  { %v810_v22 = vld [vmem:[#allocation2 + $0x16c0] sm:$0xff]  ;;  %989 = vmatpush.msrb.mxu0 %v682_v21  ;;  %1049 = vmatpush.msrb.mxu3 %v171_v23  ;;  %v451_v15 = vld [vmem:[#allocation2 + $0xb88] sm:$0xff] }
  0x60   :  { %v2567_v24 = vld.sshfl [vmem:[#allocation1 + $0x8] sm:$0xff pattern:$0x73625140]  ;;  %1067 = vmatpush.msra.mxu2 %v315_v20  ;;  %1009 = vmatpush.msrb.mxu1 %v810_v22  ;;  %v579_v16 = vld [vmem:[#allocation2 + $0xf88] sm:$0xff] }
  0x61   :  { %v674_v26 = vld [vmem:[#allocation2 + $0x1280] sm:$0xff]  ;;  %941 = vmatmul.f32.vlgmr.msra.gmra.mxu1 %v2567_v24  ;;  %1050 = vmatpush.msrb.mxu3 %v163_v28  ;;  %v707_v17 = vld [vmem:[#allocation2 + $0x1388] sm:$0xff] }
  0x62   :  { %v802_v27 = vld [vmem:[#allocation2 + $0x1680] sm:$0xff]  ;;  %1068 = vmatpush.msra.mxu2 %v307_v25  ;;  %990 = vmatpush.msrb.mxu0 %v674_v26  ;;  %v843_v20 = vld [vmem:[#allocation2 + $0x17c8] sm:$0xff] }
  0x63   :  { %v81_v29 = vld [vmem:[%s2759_s0 + $0x8] sm:$0x3f]  ;;  %1010 = vmatpush.msrb.mxu1 %v802_v27  ;;  %1051 = vmatpush.msrb.mxu3 %v155_v33  ;;  %v443_v21 = vld [vmem:[#allocation2 + $0xb48] sm:$0xff]  ;;  %s2513_s0 = smov [#allocation10]  }
  0x64   :  { %v666_v31 = vld [vmem:[#allocation2 + $0x1240] sm:$0xff]  ;;  %888 = vst [vmem:[#allocation1 + $0x20] ss:$4 sm:$0xff] %v81_v29  ;;  %1069 = vmatpush.msra.mxu2 %v299_v30  ;;  %v571_v22 = vld [vmem:[#allocation2 + $0xf48] sm:$0xff]  ;;  %s2331_s17 = sshll.u32 %s2513_s0, 4  ;;  %s2332_s17 = int_to_ptr.vmem [resolvable:$true] %s2331_s17 }
  0x65   :  { %v794_v32 = vld [vmem:[#allocation2 + $0x1640] sm:$0xff]  ;;  %991 = vmatpush.msrb.mxu0 %v666_v31  ;;  %1052 = vmatpush.msrb.mxu3 %v147_v37  ;;  %v699_v23 = vld [vmem:[#allocation2 + $0x1348] sm:$0xff] }
  0x66   :  { %v658_v35 = vld [vmem:[#allocation2 + $0x1200] sm:$0xff]  ;;  %1011 = vmatpush.msrb.mxu1 %v794_v32  ;;  %1070 = vmatpush.msra.mxu2 %v291_v34  ;;  %v835_v25 = vld [vmem:[#allocation2 + $0x1788] sm:$0xff] }
  0x67   :  { %v786_v36 = vld [vmem:[#allocation2 + $0x1600] sm:$0xff]  ;;  %992 = vmatpush.msrb.mxu0 %v658_v35  ;;  %1053 = vmatpush.msrb.mxu3 %v139_v41  ;;  %v435_v26 = vld [vmem:[#allocation2 + $0xb08] sm:$0xff] }
  0x68   :  { %v650_v39 = vld [vmem:[#allocation2 + $0x11c0] sm:$0xff]  ;;  %1012 = vmatpush.msrb.mxu1 %v786_v36  ;;  %1071 = vmatpush.msra.mxu2 %v283_v38  ;;  %v563_v27 = vld [vmem:[#allocation2 + $0xf08] sm:$0xff] }
  0x69   :  { %v778_v40 = vld [vmem:[#allocation2 + $0x15c0] sm:$0xff]  ;;  %993 = vmatpush.msrb.mxu0 %v650_v39  ;;  %1054 = vmatpush.msrb.mxu3 %v131_v45  ;;  %v691_v28 = vld [vmem:[#allocation2 + $0x1308] sm:$0xff] }
  0x6a   :  { %v642_v43 = vld [vmem:[#allocation2 + $0x1180] sm:$0xff]  ;;  %1013 = vmatpush.msrb.mxu1 %v778_v40  ;;  %1072 = vmatpush.msra.mxu2 %v275_v42  ;;  %v827_v29 = vld [vmem:[#allocation2 + $0x1748] sm:$0xff] }
  0x6b   :  { %v770_v44 = vld [vmem:[#allocation2 + $0x1580] sm:$0xff]  ;;  %994 = vmatpush.msrb.mxu0 %v642_v43  ;;  %1055 = vmatpush.msrb.mxu3 %v123_v49  ;;  %v2574_v2 = vld.sshfl [vmem:[#allocation1 + $0x30] sm:$0xff pattern:$0x73625140] }
  0x6c   :  { %v634_v47 = vld [vmem:[#allocation2 + $0x1140] sm:$0xff]  ;;  %1014 = vmatpush.msrb.mxu1 %v770_v44  ;;  %1073 = vmatpush.msra.mxu2 %v267_v46  ;;  %v2576_v7 = vld.sshfl [vmem:[#allocation1 + $0x20] sm:$0xff pattern:$0x73625140]  ;;  %v427_v30 = vld [vmem:[#allocation2 + $0xac8] sm:$0xff] }
  0x6d   :  { %v762_v48 = vld [vmem:[#allocation2 + $0x1540] sm:$0xff]  ;;  %995 = vmatpush.msrb.mxu0 %v634_v47  ;;  %1056 = vmatpush.msrb.mxu3 %v115_v53  ;;  %v555_v31 = vld [vmem:[#allocation2 + $0xec8] sm:$0xff] }
  0x6e   :  { %v626_v51 = vld [vmem:[#allocation2 + $0x1100] sm:$0xff]  ;;  %1015 = vmatpush.msrb.mxu1 %v762_v48  ;;  %1074 = vmatpush.msra.mxu2 %v259_v50  ;;  %v683_v32 = vld [vmem:[#allocation2 + $0x12c8] sm:$0xff] }
  0x6f   :  { %v754_v52 = vld [vmem:[#allocation2 + $0x1500] sm:$0xff]  ;;  %996 = vmatpush.msrb.mxu0 %v626_v51  ;;  %1057 = vmatpush.msrb.mxu3 %v107_v57  ;;  %v819_v33 = vld [vmem:[#allocation2 + $0x1708] sm:$0xff] }
  0x70   :  { %v618_v55 = vld [vmem:[#allocation2 + $0x10c0] sm:$0xff]  ;;  %1016 = vmatpush.msrb.mxu1 %v754_v52  ;;  %1075 = vmatpush.msra.mxu2 %v251_v54  ;;  %v419_v34 = vld [vmem:[#allocation2 + $0xa88] sm:$0xff] }
  0x71   :  { %v746_v56 = vld [vmem:[#allocation2 + $0x14c0] sm:$0xff]  ;;  %997 = vmatpush.msrb.mxu0 %v618_v55  ;;  %1058 = vmatpush.msrb.mxu3 %v99_v61  ;;  %v547_v35 = vld [vmem:[#allocation2 + $0xe88] sm:$0xff] }
  0x72   :  { %v610_v59 = vld [vmem:[#allocation2 + $0x1080] sm:$0xff]  ;;  %1017 = vmatpush.msrb.mxu1 %v746_v56  ;;  %1076 = vmatpush.msra.mxu2 %v243_v58  ;;  %v675_v36 = vld [vmem:[#allocation2 + $0x1288] sm:$0xff] }
  0x73   :  { %v738_v60 = vld [vmem:[#allocation2 + $0x1480] sm:$0xff]  ;;  %998 = vmatpush.msrb.mxu0 %v610_v59  ;;  %1059 = vmatpush.msrb.mxu3 %v91_v1  ;;  %v811_v37 = vld [vmem:[#allocation2 + $0x16c8] sm:$0xff] }
  0x74   :  { %v602_v63 = vld [vmem:[#allocation2 + $0x1040] sm:$0xff]  ;;  %1018 = vmatpush.msrb.mxu1 %v738_v60  ;;  %1077 = vmatpush.msra.mxu2 %v235_v62  ;;  %v411_v38 = vld [vmem:[#allocation2 + $0xa48] sm:$0xff] }
  0x75   :  { %v730_v0 = vld [vmem:[#allocation2 + $0x1440] sm:$0xff]  ;;  %999 = vmatpush.msrb.mxu0 %v602_v63  ;;  %2345 = vmatmul.msk.f32.vlgmr.msrb.gmra.mxu2 %vm902_vm0, %v2574_v2  ;;  %v539_v39 = vld [vmem:[#allocation2 + $0xe48] sm:$0xff] }
  0x76   :  { %v594_v3 = vld [vmem:[#allocation2 + $0x1000] sm:$0xff]  ;;  %1019 = vmatpush.msrb.mxu1 %v730_v0  ;;  %1078 = vmatpush.msra.mxu2 %v227_v4  ;;  %v667_v40 = vld [vmem:[#allocation2 + $0x1248] sm:$0xff] }
  0x77   :  { %v722_v5 = vld [vmem:[#allocation2 + $0x1400] sm:$0xff]  ;;  %1000 = vmatpush.msrb.mxu0 %v594_v3  ;;  %1060 = vmatpush.msrb.mxu3 %v83_v6  ;;  %v803_v41 = vld [vmem:[#allocation2 + $0x1688] sm:$0xff] }
  0x78   :  { %1020 = vmatpush.msrb.mxu1 %v722_v5  ;;  %1001 = vmatmul.f32.vlgmr.msrb.gmra.mxu0 %v2576_v7  ;;  %v2581_v13 = vld.sshfl [vmem:[#allocation1 + $0x28] sm:$0xff pattern:$0x73625140]  ;;  %v403_v42 = vld [vmem:[#allocation2 + $0xa08] sm:$0xff] }
  0x79   :  { %1079 = vmatpush.msra.mxu2 %v219_v8  ;;  %1085 = vmatpush.msra.mxu0 %v459_v10  ;;  %v531_v43 = vld [vmem:[#allocation2 + $0xe08] sm:$0xff] }
  0x7a   :  { %1105 = vmatpush.msra.mxu1 %v587_v11  ;;  %1125 = vmatpush.msra.mxu3 %v715_v12  ;;  %v659_v44 = vld [vmem:[#allocation2 + $0x1208] sm:$0xff] }
  0x7b   :  { %1021 = vmatmul.f32.vlgmr.msrb.gmra.mxu1 %v2581_v13  ;;  %1080 = vmatpush.msra.mxu2 %v211_v14  ;;  %v795_v45 = vld [vmem:[#allocation2 + $0x1648] sm:$0xff] }
  0x7c   :  { %1086 = vmatpush.msra.mxu0 %v451_v15  ;;  %1106 = vmatpush.msra.mxu1 %v579_v16  ;;  %v395_v46 = vld [vmem:[#allocation2 + $0x9c8] sm:$0xff] }
  0x7d   :  { %1126 = vmatpush.msra.mxu3 %v707_v17  ;;  %1145 = vmatpush.msrb.mxu2 %v843_v20  ;;  %v523_v47 = vld [vmem:[#allocation2 + $0xdc8] sm:$0xff]  ;;  %v204_v20 = vld [vmem:[#allocation2 + $0x3d0] sm:$0xff] }
  0x7e   :  { %1087 = vmatpush.msra.mxu0 %v443_v21  ;;  %1107 = vmatpush.msra.mxu1 %v571_v22  ;;  %v651_v48 = vld [vmem:[#allocation2 + $0x11c8] sm:$0xff]  ;;  %v460_v22 = vld [vmem:[#allocation2 + $0xbd0] sm:$0xff] }
  0x7f   :  { %1127 = vmatpush.msra.mxu3 %v699_v23  ;;  %1146 = vmatpush.msrb.mxu2 %v835_v25  ;;  %v787_v49 = vld [vmem:[#allocation2 + $0x1608] sm:$0xff]  ;;  %v196_v25 = vld [vmem:[#allocation2 + $0x390] sm:$0xff] }
  0x80   :  { %1088 = vmatpush.msra.mxu0 %v435_v26  ;;  %1108 = vmatpush.msra.mxu1 %v563_v27  ;;  %v387_v50 = vld [vmem:[#allocation2 + $0x988] sm:$0xff]  ;;  %v452_v27 = vld [vmem:[#allocation2 + $0xb90] sm:$0xff] }
  0x81   :  { %1128 = vmatpush.msra.mxu3 %v691_v28  ;;  %1147 = vmatpush.msrb.mxu2 %v827_v29  ;;  %v515_v51 = vld [vmem:[#allocation2 + $0xd88] sm:$0xff]  ;;  %v332_v28 = vld [vmem:[#allocation2 + $0x7d0] sm:$0xff] }
  0x82   :  { %1089 = vmatpush.msra.mxu0 %v427_v30  ;;  %1109 = vmatpush.msra.mxu1 %v555_v31  ;;  %v643_v52 = vld [vmem:[#allocation2 + $0x1188] sm:$0xff]  ;;  %v588_v29 = vld [vmem:[#allocation2 + $0xfd0] sm:$0xff] }
  0x83   :  { %1129 = vmatpush.msra.mxu3 %v683_v32  ;;  %1148 = vmatpush.msrb.mxu2 %v819_v33  ;;  %v779_v53 = vld [vmem:[#allocation2 + $0x15c8] sm:$0xff]  ;;  %v188_v30 = vld [vmem:[#allocation2 + $0x350] sm:$0xff] }
  0x84   :  { %1090 = vmatpush.msra.mxu0 %v419_v34  ;;  %1110 = vmatpush.msra.mxu1 %v547_v35  ;;  %v379_v54 = vld [vmem:[#allocation2 + $0x948] sm:$0xff]  ;;  %v444_v31 = vld [vmem:[#allocation2 + $0xb50] sm:$0xff] }
  0x85   :  { %1130 = vmatpush.msra.mxu3 %v675_v36  ;;  %1149 = vmatpush.msrb.mxu2 %v811_v37  ;;  %v507_v55 = vld [vmem:[#allocation2 + $0xd48] sm:$0xff]  ;;  %v324_v32 = vld [vmem:[#allocation2 + $0x790] sm:$0xff] }
  0x86   :  { %1091 = vmatpush.msra.mxu0 %v411_v38  ;;  %1111 = vmatpush.msra.mxu1 %v539_v39  ;;  %v635_v56 = vld [vmem:[#allocation2 + $0x1148] sm:$0xff]  ;;  %v580_v33 = vld [vmem:[#allocation2 + $0xf90] sm:$0xff] }
  0x87   :  { %1131 = vmatpush.msra.mxu3 %v667_v40  ;;  %1150 = vmatpush.msrb.mxu2 %v803_v41  ;;  %v771_v57 = vld [vmem:[#allocation2 + $0x1588] sm:$0xff]  ;;  %v180_v34 = vld [vmem:[#allocation2 + $0x310] sm:$0xff] }
  0x88   :  { %1092 = vmatpush.msra.mxu0 %v403_v42  ;;  %1112 = vmatpush.msra.mxu1 %v531_v43  ;;  %v371_v58 = vld [vmem:[#allocation2 + $0x908] sm:$0xff]  ;;  %v436_v35 = vld [vmem:[#allocation2 + $0xb10] sm:$0xff] }
  0x89   :  { %1132 = vmatpush.msra.mxu3 %v659_v44  ;;  %1151 = vmatpush.msrb.mxu2 %v795_v45  ;;  %v499_v59 = vld [vmem:[#allocation2 + $0xd08] sm:$0xff]  ;;  %v316_v36 = vld [vmem:[#allocation2 + $0x750] sm:$0xff] }
  0x8a   :  { %1093 = vmatpush.msra.mxu0 %v395_v46  ;;  %1113 = vmatpush.msra.mxu1 %v523_v47  ;;  %v627_v60 = vld [vmem:[#allocation2 + $0x1108] sm:$0xff]  ;;  %v572_v37 = vld [vmem:[#allocation2 + $0xf50] sm:$0xff] }
  0x8b   :  { %1133 = vmatpush.msra.mxu3 %v651_v48  ;;  %1152 = vmatpush.msrb.mxu2 %v787_v49  ;;  %v763_v61 = vld [vmem:[#allocation2 + $0x1548] sm:$0xff]  ;;  %v172_v38 = vld [vmem:[#allocation2 + $0x2d0] sm:$0xff] }
  0x8c   :  { %1094 = vmatpush.msra.mxu0 %v387_v50  ;;  %1114 = vmatpush.msra.mxu1 %v515_v51  ;;  %v363_v62 = vld [vmem:[#allocation2 + $0x8c8] sm:$0xff]  ;;  %v428_v39 = vld [vmem:[#allocation2 + $0xad0] sm:$0xff] }
  0x8d   :  { %1134 = vmatpush.msra.mxu3 %v643_v52  ;;  %1153 = vmatpush.msrb.mxu2 %v779_v53  ;;  %v491_v63 = vld [vmem:[#allocation2 + $0xcc8] sm:$0xff]  ;;  %v308_v40 = vld [vmem:[#allocation2 + $0x710] sm:$0xff] }
  0x8e   :  { %1095 = vmatpush.msra.mxu0 %v379_v54  ;;  %1115 = vmatpush.msra.mxu1 %v507_v55  ;;  %v619_v0 = vld [vmem:[#allocation2 + $0x10c8] sm:$0xff]  ;;  %v564_v41 = vld [vmem:[#allocation2 + $0xf10] sm:$0xff] }
  0x8f   :  { %1135 = vmatpush.msra.mxu3 %v635_v56  ;;  %1154 = vmatpush.msrb.mxu2 %v771_v57  ;;  %v755_v1 = vld [vmem:[#allocation2 + $0x1508] sm:$0xff]  ;;  %v164_v42 = vld [vmem:[#allocation2 + $0x290] sm:$0xff] }
  0x90   :  { %1096 = vmatpush.msra.mxu0 %v371_v58  ;;  %1116 = vmatpush.msra.mxu1 %v499_v59  ;;  %v355_v3 = vld [vmem:[#allocation2 + $0x888] sm:$0xff]  ;;  %v420_v43 = vld [vmem:[#allocation2 + $0xa90] sm:$0xff] }
  0x91   :  { %1136 = vmatpush.msra.mxu3 %v627_v60  ;;  %1155 = vmatpush.msrb.mxu2 %v763_v61  ;;  %v483_v4 = vld [vmem:[#allocation2 + $0xc88] sm:$0xff]  ;;  %v300_v44 = vld [vmem:[#allocation2 + $0x6d0] sm:$0xff] }
  0x92   :  { %1061 = vmatmul.f32.vlgmr.msrb.gmra.mxu3 %v2562_v18  ;;  %1097 = vmatpush.msra.mxu0 %v363_v62  ;;  %v611_v5 = vld [vmem:[#allocation2 + $0x1088] sm:$0xff]  ;;  %v556_v45 = vld [vmem:[#allocation2 + $0xed0] sm:$0xff] }
  0x93   :  { %1117 = vmatpush.msra.mxu1 %v491_v63  ;;  %1137 = vmatpush.msra.mxu3 %v619_v0  ;;  %v747_v6 = vld [vmem:[#allocation2 + $0x14c8] sm:$0xff]  ;;  %v156_v46 = vld [vmem:[#allocation2 + $0x250] sm:$0xff] }
  0x94   :  { %v347_v8 = vld [vmem:[#allocation2 + $0x848] sm:$0xff]  ;;  %1156 = vmatpush.msrb.mxu2 %v755_v1  ;;  %1098 = vmatpush.msra.mxu0 %v355_v3  ;;  %v412_v47 = vld [vmem:[#allocation2 + $0xa50] sm:$0xff] }
  0x95   :  { %v475_v10 = vld [vmem:[#allocation2 + $0xc48] sm:$0xff]  ;;  %1118 = vmatpush.msra.mxu1 %v483_v4  ;;  %1138 = vmatpush.msra.mxu3 %v611_v5  ;;  %v292_v48 = vld [vmem:[#allocation2 + $0x690] sm:$0xff] }
  0x96   :  { %v603_v11 = vld [vmem:[#allocation2 + $0x1048] sm:$0xff]  ;;  %1157 = vmatpush.msrb.mxu2 %v747_v6  ;;  %1099 = vmatpush.msra.mxu0 %v347_v8  ;;  %v548_v49 = vld [vmem:[#allocation2 + $0xe90] sm:$0xff] }
  0x97   :  { %v739_v12 = vld [vmem:[#allocation2 + $0x1488] sm:$0xff]  ;;  %1081 = vmatmul.f32.vlgmr.msra.gmra.mxu2 %v2567_v24  ;;  %1119 = vmatpush.msra.mxu1 %v475_v10  ;;  %v148_v50 = vld [vmem:[#allocation2 + $0x210] sm:$0xff] }
  0x98   :  { %v339_v14 = vld [vmem:[#allocation2 + $0x808] sm:$0xff]  ;;  %1139 = vmatpush.msra.mxu3 %v603_v11  ;;  %1158 = vmatpush.msrb.mxu2 %v739_v12  ;;  %v404_v51 = vld [vmem:[#allocation2 + $0xa10] sm:$0xff] }
  0x99   :  { %v467_v15 = vld [vmem:[#allocation2 + $0xc08] sm:$0xff]  ;;  %1100 = vmatpush.msra.mxu0 %v339_v14  ;;  %v284_v52 = vld [vmem:[#allocation2 + $0x650] sm:$0xff] }
  0x9a   :  { %v595_v16 = vld [vmem:[#allocation2 + $0x1008] sm:$0xff]  ;;  %1120 = vmatpush.msra.mxu1 %v467_v15  ;;  %1101 = vmatmul.f32.vlgmr.msra.gmra.mxu0 %v2559_v9  ;;  %v540_v53 = vld [vmem:[#allocation2 + $0xe50] sm:$0xff] }
  0x9b   :  { %v731_v17 = vld [vmem:[#allocation2 + $0x1448] sm:$0xff]  ;;  %1140 = vmatpush.msra.mxu3 %v595_v16  ;;  %1225 = vmatpush.msrb.mxu0 %v460_v22  ;;  %v140_v54 = vld [vmem:[#allocation2 + $0x1d0] sm:$0xff] }
  0x9c   :  { %v859_v21 = vld [vmem:[#allocation2 + $0x1848] sm:$0xff]  ;;  %1159 = vmatpush.msrb.mxu2 %v731_v17  ;;  %1141 = vmatmul.f32.vlgmr.msra.gmra.mxu3 %v2576_v7  ;;  %v396_v55 = vld [vmem:[#allocation2 + $0x9d0] sm:$0xff] }
  0x9d   :  { %v723_v23 = vld [vmem:[#allocation2 + $0x1408] sm:$0xff]  ;;  %1185 = vmatpush.msrb.mxu1 %v204_v20  ;;  %1179 = vmatpush.msrb.mxu3 %v859_v21  ;;  %v276_v56 = vld [vmem:[#allocation2 + $0x610] sm:$0xff] }
  0x9e   :  { %v851_v26 = vld [vmem:[#allocation2 + $0x1808] sm:$0xff]  ;;  %1160 = vmatpush.msrb.mxu2 %v723_v23  ;;  %1226 = vmatpush.msrb.mxu0 %v452_v27  ;;  %v532_v57 = vld [vmem:[#allocation2 + $0xe10] sm:$0xff] }
  0x9f   :  { %1186 = vmatpush.msrb.mxu1 %v196_v25  ;;  %1180 = vmatpush.msrb.mxu3 %v851_v26  ;;  %v132_v58 = vld [vmem:[#allocation2 + $0x190] sm:$0xff] }
  0xa0   :  { %1245 = vmatpush.msra.mxu2 %v588_v29  ;;  %1227 = vmatpush.msrb.mxu0 %v444_v31  ;;  %v388_v59 = vld [vmem:[#allocation2 + $0x990] sm:$0xff] }
  0xa1   :  { %1205 = vmatpush.msra.mxu3 %v332_v28  ;;  %1187 = vmatpush.msrb.mxu1 %v188_v30  ;;  %v268_v60 = vld [vmem:[#allocation2 + $0x5d0] sm:$0xff] }
  0xa2   :  { %1161 = vmatmul.f32.vlgmr.msrb.gmra.mxu2 %v2581_v13  ;;  %1228 = vmatpush.msrb.mxu0 %v436_v35  ;;  %v524_v61 = vld [vmem:[#allocation2 + $0xdd0] sm:$0xff] }
  0xa3   :  { %1206 = vmatpush.msra.mxu3 %v324_v32  ;;  %1246 = vmatpush.msra.mxu2 %v580_v33  ;;  %v124_v62 = vld [vmem:[#allocation2 + $0x150] sm:$0xff] }
  0xa4   :  { %1188 = vmatpush.msrb.mxu1 %v180_v34  ;;  %2346 = vmatmul.msk.f32.vlgmr.msrb.gmra.mxu3 %vm902_vm0, %v2574_v2  ;;  %v380_v63 = vld [vmem:[#allocation2 + $0x950] sm:$0xff] }
  0xa5   :  { %1121 = vmatmul.f32.vlgmr.msra.gmra.mxu1 %v2564_v19  ;;  %1207 = vmatpush.msra.mxu3 %v316_v36  ;;  %v260_v0 = vld [vmem:[#allocation2 + $0x590] sm:$0xff]  ;;  %v205_v36 = vld [vmem:[#allocation2 + $0x3d8] sm:$0xff] }
  0xa6   :  { %1247 = vmatpush.msra.mxu2 %v572_v37  ;;  %1189 = vmatpush.msrb.mxu1 %v172_v38  ;;  %v516_v1 = vld [vmem:[#allocation2 + $0xd90] sm:$0xff]  ;;  %v333_v37 = vld [vmem:[#allocation2 + $0x7d8] sm:$0xff] }
  0xa7   :  { %1229 = vmatpush.msrb.mxu0 %v428_v39  ;;  %1208 = vmatpush.msra.mxu3 %v308_v40  ;;  %v116_v3 = vld [vmem:[#allocation2 + $0x110] sm:$0xff]  ;;  %v197_v40 = vld [vmem:[#allocation2 + $0x398] sm:$0xff] }
  0xa8   :  { %1248 = vmatpush.msra.mxu2 %v564_v41  ;;  %1190 = vmatpush.msrb.mxu1 %v164_v42  ;;  %v372_v4 = vld [vmem:[#allocation2 + $0x910] sm:$0xff]  ;;  %v325_v41 = vld [vmem:[#allocation2 + $0x798] sm:$0xff] }
  0xa9   :  { %1230 = vmatpush.msrb.mxu0 %v420_v43  ;;  %1209 = vmatpush.msra.mxu3 %v300_v44  ;;  %v252_v5 = vld [vmem:[#allocation2 + $0x550] sm:$0xff]  ;;  %v189_v44 = vld [vmem:[#allocation2 + $0x358] sm:$0xff] }
  0xaa   :  { %1249 = vmatpush.msra.mxu2 %v556_v45  ;;  %1191 = vmatpush.msrb.mxu1 %v156_v46  ;;  %v508_v6 = vld [vmem:[#allocation2 + $0xd50] sm:$0xff]  ;;  %v317_v45 = vld [vmem:[#allocation2 + $0x758] sm:$0xff] }
  0xab   :  { %1231 = vmatpush.msrb.mxu0 %v412_v47  ;;  %1210 = vmatpush.msra.mxu3 %v292_v48  ;;  %v108_v8 = vld [vmem:[#allocation2 + $0xd0] sm:$0xff]  ;;  %v181_v47 = vld [vmem:[#allocation2 + $0x318] sm:$0xff] }
  0xac   :  { %1250 = vmatpush.msra.mxu2 %v548_v49  ;;  %1192 = vmatpush.msrb.mxu1 %v148_v50  ;;  %v364_v10 = vld [vmem:[#allocation2 + $0x8d0] sm:$0xff]  ;;  %v309_v48 = vld [vmem:[#allocation2 + $0x718] sm:$0xff] }
  0xad   :  { %1232 = vmatpush.msrb.mxu0 %v404_v51  ;;  %1211 = vmatpush.msra.mxu3 %v284_v52  ;;  %v244_v11 = vld [vmem:[#allocation2 + $0x510] sm:$0xff]  ;;  %v173_v50 = vld [vmem:[#allocation2 + $0x2d8] sm:$0xff] }
  0xae   :  { %1251 = vmatpush.msra.mxu2 %v540_v53  ;;  %1193 = vmatpush.msrb.mxu1 %v140_v54  ;;  %v500_v12 = vld [vmem:[#allocation2 + $0xd10] sm:$0xff]  ;;  %v301_v51 = vld [vmem:[#allocation2 + $0x6d8] sm:$0xff] }
  0xaf   :  { %1233 = vmatpush.msrb.mxu0 %v396_v55  ;;  %1212 = vmatpush.msra.mxu3 %v276_v56  ;;  %v100_v14 = vld [vmem:[#allocation2 + $0x90] sm:$0xff]  ;;  %v165_v54 = vld [vmem:[#allocation2 + $0x298] sm:$0xff] }
  0xb0   :  { %1252 = vmatpush.msra.mxu2 %v532_v57  ;;  %1194 = vmatpush.msrb.mxu1 %v132_v58  ;;  %v356_v15 = vld [vmem:[#allocation2 + $0x890] sm:$0xff]  ;;  %v293_v55 = vld [vmem:[#allocation2 + $0x698] sm:$0xff] }
  0xb1   :  { %1234 = vmatpush.msrb.mxu0 %v388_v59  ;;  %1213 = vmatpush.msra.mxu3 %v268_v60  ;;  %v236_v16 = vld [vmem:[#allocation2 + $0x4d0] sm:$0xff]  ;;  %v149_v60 = vld [vmem:[#allocation2 + $0x218] sm:$0xff] }
  0xb2   :  { %1253 = vmatpush.msra.mxu2 %v524_v61  ;;  %1195 = vmatpush.msrb.mxu1 %v124_v62  ;;  %v492_v17 = vld [vmem:[#allocation2 + $0xcd0] sm:$0xff]  ;;  %v277_v61 = vld [vmem:[#allocation2 + $0x618] sm:$0xff] }
  0xb3   :  { %1235 = vmatpush.msrb.mxu0 %v380_v63  ;;  %1214 = vmatpush.msra.mxu3 %v260_v0  ;;  %v92_v20 = vld [vmem:[#allocation2 + $0x50] sm:$0xff]  ;;  %v141_v0 = vld [vmem:[#allocation2 + $0x1d8] sm:$0xff] }
  0xb4   :  { %1254 = vmatpush.msra.mxu2 %v516_v1  ;;  %1196 = vmatpush.msrb.mxu1 %v116_v3  ;;  %v348_v21 = vld [vmem:[#allocation2 + $0x850] sm:$0xff]  ;;  %v269_v1 = vld [vmem:[#allocation2 + $0x5d8] sm:$0xff] }
  0xb5   :  { %1236 = vmatpush.msrb.mxu0 %v372_v4  ;;  %1215 = vmatpush.msra.mxu3 %v252_v5  ;;  %v228_v22 = vld [vmem:[#allocation2 + $0x490] sm:$0xff]  ;;  %v133_v5 = vld [vmem:[#allocation2 + $0x198] sm:$0xff] }
  0xb6   :  { %1255 = vmatpush.msra.mxu2 %v508_v6  ;;  %1197 = vmatpush.msrb.mxu1 %v108_v8  ;;  %v484_v23 = vld [vmem:[#allocation2 + $0xc90] sm:$0xff]  ;;  %v261_v6 = vld [vmem:[#allocation2 + $0x598] sm:$0xff] }
  0xb7   :  { %1237 = vmatpush.msrb.mxu0 %v364_v10  ;;  %1216 = vmatpush.msra.mxu3 %v244_v11  ;;  %v84_v25 = vld [vmem:[#allocation2 + $0x10] sm:$0xff]  ;;  %v125_v11 = vld [vmem:[#allocation2 + $0x158] sm:$0xff] }
  0xb8   :  { %1256 = vmatpush.msra.mxu2 %v500_v12  ;;  %1198 = vmatpush.msrb.mxu1 %v100_v14  ;;  %v340_v26 = vld [vmem:[#allocation2 + $0x810] sm:$0xff]  ;;  %v253_v12 = vld [vmem:[#allocation2 + $0x558] sm:$0xff] }
  0xb9   :  { %1238 = vmatpush.msrb.mxu0 %v356_v15  ;;  %1217 = vmatpush.msra.mxu3 %v236_v16  ;;  %v220_v27 = vld [vmem:[#allocation2 + $0x450] sm:$0xff]  ;;  %v117_v16 = vld [vmem:[#allocation2 + $0x118] sm:$0xff] }
  0xba   :  { %1257 = vmatpush.msra.mxu2 %v492_v17  ;;  %1199 = vmatpush.msrb.mxu1 %v92_v20  ;;  %v476_v28 = vld [vmem:[#allocation2 + $0xc50] sm:$0xff]  ;;  %v245_v17 = vld [vmem:[#allocation2 + $0x518] sm:$0xff] }
  0xbb   :  { %1239 = vmatpush.msrb.mxu0 %v348_v21  ;;  %1218 = vmatpush.msra.mxu3 %v228_v22  ;;  %v716_v29 = vld [vmem:[#allocation2 + $0x13d0] sm:$0xff]  ;;  %v109_v22 = vld [vmem:[#allocation2 + $0xd8] sm:$0xff] }
  0xbc   :  { %1258 = vmatpush.msra.mxu2 %v484_v23  ;;  %v860_v30 = vld [vmem:[#allocation2 + $0x1850] sm:$0xff]  ;;  %1200 = vmatpush.msrb.mxu1 %v84_v25  ;;  %v237_v23 = vld [vmem:[#allocation2 + $0x4d8] sm:$0xff] }
  0xbd   :  { %1240 = vmatpush.msrb.mxu0 %v340_v26  ;;  %v212_v31 = vld [vmem:[#allocation2 + $0x410] sm:$0xff]  ;;  %1219 = vmatpush.msra.mxu3 %v220_v27  ;;  %v101_v27 = vld [vmem:[#allocation2 + $0x98] sm:$0xff] }
  0xbe   :  { %v468_v32 = vld [vmem:[#allocation2 + $0xc10] sm:$0xff]  ;;  %1259 = vmatpush.msra.mxu2 %v476_v28  ;;  %1265 = vmatpush.msra.mxu1 %v716_v29  ;;  %v229_v28 = vld [vmem:[#allocation2 + $0x498] sm:$0xff] }
  0xbf   :  { %v708_v33 = vld [vmem:[#allocation2 + $0x1390] sm:$0xff]  ;;  %1319 = vmatpush.msra.mxu0 %v860_v30  ;;  %1220 = vmatpush.msra.mxu3 %v212_v31  ;;  %v93_v31 = vld [vmem:[#allocation2 + $0x58] sm:$0xff] }
  0xc0   :  { %v852_v34 = vld [vmem:[#allocation2 + $0x1810] sm:$0xff]  ;;  %1260 = vmatpush.msra.mxu2 %v468_v32  ;;  %1266 = vmatpush.msra.mxu1 %v708_v33  ;;  %v221_v32 = vld [vmem:[#allocation2 + $0x458] sm:$0xff] }
  0xc1   :  { %v844_v35 = vld [vmem:[#allocation2 + $0x17d0] sm:$0xff]  ;;  %1320 = vmatpush.msra.mxu0 %v852_v34  ;;  %1221 = vmatmul.f32.vlgmr.msra.gmra.mxu3 %v2567_v24  ;;  %v461_v33 = vld [vmem:[#allocation2 + $0xbd8] sm:$0xff] }
  0xc2   :  { %v700_v38 = vld [vmem:[#allocation2 + $0x1350] sm:$0xff]  ;;  %1241 = vmatmul.f32.vlgmr.msrb.gmra.mxu0 %v2559_v9  ;;  %1285 = vmatpush.msrb.mxu3 %v844_v35  ;;  %v85_v35 = vld [vmem:[#allocation2 + $0x18] sm:$0xff] }
  0xc3   :  { %v836_v39 = vld [vmem:[#allocation2 + $0x1790] sm:$0xff]  ;;  %1325 = vmatpush.msrb.mxu2 %v205_v36  ;;  %1345 = vmatpush.msrb.mxu0 %v333_v37  ;;  %v213_v36 = vld [vmem:[#allocation2 + $0x418] sm:$0xff] }
  0xc4   :  { %v692_v42 = vld [vmem:[#allocation2 + $0x1310] sm:$0xff]  ;;  %1267 = vmatpush.msra.mxu1 %v700_v38  ;;  %1286 = vmatpush.msrb.mxu3 %v836_v39  ;;  %v453_v37 = vld [vmem:[#allocation2 + $0xb98] sm:$0xff] }
  0xc5   :  { %v828_v43 = vld [vmem:[#allocation2 + $0x1750] sm:$0xff]  ;;  %1326 = vmatpush.msrb.mxu2 %v197_v40  ;;  %1346 = vmatpush.msrb.mxu0 %v325_v41  ;;  %v589_v38 = vld [vmem:[#allocation2 + $0xfd8] sm:$0xff] }
  0xc6   :  { %v684_v46 = vld [vmem:[#allocation2 + $0x12d0] sm:$0xff]  ;;  %1268 = vmatpush.msra.mxu1 %v692_v42  ;;  %1287 = vmatpush.msrb.mxu3 %v828_v43  ;;  %v717_v39 = vld [vmem:[#allocation2 + $0x13d8] sm:$0xff] }
  0xc7   :  { %1327 = vmatpush.msrb.mxu2 %v189_v44  ;;  %v820_v9 = vld [vmem:[#allocation2 + $0x1710] sm:$0xff]  ;;  %1347 = vmatpush.msrb.mxu0 %v317_v45  ;;  %v845_v40 = vld [vmem:[#allocation2 + $0x17d8] sm:$0xff] }
  0xc8   :  { %1269 = vmatpush.msra.mxu1 %v684_v46  ;;  %v676_v49 = vld [vmem:[#allocation2 + $0x1290] sm:$0xff]  ;;  %1261 = vmatmul.f32.vlgmr.msra.gmra.mxu2 %v2564_v19  ;;  %v285_v19 = vld [vmem:[#allocation2 + $0x658] sm:$0xff] }
  0xc9   :  { %1201 = vmatmul.f32.vlgmr.msrb.gmra.mxu1 %v2562_v18  ;;  %v812_v24 = vld [vmem:[#allocation2 + $0x16d0] sm:$0xff]  ;;  %1288 = vmatpush.msrb.mxu3 %v820_v9  ;;  %v157_v18 = vld [vmem:[#allocation2 + $0x258] sm:$0xff] }
  0xca   :  { %1328 = vmatpush.msrb.mxu2 %v181_v47  ;;  %v668_v52 = vld [vmem:[#allocation2 + $0x1250] sm:$0xff]  ;;  %1348 = vmatpush.msrb.mxu0 %v309_v48  ;;  %v445_v41 = vld [vmem:[#allocation2 + $0xb58] sm:$0xff] }
  0xcb   :  { %1270 = vmatpush.msra.mxu1 %v676_v49  ;;  %v804_v53 = vld [vmem:[#allocation2 + $0x1690] sm:$0xff]  ;;  %1289 = vmatpush.msrb.mxu3 %v812_v24  ;;  %v581_v42 = vld [vmem:[#allocation2 + $0xf98] sm:$0xff] }
  0xcc   :  { %1329 = vmatpush.msrb.mxu2 %v173_v50  ;;  %v660_v56 = vld [vmem:[#allocation2 + $0x1210] sm:$0xff]  ;;  %1349 = vmatpush.msrb.mxu0 %v301_v51  ;;  %v837_v43 = vld [vmem:[#allocation2 + $0x1798] sm:$0xff] }
  0xcd   :  { %1271 = vmatpush.msra.mxu1 %v668_v52  ;;  %v796_v57 = vld [vmem:[#allocation2 + $0x1650] sm:$0xff]  ;;  %1290 = vmatpush.msrb.mxu3 %v804_v53  ;;  %v437_v44 = vld [vmem:[#allocation2 + $0xb18] sm:$0xff] }
  0xce   :  { %1330 = vmatpush.msrb.mxu2 %v165_v54  ;;  %v652_v58 = vld [vmem:[#allocation2 + $0x11d0] sm:$0xff]  ;;  %1350 = vmatpush.msrb.mxu0 %v293_v55  ;;  %v573_v45 = vld [vmem:[#allocation2 + $0xf58] sm:$0xff] }
  0xcf   :  { %1272 = vmatpush.msra.mxu1 %v660_v56  ;;  %v788_v59 = vld [vmem:[#allocation2 + $0x1610] sm:$0xff]  ;;  %1291 = vmatpush.msrb.mxu3 %v796_v57  ;;  %v701_v46 = vld [vmem:[#allocation2 + $0x1358] sm:$0xff] }
  0xd0   :  { %1331 = vmatpush.msrb.mxu2 %v157_v18  ;;  %v644_v62 = vld [vmem:[#allocation2 + $0x1190] sm:$0xff]  ;;  %1351 = vmatpush.msrb.mxu0 %v285_v19  ;;  %v829_v9 = vld [vmem:[#allocation2 + $0x1758] sm:$0xff] }
  0xd1   :  { %1273 = vmatpush.msra.mxu1 %v652_v58  ;;  %v780_v63 = vld [vmem:[#allocation2 + $0x15d0] sm:$0xff]  ;;  %1292 = vmatpush.msrb.mxu3 %v788_v59  ;;  %v429_v47 = vld [vmem:[#allocation2 + $0xad8] sm:$0xff] }
  0xd2   :  { %1332 = vmatpush.msrb.mxu2 %v149_v60  ;;  %v636_v3 = vld [vmem:[#allocation2 + $0x1150] sm:$0xff]  ;;  %1352 = vmatpush.msrb.mxu0 %v277_v61  ;;  %v693_v48 = vld [vmem:[#allocation2 + $0x1318] sm:$0xff] }
  0xd3   :  { %1274 = vmatpush.msra.mxu1 %v644_v62  ;;  %v772_v4 = vld [vmem:[#allocation2 + $0x1590] sm:$0xff]  ;;  %1293 = vmatpush.msrb.mxu3 %v780_v63  ;;  %v821_v49 = vld [vmem:[#allocation2 + $0x1718] sm:$0xff] }
  0xd4   :  { %1333 = vmatpush.msrb.mxu2 %v141_v0  ;;  %v628_v8 = vld [vmem:[#allocation2 + $0x1110] sm:$0xff]  ;;  %1353 = vmatpush.msrb.mxu0 %v269_v1  ;;  %v557_v24 = vld [vmem:[#allocation2 + $0xed8] sm:$0xff] }
  0xd5   :  { %1275 = vmatpush.msra.mxu1 %v636_v3  ;;  %v764_v10 = vld [vmem:[#allocation2 + $0x1550] sm:$0xff]  ;;  %1294 = vmatpush.msrb.mxu3 %v772_v4  ;;  %v685_v50 = vld [vmem:[#allocation2 + $0x12d8] sm:$0xff] }
  0xd6   :  { %1334 = vmatpush.msrb.mxu2 %v133_v5  ;;  %v620_v14 = vld [vmem:[#allocation2 + $0x10d0] sm:$0xff]  ;;  %1354 = vmatpush.msrb.mxu0 %v261_v6  ;;  %v813_v51 = vld [vmem:[#allocation2 + $0x16d8] sm:$0xff] }
  0xd7   :  { %1276 = vmatpush.msra.mxu1 %v628_v8  ;;  %v756_v15 = vld [vmem:[#allocation2 + $0x1510] sm:$0xff]  ;;  %1295 = vmatpush.msrb.mxu3 %v764_v10  ;;  %v413_v52 = vld [vmem:[#allocation2 + $0xa58] sm:$0xff] }
  0xd8   :  { %1335 = vmatpush.msrb.mxu2 %v125_v11  ;;  %v612_v20 = vld [vmem:[#allocation2 + $0x1090] sm:$0xff]  ;;  %1355 = vmatpush.msrb.mxu0 %v253_v12  ;;  %v549_v53 = vld [vmem:[#allocation2 + $0xe98] sm:$0xff] }
  0xd9   :  { %1277 = vmatpush.msra.mxu1 %v620_v14  ;;  %v748_v21 = vld [vmem:[#allocation2 + $0x14d0] sm:$0xff]  ;;  %1296 = vmatpush.msrb.mxu3 %v756_v15  ;;  %v677_v54 = vld [vmem:[#allocation2 + $0x1298] sm:$0xff] }
  0xda   :  { %1336 = vmatpush.msrb.mxu2 %v117_v16  ;;  %v604_v25 = vld [vmem:[#allocation2 + $0x1050] sm:$0xff]  ;;  %1356 = vmatpush.msrb.mxu0 %v245_v17  ;;  %v805_v55 = vld [vmem:[#allocation2 + $0x1698] sm:$0xff] }
  0xdb   :  { %1278 = vmatpush.msra.mxu1 %v612_v20  ;;  %v740_v26 = vld [vmem:[#allocation2 + $0x1490] sm:$0xff]  ;;  %1297 = vmatpush.msrb.mxu3 %v748_v21  ;;  %v405_v56 = vld [vmem:[#allocation2 + $0xa18] sm:$0xff] }
  0xdc   :  { %1337 = vmatpush.msrb.mxu2 %v109_v22  ;;  %v596_v29 = vld [vmem:[#allocation2 + $0x1010] sm:$0xff]  ;;  %1357 = vmatpush.msrb.mxu0 %v237_v23  ;;  %v541_v57 = vld [vmem:[#allocation2 + $0xe58] sm:$0xff] }
  0xdd   :  { %1279 = vmatpush.msra.mxu1 %v604_v25  ;;  %v732_v30 = vld [vmem:[#allocation2 + $0x1450] sm:$0xff]  ;;  %1298 = vmatpush.msrb.mxu3 %v740_v26  ;;  %v669_v18 = vld [vmem:[#allocation2 + $0x1258] sm:$0xff] }
  0xde   :  { %1338 = vmatpush.msrb.mxu2 %v101_v27  ;;  %1358 = vmatpush.msrb.mxu0 %v229_v28  ;;  %v724_v34 = vld [vmem:[#allocation2 + $0x1410] sm:$0xff]  ;;  %v797_v19 = vld [vmem:[#allocation2 + $0x1658] sm:$0xff] }
  0xdf   :  { %1280 = vmatpush.msra.mxu1 %v596_v29  ;;  %1299 = vmatpush.msrb.mxu3 %v732_v30  ;;  %v397_v58 = vld [vmem:[#allocation2 + $0x9d8] sm:$0xff] }
  0xe0   :  { %1281 = vmatmul.f32.vlgmr.msra.gmra.mxu1 %v2576_v7  ;;  %1339 = vmatpush.msrb.mxu2 %v93_v31  ;;  %v709_v7 = vld [vmem:[#allocation2 + $0x1398] sm:$0xff] }
  0xe1   :  { %1359 = vmatpush.msrb.mxu0 %v221_v32  ;;  %1365 = vmatpush.msrb.mxu1 %v461_v33  ;;  %v533_v59 = vld [vmem:[#allocation2 + $0xe18] sm:$0xff] }
  0xe2   :  { %1300 = vmatpush.msrb.mxu3 %v724_v34  ;;  %1340 = vmatpush.msrb.mxu2 %v85_v35  ;;  %v661_v60 = vld [vmem:[#allocation2 + $0x1218] sm:$0xff] }
  0xe3   :  { %1360 = vmatpush.msrb.mxu0 %v213_v36  ;;  %1366 = vmatpush.msrb.mxu1 %v453_v37  ;;  %v789_v61 = vld [vmem:[#allocation2 + $0x1618] sm:$0xff] }
  0xe4   :  { %1301 = vmatmul.f32.vlgmr.msrb.gmra.mxu3 %v2581_v13  ;;  %2347 = vmatmul.msk.f32.vlgmr.msra.gmra.mxu0 %vm902_vm0, %v2574_v2  ;;  %v565_v13 = vld [vmem:[#allocation2 + $0xf18] sm:$0xff] }
  0xe5   :  { %1385 = vmatpush.msra.mxu3 %v589_v38  ;;  %1405 = vmatpush.msra.mxu2 %v717_v39  ;;  %v421_v2 = vld [vmem:[#allocation2 + $0xa98] sm:$0xff]  ;;  %v206_v39 = vld [vmem:[#allocation2 + $0x3e0] sm:$0xff] }
  0xe6   :  { %1425 = vmatpush.msra.mxu0 %v845_v40  ;;  %1367 = vmatpush.msrb.mxu1 %v445_v41  ;;  %v389_v62 = vld [vmem:[#allocation2 + $0x998] sm:$0xff]  ;;  %v334_v40 = vld [vmem:[#allocation2 + $0x7e0] sm:$0xff] }
  0xe7   :  { %1386 = vmatpush.msra.mxu3 %v581_v42  ;;  %1406 = vmatpush.msra.mxu2 %v709_v7  ;;  %v525_v63 = vld [vmem:[#allocation2 + $0xdd8] sm:$0xff]  ;;  %v462_v41 = vld [vmem:[#allocation2 + $0xbe0] sm:$0xff] }
  0xe8   :  { %1426 = vmatpush.msra.mxu0 %v837_v43  ;;  %1368 = vmatpush.msrb.mxu1 %v437_v44  ;;  %v653_v0 = vld [vmem:[#allocation2 + $0x11d8] sm:$0xff]  ;;  %v590_v42 = vld [vmem:[#allocation2 + $0xfe0] sm:$0xff]  ;;  %v2606_v43 = vld.sshfl [vmem:[#allocation1 + $0x10] sm:$0xff pattern:$0x73625140] }
  0xe9   :  { %1387 = vmatpush.msra.mxu3 %v573_v45  ;;  %1407 = vmatpush.msra.mxu2 %v701_v46  ;;  %v781_v1 = vld [vmem:[#allocation2 + $0x15d8] sm:$0xff]  ;;  %v2603_v7 = vld.sshfl [vmem:[#allocation1 + $0x8] sm:$0xff pattern:$0x73625140] }
  0xea   :  { %1427 = vmatpush.msra.mxu0 %v829_v9  ;;  %1369 = vmatpush.msrb.mxu1 %v429_v47  ;;  %v381_v3 = vld [vmem:[#allocation2 + $0x958] sm:$0xff]  ;;  %v198_v44 = vld [vmem:[#allocation2 + $0x3a0] sm:$0xff] }
  0xeb   :  { %1388 = vmatpush.msra.mxu3 %v565_v13  ;;  %1408 = vmatpush.msra.mxu2 %v693_v48  ;;  %v517_v4 = vld [vmem:[#allocation2 + $0xd98] sm:$0xff]  ;;  %v326_v45 = vld [vmem:[#allocation2 + $0x7a0] sm:$0xff] }
  0xec   :  { %1428 = vmatpush.msra.mxu0 %v821_v49  ;;  %1370 = vmatpush.msrb.mxu1 %v421_v2  ;;  %v645_v5 = vld [vmem:[#allocation2 + $0x1198] sm:$0xff]  ;;  %v454_v46 = vld [vmem:[#allocation2 + $0xba0] sm:$0xff]  ;;  %v2609_v2 = vld.sshfl [vmem:[#allocation1 + $0x18] sm:$0xff pattern:$0x73625140] }
  0xed   :  { %1389 = vmatpush.msra.mxu3 %v557_v24  ;;  %1409 = vmatpush.msra.mxu2 %v685_v50  ;;  %v773_v6 = vld [vmem:[#allocation2 + $0x1598] sm:$0xff]  ;;  %v582_v9 = vld [vmem:[#allocation2 + $0xfa0] sm:$0xff] }
  0xee   :  { %1429 = vmatpush.msra.mxu0 %v813_v51  ;;  %1371 = vmatpush.msrb.mxu1 %v413_v52  ;;  %v373_v8 = vld [vmem:[#allocation2 + $0x918] sm:$0xff]  ;;  %v318_v47 = vld [vmem:[#allocation2 + $0x760] sm:$0xff] }
  0xef   :  { %1390 = vmatpush.msra.mxu3 %v549_v53  ;;  %1410 = vmatpush.msra.mxu2 %v677_v54  ;;  %v509_v10 = vld [vmem:[#allocation2 + $0xd58] sm:$0xff]  ;;  %v190_v13 = vld [vmem:[#allocation2 + $0x360] sm:$0xff] }
  0xf0   :  { %1430 = vmatpush.msra.mxu0 %v805_v55  ;;  %1372 = vmatpush.msrb.mxu1 %v405_v56  ;;  %v637_v11 = vld [vmem:[#allocation2 + $0x1158] sm:$0xff]  ;;  %v446_v48 = vld [vmem:[#allocation2 + $0xb60] sm:$0xff] }
  0xf1   :  { %1391 = vmatpush.msra.mxu3 %v541_v57  ;;  %1411 = vmatpush.msra.mxu2 %v669_v18  ;;  %v765_v12 = vld [vmem:[#allocation2 + $0x1558] sm:$0xff]  ;;  %v574_v49 = vld [vmem:[#allocation2 + $0xf60] sm:$0xff] }
  0xf2   :  { %1431 = vmatpush.msra.mxu0 %v797_v19  ;;  %1373 = vmatpush.msrb.mxu1 %v397_v58  ;;  %v365_v14 = vld [vmem:[#allocation2 + $0x8d8] sm:$0xff]  ;;  %v182_v24 = vld [vmem:[#allocation2 + $0x320] sm:$0xff] }
  0xf3   :  { %1392 = vmatpush.msra.mxu3 %v533_v59  ;;  %1412 = vmatpush.msra.mxu2 %v661_v60  ;;  %v501_v15 = vld [vmem:[#allocation2 + $0xd18] sm:$0xff]  ;;  %v310_v50 = vld [vmem:[#allocation2 + $0x720] sm:$0xff] }
  0xf4   :  { %1432 = vmatpush.msra.mxu0 %v789_v61  ;;  %1374 = vmatpush.msrb.mxu1 %v389_v62  ;;  %v629_v16 = vld [vmem:[#allocation2 + $0x1118] sm:$0xff]  ;;  %v438_v51 = vld [vmem:[#allocation2 + $0xb20] sm:$0xff] }
  0xf5   :  { %1393 = vmatpush.msra.mxu3 %v525_v63  ;;  %1413 = vmatpush.msra.mxu2 %v653_v0  ;;  %v757_v17 = vld [vmem:[#allocation2 + $0x1518] sm:$0xff]  ;;  %v566_v52 = vld [vmem:[#allocation2 + $0xf20] sm:$0xff] }
  0xf6   :  { %1433 = vmatpush.msra.mxu0 %v781_v1  ;;  %1375 = vmatpush.msrb.mxu1 %v381_v3  ;;  %v357_v20 = vld [vmem:[#allocation2 + $0x898] sm:$0xff]  ;;  %v174_v54 = vld [vmem:[#allocation2 + $0x2e0] sm:$0xff] }
  0xf7   :  { %1394 = vmatpush.msra.mxu3 %v517_v4  ;;  %1414 = vmatpush.msra.mxu2 %v645_v5  ;;  %v493_v21 = vld [vmem:[#allocation2 + $0xcd8] sm:$0xff]  ;;  %v302_v55 = vld [vmem:[#allocation2 + $0x6e0] sm:$0xff] }
  0xf8   :  { %1434 = vmatpush.msra.mxu0 %v773_v6  ;;  %1376 = vmatpush.msrb.mxu1 %v373_v8  ;;  %v621_v22 = vld [vmem:[#allocation2 + $0x10d8] sm:$0xff]  ;;  %v430_v56 = vld [vmem:[#allocation2 + $0xae0] sm:$0xff] }
  0xf9   :  { %1395 = vmatpush.msra.mxu3 %v509_v10  ;;  %1415 = vmatpush.msra.mxu2 %v637_v11  ;;  %v749_v23 = vld [vmem:[#allocation2 + $0x14d8] sm:$0xff]  ;;  %v558_v57 = vld [vmem:[#allocation2 + $0xee0] sm:$0xff] }
  0xfa   :  { %1435 = vmatpush.msra.mxu0 %v765_v12  ;;  %1377 = vmatpush.msrb.mxu1 %v365_v14  ;;  %v349_v25 = vld [vmem:[#allocation2 + $0x858] sm:$0xff]  ;;  %v166_v18 = vld [vmem:[#allocation2 + $0x2a0] sm:$0xff]  ;;  %v2618_v12 = vld.sshfl [vmem:[#allocation1 + $0x30] sm:$0xff pattern:$0x73625140] }
  0xfb   :  { %1396 = vmatpush.msra.mxu3 %v501_v15  ;;  %1416 = vmatpush.msra.mxu2 %v629_v16  ;;  %v485_v26 = vld [vmem:[#allocation2 + $0xc98] sm:$0xff]  ;;  %v294_v19 = vld [vmem:[#allocation2 + $0x6a0] sm:$0xff] }
  0xfc   :  { %1436 = vmatpush.msra.mxu0 %v757_v17  ;;  %1378 = vmatpush.msrb.mxu1 %v357_v20  ;;  %v613_v27 = vld [vmem:[#allocation2 + $0x1098] sm:$0xff]  ;;  %v422_v58 = vld [vmem:[#allocation2 + $0xaa0] sm:$0xff] }
  0xfd   :  { %1397 = vmatpush.msra.mxu3 %v493_v21  ;;  %v741_v28 = vld [vmem:[#allocation2 + $0x1498] sm:$0xff]  ;;  %1417 = vmatpush.msra.mxu2 %v621_v22  ;;  %v550_v59 = vld [vmem:[#allocation2 + $0xea0] sm:$0xff] }
  0xfe   :  { %1437 = vmatpush.msra.mxu0 %v749_v23  ;;  %v341_v29 = vld [vmem:[#allocation2 + $0x818] sm:$0xff]  ;;  %1379 = vmatpush.msrb.mxu1 %v349_v25  ;;  %v158_v60 = vld [vmem:[#allocation2 + $0x260] sm:$0xff] }
  0xff   :  { %1398 = vmatpush.msra.mxu3 %v485_v26  ;;  %v477_v30 = vld [vmem:[#allocation2 + $0xc58] sm:$0xff]  ;;  %1418 = vmatpush.msra.mxu2 %v613_v27  ;;  %v286_v61 = vld [vmem:[#allocation2 + $0x660] sm:$0xff] }
 0x100   :  { %v605_v31 = vld [vmem:[#allocation2 + $0x1058] sm:$0xff]  ;;  %1438 = vmatpush.msra.mxu0 %v741_v28  ;;  %1380 = vmatpush.msrb.mxu1 %v341_v29  ;;  %v414_v62 = vld [vmem:[#allocation2 + $0xa60] sm:$0xff] }
 0x101   :  { %v733_v32 = vld [vmem:[#allocation2 + $0x1458] sm:$0xff]  ;;  %1399 = vmatpush.msra.mxu3 %v477_v30  ;;  %1419 = vmatpush.msra.mxu2 %v605_v31  ;;  %v542_v63 = vld [vmem:[#allocation2 + $0xe60] sm:$0xff] }
 0x102   :  { %v861_v33 = vld [vmem:[#allocation2 + $0x1858] sm:$0xff]  ;;  %1439 = vmatpush.msra.mxu0 %v733_v32  ;;  %1381 = vmatmul.f32.vlgmr.msrb.gmra.mxu1 %v2606_v43  ;;  %v150_v0 = vld [vmem:[#allocation2 + $0x220] sm:$0xff] }
 0x103   :  { %v2600_v34 = vld.sshfl [vmem:[#allocation1] sm:$0xff pattern:$0x73625140]  ;;  %1459 = vmatpush.msra.mxu1 %v861_v33  ;;  %1361 = vmatmul.f32.vlgmr.msrb.gmra.mxu0 %v2603_v7  ;;  %v278_v1 = vld [vmem:[#allocation2 + $0x620] sm:$0xff] }
 0x104   :  { %1341 = vmatmul.f32.vlgmr.msrb.gmra.mxu2 %v2600_v34  ;;  %v469_v35 = vld [vmem:[#allocation2 + $0xc18] sm:$0xff]  ;;  %v406_v3 = vld [vmem:[#allocation2 + $0xa20] sm:$0xff] }
 0x105   :  { %v597_v36 = vld [vmem:[#allocation2 + $0x1018] sm:$0xff]  ;;  %1400 = vmatpush.msra.mxu3 %v469_v35  ;;  %v534_v4 = vld [vmem:[#allocation2 + $0xe20] sm:$0xff] }
 0x106   :  { %v725_v37 = vld [vmem:[#allocation2 + $0x1418] sm:$0xff]  ;;  %1420 = vmatpush.msra.mxu2 %v597_v36  ;;  %1401 = vmatmul.f32.vlgmr.msra.gmra.mxu3 %v2609_v2  ;;  %v2615_v5 = vld.sshfl [vmem:[#allocation1 + $0x28] sm:$0xff pattern:$0x73625140] }
 0x107   :  { %v853_v38 = vld [vmem:[#allocation2 + $0x1818] sm:$0xff]  ;;  %1440 = vmatpush.msra.mxu0 %v725_v37  ;;  %1465 = vmatpush.msrb.mxu3 %v206_v39  ;;  %v142_v6 = vld [vmem:[#allocation2 + $0x1e0] sm:$0xff] }
 0x108   :  { %1460 = vmatpush.msra.mxu1 %v853_v38  ;;  %1505 = vmatpush.msrb.mxu2 %v462_v41  ;;  %v2612_v53 = vld.sshfl [vmem:[#allocation1 + $0x20] sm:$0xff pattern:$0x73625140]  ;;  %v270_v8 = vld [vmem:[#allocation2 + $0x5e0] sm:$0xff] }
 0x109   :  { %1525 = vmatpush.msrb.mxu0 %v590_v42  ;;  %1466 = vmatpush.msrb.mxu3 %v198_v44  ;;  %v398_v10 = vld [vmem:[#allocation2 + $0x9e0] sm:$0xff] }
 0x10a   :  { %1485 = vmatpush.msrb.mxu1 %v334_v40  ;;  %1506 = vmatpush.msrb.mxu2 %v454_v46  ;;  %v526_v11 = vld [vmem:[#allocation2 + $0xde0] sm:$0xff] }
 0x10b   :  { %1526 = vmatpush.msrb.mxu0 %v582_v9  ;;  %1467 = vmatpush.msrb.mxu3 %v190_v13  ;;  %v134_v14 = vld [vmem:[#allocation2 + $0x1a0] sm:$0xff] }
 0x10c   :  { %1486 = vmatpush.msrb.mxu1 %v326_v45  ;;  %1507 = vmatpush.msrb.mxu2 %v446_v48  ;;  %v262_v15 = vld [vmem:[#allocation2 + $0x5a0] sm:$0xff]  ;;  %v207_v48 = vld [vmem:[#allocation2 + $0x3e8] sm:$0xff] }
 0x10d   :  { %1527 = vmatpush.msrb.mxu0 %v574_v49  ;;  %1421 = vmatmul.f32.vlgmr.msra.gmra.mxu2 %v2612_v53  ;;  %v390_v16 = vld [vmem:[#allocation2 + $0x9a0] sm:$0xff] }
 0x10e   :  { %1487 = vmatpush.msrb.mxu1 %v318_v47  ;;  %1468 = vmatpush.msrb.mxu3 %v182_v24  ;;  %v518_v17 = vld [vmem:[#allocation2 + $0xda0] sm:$0xff] }
 0x10f   :  { %1508 = vmatpush.msrb.mxu2 %v438_v51  ;;  %1528 = vmatpush.msrb.mxu0 %v566_v52  ;;  %v126_v20 = vld [vmem:[#allocation2 + $0x160] sm:$0xff]  ;;  %v199_v51 = vld [vmem:[#allocation2 + $0x3a8] sm:$0xff] }
 0x110   :  { %1488 = vmatpush.msrb.mxu1 %v310_v50  ;;  %1469 = vmatpush.msrb.mxu3 %v174_v54  ;;  %v254_v21 = vld [vmem:[#allocation2 + $0x560] sm:$0xff]  ;;  %v335_v52 = vld [vmem:[#allocation2 + $0x7e8] sm:$0xff] }
 0x111   :  { %1509 = vmatpush.msrb.mxu2 %v430_v56  ;;  %1529 = vmatpush.msrb.mxu0 %v558_v57  ;;  %v382_v22 = vld [vmem:[#allocation2 + $0x960] sm:$0xff]  ;;  %v191_v56 = vld [vmem:[#allocation2 + $0x368] sm:$0xff] }
 0x112   :  { %1489 = vmatpush.msrb.mxu1 %v302_v55  ;;  %1470 = vmatpush.msrb.mxu3 %v166_v18  ;;  %v510_v23 = vld [vmem:[#allocation2 + $0xd60] sm:$0xff]  ;;  %v327_v57 = vld [vmem:[#allocation2 + $0x7a8] sm:$0xff] }
 0x113   :  { %1510 = vmatpush.msrb.mxu2 %v422_v58  ;;  %1530 = vmatpush.msrb.mxu0 %v550_v59  ;;  %v118_v25 = vld [vmem:[#allocation2 + $0x120] sm:$0xff]  ;;  %v183_v58 = vld [vmem:[#allocation2 + $0x328] sm:$0xff] }
 0x114   :  { %1490 = vmatpush.msrb.mxu1 %v294_v19  ;;  %1471 = vmatpush.msrb.mxu3 %v158_v60  ;;  %v246_v26 = vld [vmem:[#allocation2 + $0x520] sm:$0xff]  ;;  %v319_v59 = vld [vmem:[#allocation2 + $0x768] sm:$0xff] }
 0x115   :  { %1511 = vmatpush.msrb.mxu2 %v414_v62  ;;  %1531 = vmatpush.msrb.mxu0 %v542_v63  ;;  %v374_v27 = vld [vmem:[#allocation2 + $0x920] sm:$0xff]  ;;  %v175_v62 = vld [vmem:[#allocation2 + $0x2e8] sm:$0xff] }
 0x116   :  { %1491 = vmatpush.msrb.mxu1 %v286_v61  ;;  %1441 = vmatmul.f32.vlgmr.msra.gmra.mxu0 %v2615_v5  ;;  %v502_v28 = vld [vmem:[#allocation2 + $0xd20] sm:$0xff]  ;;  %v311_v63 = vld [vmem:[#allocation2 + $0x728] sm:$0xff] }
 0x117   :  { %1472 = vmatpush.msrb.mxu3 %v150_v0  ;;  %1512 = vmatpush.msrb.mxu2 %v406_v3  ;;  %v110_v29 = vld [vmem:[#allocation2 + $0xe0] sm:$0xff]  ;;  %v167_v3 = vld [vmem:[#allocation2 + $0x2a8] sm:$0xff] }
 0x118   :  { %1492 = vmatpush.msrb.mxu1 %v278_v1  ;;  %1532 = vmatpush.msrb.mxu0 %v534_v4  ;;  %v238_v30 = vld [vmem:[#allocation2 + $0x4e0] sm:$0xff]  ;;  %v303_v4 = vld [vmem:[#allocation2 + $0x6e8] sm:$0xff] }
 0x119   :  { %2348 = vmatmul.msk.f32.vlgmr.msra.gmra.mxu1 %vm902_vm0, %v2618_v12  ;;  %1473 = vmatpush.msrb.mxu3 %v142_v6  ;;  %v366_v31 = vld [vmem:[#allocation2 + $0x8e0] sm:$0xff] }
 0x11a   :  { %1493 = vmatpush.msrb.mxu1 %v270_v8  ;;  %1513 = vmatpush.msrb.mxu2 %v398_v10  ;;  %v494_v32 = vld [vmem:[#allocation2 + $0xce0] sm:$0xff]  ;;  %v159_v10 = vld [vmem:[#allocation2 + $0x268] sm:$0xff] }
 0x11b   :  { %1533 = vmatpush.msrb.mxu0 %v526_v11  ;;  %1474 = vmatpush.msrb.mxu3 %v134_v14  ;;  %v102_v33 = vld [vmem:[#allocation2 + $0xa0] sm:$0xff]  ;;  %v295_v11 = vld [vmem:[#allocation2 + $0x6a8] sm:$0xff] }
 0x11c   :  { %1494 = vmatpush.msrb.mxu1 %v262_v15  ;;  %1514 = vmatpush.msrb.mxu2 %v390_v16  ;;  %v230_v35 = vld [vmem:[#allocation2 + $0x4a0] sm:$0xff]  ;;  %v151_v16 = vld [vmem:[#allocation2 + $0x228] sm:$0xff] }
 0x11d   :  { %1534 = vmatpush.msrb.mxu0 %v518_v17  ;;  %1475 = vmatpush.msrb.mxu3 %v126_v20  ;;  %v358_v36 = vld [vmem:[#allocation2 + $0x8a0] sm:$0xff]  ;;  %v287_v17 = vld [vmem:[#allocation2 + $0x668] sm:$0xff] }
 0x11e   :  { %1495 = vmatpush.msrb.mxu1 %v254_v21  ;;  %1515 = vmatpush.msrb.mxu2 %v382_v22  ;;  %v486_v37 = vld [vmem:[#allocation2 + $0xca0] sm:$0xff]  ;;  %v143_v22 = vld [vmem:[#allocation2 + $0x1e8] sm:$0xff] }
 0x11f   :  { %1535 = vmatpush.msrb.mxu0 %v510_v23  ;;  %1476 = vmatpush.msrb.mxu3 %v118_v25  ;;  %v94_v38 = vld [vmem:[#allocation2 + $0x60] sm:$0xff]  ;;  %v279_v23 = vld [vmem:[#allocation2 + $0x628] sm:$0xff] }
 0x120   :  { %1496 = vmatpush.msrb.mxu1 %v246_v26  ;;  %1516 = vmatpush.msrb.mxu2 %v374_v27  ;;  %v222_v39 = vld [vmem:[#allocation2 + $0x460] sm:$0xff]  ;;  %v135_v27 = vld [vmem:[#allocation2 + $0x1a8] sm:$0xff] }
 0x121   :  { %1536 = vmatpush.msrb.mxu0 %v502_v28  ;;  %1477 = vmatpush.msrb.mxu3 %v110_v29  ;;  %v350_v40 = vld [vmem:[#allocation2 + $0x860] sm:$0xff]  ;;  %v271_v28 = vld [vmem:[#allocation2 + $0x5e8] sm:$0xff] }
 0x122   :  { %1497 = vmatpush.msrb.mxu1 %v238_v30  ;;  %1517 = vmatpush.msrb.mxu2 %v366_v31  ;;  %v478_v41 = vld [vmem:[#allocation2 + $0xc60] sm:$0xff]  ;;  %v127_v31 = vld [vmem:[#allocation2 + $0x168] sm:$0xff] }
 0x123   :  { %1537 = vmatpush.msrb.mxu0 %v494_v32  ;;  %1478 = vmatpush.msrb.mxu3 %v102_v33  ;;  %v86_v42 = vld [vmem:[#allocation2 + $0x20] sm:$0xff]  ;;  %v263_v32 = vld [vmem:[#allocation2 + $0x5a8] sm:$0xff] }
 0x124   :  { %1498 = vmatpush.msrb.mxu1 %v230_v35  ;;  %1518 = vmatpush.msrb.mxu2 %v358_v36  ;;  %v214_v44 = vld [vmem:[#allocation2 + $0x420] sm:$0xff]  ;;  %v119_v36 = vld [vmem:[#allocation2 + $0x128] sm:$0xff] }
 0x125   :  { %1538 = vmatpush.msrb.mxu0 %v486_v37  ;;  %1479 = vmatpush.msrb.mxu3 %v94_v38  ;;  %v342_v45 = vld [vmem:[#allocation2 + $0x820] sm:$0xff]  ;;  %v255_v37 = vld [vmem:[#allocation2 + $0x568] sm:$0xff] }
 0x126   :  { %1499 = vmatpush.msrb.mxu1 %v222_v39  ;;  %v470_v46 = vld [vmem:[#allocation2 + $0xc20] sm:$0xff]  ;;  %1519 = vmatpush.msrb.mxu2 %v350_v40  ;;  %v111_v40 = vld [vmem:[#allocation2 + $0xe8] sm:$0xff] }
 0x127   :  { %1539 = vmatpush.msrb.mxu0 %v478_v41  ;;  %v718_v9 = vld [vmem:[#allocation2 + $0x13e0] sm:$0xff]  ;;  %1480 = vmatpush.msrb.mxu3 %v86_v42  ;;  %v247_v41 = vld [vmem:[#allocation2 + $0x528] sm:$0xff] }
 0x128   :  { %v846_v47 = vld [vmem:[#allocation2 + $0x17e0] sm:$0xff]  ;;  %1500 = vmatpush.msrb.mxu1 %v214_v44  ;;  %1520 = vmatpush.msrb.mxu2 %v342_v45  ;;  %v103_v45 = vld [vmem:[#allocation2 + $0xa8] sm:$0xff] }
 0x129   :  { %v862_v13 = vld [vmem:[#allocation2 + $0x1860] sm:$0xff]  ;;  %1540 = vmatpush.msrb.mxu0 %v470_v46  ;;  %1545 = vmatpush.msra.mxu3 %v718_v9  ;;  %v239_v46 = vld [vmem:[#allocation2 + $0x4e8] sm:$0xff] }
 0x12a   :  { %v838_v49 = vld [vmem:[#allocation2 + $0x17a0] sm:$0xff]  ;;  %1565 = vmatpush.msra.mxu1 %v846_v47  ;;  %1599 = vmatpush.msra.mxu2 %v862_v13  ;;  %v95_v13 = vld [vmem:[#allocation2 + $0x68] sm:$0xff] }
 0x12b   :  { %v710_v24 = vld [vmem:[#allocation2 + $0x13a0] sm:$0xff]  ;;  %1605 = vmatpush.msra.mxu0 %v207_v48  ;;  %1481 = vmatmul.f32.vlgmr.msrb.gmra.mxu3 %v2600_v34  ;;  %v231_v48 = vld [vmem:[#allocation2 + $0x4a8] sm:$0xff] }
 0x12c   :  { %v854_v50 = vld [vmem:[#allocation2 + $0x1820] sm:$0xff]  ;;  %1566 = vmatpush.msra.mxu1 %v838_v49  ;;  %1546 = vmatpush.msra.mxu3 %v710_v24 }
 0x12d   :  { %v702_v54 = vld [vmem:[#allocation2 + $0x1360] sm:$0xff]  ;;  %1600 = vmatpush.msra.mxu2 %v854_v50  ;;  %1606 = vmatpush.msra.mxu0 %v199_v51  ;;  %v87_v50 = vld [vmem:[#allocation2 + $0x28] sm:$0xff] }
 0x12e   :  { %v830_v55 = vld [vmem:[#allocation2 + $0x1760] sm:$0xff]  ;;  %1521 = vmatmul.f32.vlgmr.msrb.gmra.mxu2 %v2606_v43  ;;  %1547 = vmatpush.msra.mxu3 %v702_v54  ;;  %v223_v51 = vld [vmem:[#allocation2 + $0x468] sm:$0xff] }
 0x12f   :  { %v694_v18 = vld [vmem:[#allocation2 + $0x1320] sm:$0xff]  ;;  %1625 = vmatpush.msrb.mxu2 %v335_v52  ;;  %1567 = vmatpush.msra.mxu1 %v830_v55  ;;  %v463_v52 = vld [vmem:[#allocation2 + $0xbe8] sm:$0xff] }
 0x130   :  { %v822_v19 = vld [vmem:[#allocation2 + $0x1720] sm:$0xff]  ;;  %1607 = vmatpush.msra.mxu0 %v191_v56  ;;  %1548 = vmatpush.msra.mxu3 %v694_v18  ;;  %v591_v54 = vld [vmem:[#allocation2 + $0xfe8] sm:$0xff] }
 0x131   :  { %v686_v60 = vld [vmem:[#allocation2 + $0x12e0] sm:$0xff]  ;;  %1626 = vmatpush.msrb.mxu2 %v327_v57  ;;  %1568 = vmatpush.msra.mxu1 %v822_v19  ;;  %v719_v55 = vld [vmem:[#allocation2 + $0x13e8] sm:$0xff] }
 0x132   :  { %v814_v61 = vld [vmem:[#allocation2 + $0x16e0] sm:$0xff]  ;;  %1608 = vmatpush.msra.mxu0 %v183_v58  ;;  %1549 = vmatpush.msra.mxu3 %v686_v60  ;;  %v215_v56 = vld [vmem:[#allocation2 + $0x428] sm:$0xff] }
 0x133   :  { %1627 = vmatpush.msrb.mxu2 %v319_v59  ;;  %v678_v0 = vld [vmem:[#allocation2 + $0x12a0] sm:$0xff]  ;;  %1569 = vmatpush.msra.mxu1 %v814_v61  ;;  %v455_v57 = vld [vmem:[#allocation2 + $0xba8] sm:$0xff] }
 0x134   :  { %v806_v1 = vld [vmem:[#allocation2 + $0x16a0] sm:$0xff]  ;;  %1609 = vmatpush.msra.mxu0 %v175_v62  ;;  %1501 = vmatmul.f32.vlgmr.msrb.gmra.mxu1 %v2603_v7  ;;  %v583_v18 = vld [vmem:[#allocation2 + $0xfa8] sm:$0xff] }
 0x135   :  { %1628 = vmatpush.msrb.mxu2 %v311_v63  ;;  %v670_v6 = vld [vmem:[#allocation2 + $0x1260] sm:$0xff]  ;;  %1550 = vmatpush.msra.mxu3 %v678_v0  ;;  %v711_v19 = vld [vmem:[#allocation2 + $0x13a8] sm:$0xff] }
 0x136   :  { %v798_v8 = vld [vmem:[#allocation2 + $0x1660] sm:$0xff]  ;;  %1570 = vmatpush.msra.mxu1 %v806_v1  ;;  %1610 = vmatpush.msra.mxu0 %v167_v3  ;;  %v847_v58 = vld [vmem:[#allocation2 + $0x17e8] sm:$0xff] }
 0x137   :  { %1629 = vmatpush.msrb.mxu2 %v303_v4  ;;  %v662_v14 = vld [vmem:[#allocation2 + $0x1220] sm:$0xff]  ;;  %1551 = vmatpush.msra.mxu3 %v670_v6  ;;  %v447_v59 = vld [vmem:[#allocation2 + $0xb68] sm:$0xff] }
 0x138   :  { %1571 = vmatpush.msra.mxu1 %v798_v8  ;;  %v790_v15 = vld [vmem:[#allocation2 + $0x1620] sm:$0xff]  ;;  %1611 = vmatpush.msra.mxu0 %v159_v10  ;;  %v575_v60 = vld [vmem:[#allocation2 + $0xf68] sm:$0xff] }
 0x139   :  { %1630 = vmatpush.msrb.mxu2 %v295_v11  ;;  %v654_v20 = vld [vmem:[#allocation2 + $0x11e0] sm:$0xff]  ;;  %1541 = vmatmul.f32.vlgmr.msrb.gmra.mxu0 %v2609_v2  ;;  %v703_v61 = vld [vmem:[#allocation2 + $0x1368] sm:$0xff] }
 0x13a   :  { %1552 = vmatpush.msra.mxu3 %v662_v14  ;;  %v782_v21 = vld [vmem:[#allocation2 + $0x15e0] sm:$0xff]  ;;  %1572 = vmatpush.msra.mxu1 %v790_v15  ;;  %v839_v62 = vld [vmem:[#allocation2 + $0x17a8] sm:$0xff] }
 0x13b   :  { %1612 = vmatpush.msra.mxu0 %v151_v16  ;;  %v646_v25 = vld [vmem:[#allocation2 + $0x11a0] sm:$0xff]  ;;  %1631 = vmatpush.msrb.mxu2 %v287_v17  ;;  %v439_v63 = vld [vmem:[#allocation2 + $0xb28] sm:$0xff] }
 0x13c   :  { %1553 = vmatpush.msra.mxu3 %v654_v20  ;;  %v774_v26 = vld [vmem:[#allocation2 + $0x15a0] sm:$0xff]  ;;  %1573 = vmatpush.msra.mxu1 %v782_v21  ;;  %v567_v0 = vld [vmem:[#allocation2 + $0xf28] sm:$0xff] }
 0x13d   :  { %1613 = vmatpush.msra.mxu0 %v143_v22  ;;  %v638_v29 = vld [vmem:[#allocation2 + $0x1160] sm:$0xff]  ;;  %1632 = vmatpush.msrb.mxu2 %v279_v23  ;;  %v695_v1 = vld [vmem:[#allocation2 + $0x1328] sm:$0xff] }
 0x13e   :  { %1554 = vmatpush.msra.mxu3 %v646_v25  ;;  %v766_v30 = vld [vmem:[#allocation2 + $0x1560] sm:$0xff]  ;;  %1574 = vmatpush.msra.mxu1 %v774_v26  ;;  %v831_v3 = vld [vmem:[#allocation2 + $0x1768] sm:$0xff] }
 0x13f   :  { %1614 = vmatpush.msra.mxu0 %v135_v27  ;;  %v630_v33 = vld [vmem:[#allocation2 + $0x1120] sm:$0xff]  ;;  %1633 = vmatpush.msrb.mxu2 %v271_v28  ;;  %v431_v4 = vld [vmem:[#allocation2 + $0xae8] sm:$0xff] }
 0x140   :  { %1555 = vmatpush.msra.mxu3 %v638_v29  ;;  %v758_v35 = vld [vmem:[#allocation2 + $0x1520] sm:$0xff]  ;;  %1575 = vmatpush.msra.mxu1 %v766_v30  ;;  %v559_v6 = vld [vmem:[#allocation2 + $0xee8] sm:$0xff] }
 0x141   :  { %1615 = vmatpush.msra.mxu0 %v127_v31  ;;  %v622_v38 = vld [vmem:[#allocation2 + $0x10e0] sm:$0xff]  ;;  %1634 = vmatpush.msrb.mxu2 %v263_v32  ;;  %v687_v8 = vld [vmem:[#allocation2 + $0x12e8] sm:$0xff] }
 0x142   :  { %1556 = vmatpush.msra.mxu3 %v630_v33  ;;  %v750_v39 = vld [vmem:[#allocation2 + $0x14e0] sm:$0xff]  ;;  %1576 = vmatpush.msra.mxu1 %v758_v35  ;;  %v823_v10 = vld [vmem:[#allocation2 + $0x1728] sm:$0xff] }
 0x143   :  { %1616 = vmatpush.msra.mxu0 %v119_v36  ;;  %v614_v42 = vld [vmem:[#allocation2 + $0x10a0] sm:$0xff]  ;;  %1635 = vmatpush.msrb.mxu2 %v255_v37  ;;  %v423_v11 = vld [vmem:[#allocation2 + $0xaa8] sm:$0xff] }
 0x144   :  { %1557 = vmatpush.msra.mxu3 %v622_v38  ;;  %v742_v44 = vld [vmem:[#allocation2 + $0x14a0] sm:$0xff]  ;;  %1577 = vmatpush.msra.mxu1 %v750_v39  ;;  %v551_v14 = vld [vmem:[#allocation2 + $0xea8] sm:$0xff] }
 0x145   :  { %1617 = vmatpush.msra.mxu0 %v111_v40  ;;  %v606_v9 = vld [vmem:[#allocation2 + $0x1060] sm:$0xff]  ;;  %1636 = vmatpush.msrb.mxu2 %v247_v41  ;;  %v679_v15 = vld [vmem:[#allocation2 + $0x12a8] sm:$0xff] }
 0x146   :  { %1558 = vmatpush.msra.mxu3 %v614_v42  ;;  %v734_v47 = vld [vmem:[#allocation2 + $0x1460] sm:$0xff]  ;;  %1578 = vmatpush.msra.mxu1 %v742_v44  ;;  %v815_v16 = vld [vmem:[#allocation2 + $0x16e8] sm:$0xff] }
 0x147   :  { %1618 = vmatpush.msra.mxu0 %v103_v45  ;;  %v598_v49 = vld [vmem:[#allocation2 + $0x1020] sm:$0xff]  ;;  %1637 = vmatpush.msrb.mxu2 %v239_v46  ;;  %v415_v17 = vld [vmem:[#allocation2 + $0xa68] sm:$0xff] }
 0x148   :  { %1559 = vmatpush.msra.mxu3 %v606_v9  ;;  %v726_v24 = vld [vmem:[#allocation2 + $0x1420] sm:$0xff]  ;;  %1579 = vmatpush.msra.mxu1 %v734_v47  ;;  %v543_v20 = vld [vmem:[#allocation2 + $0xe68] sm:$0xff] }
 0x149   :  { %1619 = vmatpush.msra.mxu0 %v95_v13  ;;  %1638 = vmatpush.msrb.mxu2 %v231_v48  ;;  %v671_v21 = vld [vmem:[#allocation2 + $0x1268] sm:$0xff] }
 0x14a   :  { %1560 = vmatpush.msra.mxu3 %v598_v49  ;;  %1580 = vmatpush.msra.mxu1 %v726_v24  ;;  %v807_v22 = vld [vmem:[#allocation2 + $0x16a8] sm:$0xff] }
 0x14b   :  { %1620 = vmatpush.msra.mxu0 %v87_v50  ;;  %1561 = vmatmul.f32.vlgmr.msra.gmra.mxu3 %v2612_v53  ;;  %v407_v23 = vld [vmem:[#allocation2 + $0xa28] sm:$0xff] }
 0x14c   :  { %1639 = vmatpush.msrb.mxu2 %v223_v51  ;;  %1645 = vmatpush.msrb.mxu3 %v463_v52  ;;  %v535_v25 = vld [vmem:[#allocation2 + $0xe28] sm:$0xff] }
 0x14d   :  { %1665 = vmatpush.msrb.mxu1 %v591_v54  ;;  %1685 = vmatpush.msrb.mxu0 %v719_v55  ;;  %v663_v26 = vld [vmem:[#allocation2 + $0x1228] sm:$0xff] }
 0x14e   :  { %1640 = vmatpush.msrb.mxu2 %v215_v56  ;;  %1646 = vmatpush.msrb.mxu3 %v455_v57  ;;  %v799_v27 = vld [vmem:[#allocation2 + $0x1668] sm:$0xff] }
 0x14f   :  { %1666 = vmatpush.msrb.mxu1 %v583_v18  ;;  %1686 = vmatpush.msrb.mxu0 %v711_v19  ;;  %v399_v28 = vld [vmem:[#allocation2 + $0x9e8] sm:$0xff] }
 0x150   :  { %2349 = vmatmul.msk.f32.vlgmr.msra.gmra.mxu2 %vm902_vm0, %v2618_v12  ;;  %1647 = vmatpush.msrb.mxu3 %v447_v59  ;;  %v527_v29 = vld [vmem:[#allocation2 + $0xde8] sm:$0xff]  ;;  %v208_v59 = vld [vmem:[#allocation2 + $0x3f0] sm:$0xff] }
 0x151   :  { %1705 = vmatpush.msra.mxu2 %v847_v58  ;;  %1667 = vmatpush.msrb.mxu1 %v575_v60  ;;  %v655_v30 = vld [vmem:[#allocation2 + $0x11e8] sm:$0xff]  ;;  %v464_v60 = vld [vmem:[#allocation2 + $0xbf0] sm:$0xff] }
 0x152   :  { %1687 = vmatpush.msrb.mxu0 %v703_v61  ;;  %1648 = vmatpush.msrb.mxu3 %v439_v63  ;;  %v791_v31 = vld [vmem:[#allocation2 + $0x1628] sm:$0xff]  ;;  %v200_v63 = vld [vmem:[#allocation2 + $0x3b0] sm:$0xff] }
 0x153   :  { %1706 = vmatpush.msra.mxu2 %v839_v62  ;;  %1668 = vmatpush.msrb.mxu1 %v567_v0  ;;  %v391_v32 = vld [vmem:[#allocation2 + $0x9a8] sm:$0xff]  ;;  %v456_v0 = vld [vmem:[#allocation2 + $0xbb0] sm:$0xff] }
 0x154   :  { %1688 = vmatpush.msrb.mxu0 %v695_v1  ;;  %1581 = vmatmul.f32.vlgmr.msra.gmra.mxu1 %v2615_v5  ;;  %v519_v33 = vld [vmem:[#allocation2 + $0xda8] sm:$0xff]  ;;  %v336_v1 = vld [vmem:[#allocation2 + $0x7f0] sm:$0xff] }
 0x155   :  { %1707 = vmatpush.msra.mxu2 %v831_v3  ;;  %1649 = vmatpush.msrb.mxu3 %v431_v4  ;;  %v647_v35 = vld [vmem:[#allocation2 + $0x11a8] sm:$0xff]  ;;  %v592_v3 = vld [vmem:[#allocation2 + $0xff0] sm:$0xff] }
 0x156   :  { %1669 = vmatpush.msrb.mxu1 %v559_v6  ;;  %1689 = vmatpush.msrb.mxu0 %v687_v8  ;;  %v783_v36 = vld [vmem:[#allocation2 + $0x15e8] sm:$0xff]  ;;  %v192_v4 = vld [vmem:[#allocation2 + $0x370] sm:$0xff] }
 0x157   :  { %1708 = vmatpush.msra.mxu2 %v823_v10  ;;  %1650 = vmatpush.msrb.mxu3 %v423_v11  ;;  %v383_v37 = vld [vmem:[#allocation2 + $0x968] sm:$0xff]  ;;  %v448_v6 = vld [vmem:[#allocation2 + $0xb70] sm:$0xff] }
 0x158   :  { %1670 = vmatpush.msrb.mxu1 %v551_v14  ;;  %1690 = vmatpush.msrb.mxu0 %v679_v15  ;;  %v511_v38 = vld [vmem:[#allocation2 + $0xd68] sm:$0xff]  ;;  %v328_v8 = vld [vmem:[#allocation2 + $0x7b0] sm:$0xff] }
 0x159   :  { %1709 = vmatpush.msra.mxu2 %v815_v16  ;;  %1651 = vmatpush.msrb.mxu3 %v415_v17  ;;  %v639_v39 = vld [vmem:[#allocation2 + $0x1168] sm:$0xff]  ;;  %v184_v10 = vld [vmem:[#allocation2 + $0x330] sm:$0xff] }
 0x15a   :  { %1671 = vmatpush.msrb.mxu1 %v543_v20  ;;  %1691 = vmatpush.msrb.mxu0 %v671_v21  ;;  %v775_v40 = vld [vmem:[#allocation2 + $0x15a8] sm:$0xff]  ;;  %v440_v11 = vld [vmem:[#allocation2 + $0xb30] sm:$0xff] }
 0x15b   :  { %1710 = vmatpush.msra.mxu2 %v807_v22  ;;  %1652 = vmatpush.msrb.mxu3 %v407_v23  ;;  %v375_v41 = vld [vmem:[#allocation2 + $0x928] sm:$0xff]  ;;  %v320_v14 = vld [vmem:[#allocation2 + $0x770] sm:$0xff] }
 0x15c   :  { %1672 = vmatpush.msrb.mxu1 %v535_v25  ;;  %1692 = vmatpush.msrb.mxu0 %v663_v26  ;;  %v503_v42 = vld [vmem:[#allocation2 + $0xd28] sm:$0xff]  ;;  %v176_v15 = vld [vmem:[#allocation2 + $0x2f0] sm:$0xff] }
 0x15d   :  { %1711 = vmatpush.msra.mxu2 %v799_v27  ;;  %1653 = vmatpush.msrb.mxu3 %v399_v28  ;;  %v631_v44 = vld [vmem:[#allocation2 + $0x1128] sm:$0xff]  ;;  %v432_v16 = vld [vmem:[#allocation2 + $0xaf0] sm:$0xff] }
 0x15e   :  { %1673 = vmatpush.msrb.mxu1 %v527_v29  ;;  %1693 = vmatpush.msrb.mxu0 %v655_v30  ;;  %v767_v45 = vld [vmem:[#allocation2 + $0x1568] sm:$0xff]  ;;  %v312_v17 = vld [vmem:[#allocation2 + $0x730] sm:$0xff] }
 0x15f   :  { %1712 = vmatpush.msra.mxu2 %v791_v31  ;;  %1654 = vmatpush.msrb.mxu3 %v391_v32  ;;  %v367_v46 = vld [vmem:[#allocation2 + $0x8e8] sm:$0xff]  ;;  %v168_v20 = vld [vmem:[#allocation2 + $0x2b0] sm:$0xff] }
 0x160   :  { %1674 = vmatpush.msrb.mxu1 %v519_v33  ;;  %1694 = vmatpush.msrb.mxu0 %v647_v35  ;;  %v495_v9 = vld [vmem:[#allocation2 + $0xce8] sm:$0xff]  ;;  %v424_v21 = vld [vmem:[#allocation2 + $0xab0] sm:$0xff] }
 0x161   :  { %1713 = vmatpush.msra.mxu2 %v783_v36  ;;  %1655 = vmatpush.msrb.mxu3 %v383_v37  ;;  %v623_v47 = vld [vmem:[#allocation2 + $0x10e8] sm:$0xff]  ;;  %v560_v22 = vld [vmem:[#allocation2 + $0xef0] sm:$0xff] }
 0x162   :  { %1675 = vmatpush.msrb.mxu1 %v511_v38  ;;  %1695 = vmatpush.msrb.mxu0 %v639_v39  ;;  %v759_v13 = vld [vmem:[#allocation2 + $0x1528] sm:$0xff]  ;;  %v304_v23 = vld [vmem:[#allocation2 + $0x6f0] sm:$0xff] }
 0x163   :  { %1714 = vmatpush.msra.mxu2 %v775_v40  ;;  %1656 = vmatpush.msrb.mxu3 %v375_v41  ;;  %v359_v48 = vld [vmem:[#allocation2 + $0x8a8] sm:$0xff]  ;;  %v160_v25 = vld [vmem:[#allocation2 + $0x270] sm:$0xff] }
 0x164   :  { %1676 = vmatpush.msrb.mxu1 %v503_v42  ;;  %1696 = vmatpush.msrb.mxu0 %v631_v44  ;;  %v487_v49 = vld [vmem:[#allocation2 + $0xca8] sm:$0xff]  ;;  %v416_v26 = vld [vmem:[#allocation2 + $0xa70] sm:$0xff] }
 0x165   :  { %1715 = vmatpush.msra.mxu2 %v767_v45  ;;  %1657 = vmatpush.msrb.mxu3 %v367_v46  ;;  %v615_v24 = vld [vmem:[#allocation2 + $0x10a8] sm:$0xff]  ;;  %v552_v27 = vld [vmem:[#allocation2 + $0xeb0] sm:$0xff] }
 0x166   :  { %1677 = vmatpush.msrb.mxu1 %v495_v9  ;;  %v751_v50 = vld [vmem:[#allocation2 + $0x14e8] sm:$0xff]  ;;  %1697 = vmatpush.msrb.mxu0 %v623_v47  ;;  %v296_v28 = vld [vmem:[#allocation2 + $0x6b0] sm:$0xff] }
 0x167   :  { %1716 = vmatpush.msra.mxu2 %v759_v13  ;;  %v351_v51 = vld [vmem:[#allocation2 + $0x868] sm:$0xff]  ;;  %1658 = vmatpush.msrb.mxu3 %v359_v48  ;;  %v152_v29 = vld [vmem:[#allocation2 + $0x230] sm:$0xff] }
 0x168   :  { %v479_v52 = vld [vmem:[#allocation2 + $0xc68] sm:$0xff]  ;;  %1678 = vmatpush.msrb.mxu1 %v487_v49  ;;  %1698 = vmatpush.msrb.mxu0 %v615_v24  ;;  %v288_v30 = vld [vmem:[#allocation2 + $0x670] sm:$0xff] }
 0x169   :  { %v607_v54 = vld [vmem:[#allocation2 + $0x1068] sm:$0xff]  ;;  %1717 = vmatpush.msra.mxu2 %v751_v50  ;;  %1659 = vmatpush.msrb.mxu3 %v351_v51  ;;  %v544_v31 = vld [vmem:[#allocation2 + $0xe70] sm:$0xff] }
 0x16a   :  { %v743_v55 = vld [vmem:[#allocation2 + $0x14a8] sm:$0xff]  ;;  %1679 = vmatpush.msrb.mxu1 %v479_v52  ;;  %1699 = vmatpush.msrb.mxu0 %v607_v54  ;;  %v144_v32 = vld [vmem:[#allocation2 + $0x1f0] sm:$0xff] }
 0x16b   :  { %v343_v56 = vld [vmem:[#allocation2 + $0x828] sm:$0xff]  ;;  %1718 = vmatpush.msra.mxu2 %v743_v55  ;;  %1621 = vmatmul.f32.vlgmr.msra.gmra.mxu0 %v2600_v34  ;;  %v584_v34 = vld [vmem:[#allocation2 + $0xfb0] sm:$0xff] }
 0x16c   :  { %v471_v57 = vld [vmem:[#allocation2 + $0xc28] sm:$0xff]  ;;  %1660 = vmatpush.msrb.mxu3 %v343_v56  ;;  %1641 = vmatmul.f32.vlgmr.msrb.gmra.mxu2 %v2603_v7  ;;  %v576_v7 = vld [vmem:[#allocation2 + $0xf70] sm:$0xff] }
 0x16d   :  { %v599_v18 = vld [vmem:[#allocation2 + $0x1028] sm:$0xff]  ;;  %1680 = vmatpush.msrb.mxu1 %v471_v57  ;;  %1661 = vmatmul.f32.vlgmr.msrb.gmra.mxu3 %v2606_v43  ;;  %v568_v43 = vld [vmem:[#allocation2 + $0xf30] sm:$0xff] }
 0x16e   :  { %v735_v19 = vld [vmem:[#allocation2 + $0x1468] sm:$0xff]  ;;  %1700 = vmatpush.msrb.mxu0 %v599_v18  ;;  %1681 = vmatmul.f32.vlgmr.msrb.gmra.mxu1 %v2609_v2  ;;  %v400_v2 = vld [vmem:[#allocation2 + $0x9f0] sm:$0xff] }
 0x16f   :  { %v863_v58 = vld [vmem:[#allocation2 + $0x1868] sm:$0xff]  ;;  %1719 = vmatpush.msra.mxu2 %v735_v19  ;;  %1745 = vmatpush.msra.mxu1 %v208_v59  ;;  %v280_v33 = vld [vmem:[#allocation2 + $0x630] sm:$0xff] }
 0x170   :  { %v855_v61 = vld [vmem:[#allocation2 + $0x1828] sm:$0xff]  ;;  %1739 = vmatpush.msra.mxu3 %v863_v58  ;;  %1785 = vmatpush.msra.mxu0 %v464_v60  ;;  %v536_v35 = vld [vmem:[#allocation2 + $0xe30] sm:$0xff] }
 0x171   :  { %v727_v62 = vld [vmem:[#allocation2 + $0x1428] sm:$0xff]  ;;  %1746 = vmatpush.msra.mxu1 %v200_v63  ;;  %v392_v36 = vld [vmem:[#allocation2 + $0x9b0] sm:$0xff] }
 0x172   :  { %1740 = vmatpush.msra.mxu3 %v855_v61  ;;  %1720 = vmatpush.msra.mxu2 %v727_v62  ;;  %v272_v37 = vld [vmem:[#allocation2 + $0x5f0] sm:$0xff] }
 0x173   :  { %1786 = vmatpush.msra.mxu0 %v456_v0  ;;  %1747 = vmatpush.msra.mxu1 %v192_v4  ;;  %v528_v38 = vld [vmem:[#allocation2 + $0xdf0] sm:$0xff]  ;;  %v337_v4 = vld [vmem:[#allocation2 + $0x7f8] sm:$0xff] }
 0x174   :  { %1765 = vmatpush.msrb.mxu3 %v336_v1  ;;  %1805 = vmatpush.msrb.mxu2 %v592_v3  ;;  %v128_v39 = vld [vmem:[#allocation2 + $0x170] sm:$0xff]  ;;  %v209_v3 = vld [vmem:[#allocation2 + $0x3f8] sm:$0xff] }
 0x175   :  { %1787 = vmatpush.msra.mxu0 %v448_v6  ;;  %1748 = vmatpush.msra.mxu1 %v184_v10  ;;  %v384_v40 = vld [vmem:[#allocation2 + $0x970] sm:$0xff]  ;;  %v201_v10 = vld [vmem:[#allocation2 + $0x3b8] sm:$0xff] }
 0x176   :  { %1766 = vmatpush.msrb.mxu3 %v328_v8  ;;  %1806 = vmatpush.msrb.mxu2 %v584_v34  ;;  %v520_v41 = vld [vmem:[#allocation2 + $0xdb0] sm:$0xff]  ;;  %v2638_v8 = vld.sshfl [vmem:[#allocation1 + $0x10] sm:$0xff pattern:$0x73625140] }
 0x177   :  { %1788 = vmatpush.msra.mxu0 %v440_v11  ;;  %1749 = vmatpush.msra.mxu1 %v176_v15  ;;  %v120_v42 = vld [vmem:[#allocation2 + $0x130] sm:$0xff]  ;;  %v329_v11 = vld [vmem:[#allocation2 + $0x7b8] sm:$0xff] }
 0x178   :  { %1767 = vmatpush.msrb.mxu3 %v320_v14  ;;  %1807 = vmatpush.msrb.mxu2 %v576_v7  ;;  %v376_v44 = vld [vmem:[#allocation2 + $0x930] sm:$0xff]  ;;  %v2641_v7 = vld.sshfl [vmem:[#allocation1 + $0x8] sm:$0xff pattern:$0x73625140] }
 0x179   :  { %1789 = vmatpush.msra.mxu0 %v432_v16  ;;  %1721 = vmatmul.f32.vlgmr.msra.gmra.mxu2 %v2615_v5  ;;  %v408_v5 = vld [vmem:[#allocation2 + $0xa30] sm:$0xff]  ;;  %v193_v16 = vld [vmem:[#allocation2 + $0x378] sm:$0xff] }
 0x17a   :  { %1768 = vmatpush.msrb.mxu3 %v312_v17  ;;  %1808 = vmatpush.msrb.mxu2 %v568_v43  ;;  %v256_v45 = vld [vmem:[#allocation2 + $0x570] sm:$0xff]  ;;  %v321_v17 = vld [vmem:[#allocation2 + $0x778] sm:$0xff] }
 0x17b   :  { %1750 = vmatpush.msra.mxu1 %v168_v20  ;;  %1790 = vmatpush.msra.mxu0 %v424_v21  ;;  %v512_v46 = vld [vmem:[#allocation2 + $0xd70] sm:$0xff]  ;;  %v185_v21 = vld [vmem:[#allocation2 + $0x338] sm:$0xff] }
 0x17c   :  { %2350 = vmatmul.msk.f32.vlgmr.msra.gmra.mxu3 %vm902_vm0, %v2618_v12  ;;  %1809 = vmatpush.msrb.mxu2 %v560_v22  ;;  %v136_v12 = vld [vmem:[#allocation2 + $0x1b0] sm:$0xff]  ;;  %v313_v22 = vld [vmem:[#allocation2 + $0x738] sm:$0xff] }
 0x17d   :  { %1769 = vmatpush.msrb.mxu3 %v304_v23  ;;  %1751 = vmatpush.msra.mxu1 %v160_v25  ;;  %v112_v9 = vld [vmem:[#allocation2 + $0xf0] sm:$0xff]  ;;  %v2644_v25 = vld.sshfl [vmem:[#allocation1] sm:$0xff pattern:$0x73625140] }
 0x17e   :  { %1791 = vmatpush.msra.mxu0 %v416_v26  ;;  %1810 = vmatpush.msrb.mxu2 %v552_v27  ;;  %v368_v47 = vld [vmem:[#allocation2 + $0x8f0] sm:$0xff] }
 0x17f   :  { %1701 = vmatmul.f32.vlgmr.msrb.gmra.mxu0 %v2612_v53  ;;  %1770 = vmatpush.msrb.mxu3 %v296_v28  ;;  %v264_v53 = vld [vmem:[#allocation2 + $0x5b0] sm:$0xff]  ;;  %v177_v28 = vld [vmem:[#allocation2 + $0x2f8] sm:$0xff] }
 0x180   :  { %1752 = vmatpush.msra.mxu1 %v152_v29  ;;  %1792 = vmatpush.msra.mxu0 %v408_v5  ;;  %v248_v13 = vld [vmem:[#allocation2 + $0x530] sm:$0xff]  ;;  %v305_v29 = vld [vmem:[#allocation2 + $0x6f8] sm:$0xff] }
 0x181   :  { %1771 = vmatpush.msrb.mxu3 %v288_v30  ;;  %1811 = vmatpush.msrb.mxu2 %v544_v31  ;;  %v504_v48 = vld [vmem:[#allocation2 + $0xd30] sm:$0xff]  ;;  %v169_v31 = vld [vmem:[#allocation2 + $0x2b8] sm:$0xff] }
 0x182   :  { %1753 = vmatpush.msra.mxu1 %v144_v32  ;;  %1793 = vmatpush.msra.mxu0 %v400_v2  ;;  %v104_v49 = vld [vmem:[#allocation2 + $0xb0] sm:$0xff]  ;;  %v297_v32 = vld [vmem:[#allocation2 + $0x6b8] sm:$0xff] }
 0x183   :  { %1772 = vmatpush.msrb.mxu3 %v280_v33  ;;  %1812 = vmatpush.msrb.mxu2 %v536_v35  ;;  %v360_v24 = vld [vmem:[#allocation2 + $0x8b0] sm:$0xff]  ;;  %v161_v35 = vld [vmem:[#allocation2 + $0x278] sm:$0xff] }
 0x184   :  { %1754 = vmatpush.msra.mxu1 %v136_v12  ;;  %1794 = vmatpush.msra.mxu0 %v392_v36  ;;  %v240_v50 = vld [vmem:[#allocation2 + $0x4f0] sm:$0xff]  ;;  %v289_v12 = vld [vmem:[#allocation2 + $0x678] sm:$0xff] }
 0x185   :  { %1773 = vmatpush.msrb.mxu3 %v272_v37  ;;  %1813 = vmatpush.msrb.mxu2 %v528_v38  ;;  %v496_v51 = vld [vmem:[#allocation2 + $0xcf0] sm:$0xff]  ;;  %v153_v38 = vld [vmem:[#allocation2 + $0x238] sm:$0xff] }
 0x186   :  { %1755 = vmatpush.msra.mxu1 %v128_v39  ;;  %1795 = vmatpush.msra.mxu0 %v384_v40  ;;  %v96_v52 = vld [vmem:[#allocation2 + $0x70] sm:$0xff]  ;;  %v281_v39 = vld [vmem:[#allocation2 + $0x638] sm:$0xff] }
 0x187   :  { %1774 = vmatpush.msrb.mxu3 %v264_v53  ;;  %1814 = vmatpush.msrb.mxu2 %v520_v41  ;;  %v352_v54 = vld [vmem:[#allocation2 + $0x870] sm:$0xff]  ;;  %v145_v41 = vld [vmem:[#allocation2 + $0x1f8] sm:$0xff] }
 0x188   :  { %1756 = vmatpush.msra.mxu1 %v120_v42  ;;  %1796 = vmatpush.msra.mxu0 %v376_v44  ;;  %v232_v55 = vld [vmem:[#allocation2 + $0x4b0] sm:$0xff]  ;;  %v273_v42 = vld [vmem:[#allocation2 + $0x5f8] sm:$0xff] }
 0x189   :  { %1775 = vmatpush.msrb.mxu3 %v256_v45  ;;  %1815 = vmatpush.msrb.mxu2 %v512_v46  ;;  %v488_v56 = vld [vmem:[#allocation2 + $0xcb0] sm:$0xff]  ;;  %v137_v46 = vld [vmem:[#allocation2 + $0x1b8] sm:$0xff] }
 0x18a   :  { %1757 = vmatpush.msra.mxu1 %v112_v9  ;;  %1797 = vmatpush.msra.mxu0 %v368_v47  ;;  %v88_v57 = vld [vmem:[#allocation2 + $0x30] sm:$0xff]  ;;  %v265_v9 = vld [vmem:[#allocation2 + $0x5b8] sm:$0xff] }
 0x18b   :  { %1776 = vmatpush.msrb.mxu3 %v248_v13  ;;  %1816 = vmatpush.msrb.mxu2 %v504_v48  ;;  %v344_v18 = vld [vmem:[#allocation2 + $0x830] sm:$0xff]  ;;  %v129_v48 = vld [vmem:[#allocation2 + $0x178] sm:$0xff] }
 0x18c   :  { %1758 = vmatpush.msra.mxu1 %v104_v49  ;;  %1798 = vmatpush.msra.mxu0 %v360_v24  ;;  %v224_v19 = vld [vmem:[#allocation2 + $0x470] sm:$0xff]  ;;  %v257_v49 = vld [vmem:[#allocation2 + $0x578] sm:$0xff] }
 0x18d   :  { %1777 = vmatpush.msrb.mxu3 %v240_v50  ;;  %1817 = vmatpush.msrb.mxu2 %v496_v51  ;;  %v480_v58 = vld [vmem:[#allocation2 + $0xc70] sm:$0xff]  ;;  %v121_v51 = vld [vmem:[#allocation2 + $0x138] sm:$0xff] }
 0x18e   :  { %1759 = vmatpush.msra.mxu1 %v96_v52  ;;  %1799 = vmatpush.msra.mxu0 %v352_v54  ;;  %v720_v59 = vld [vmem:[#allocation2 + $0x13f0] sm:$0xff]  ;;  %v249_v52 = vld [vmem:[#allocation2 + $0x538] sm:$0xff] }
 0x18f   :  { %1778 = vmatpush.msrb.mxu3 %v232_v55  ;;  %1818 = vmatpush.msrb.mxu2 %v488_v56  ;;  %v864_v60 = vld [vmem:[#allocation2 + $0x1870] sm:$0xff]  ;;  %v113_v56 = vld [vmem:[#allocation2 + $0xf8] sm:$0xff] }
 0x190   :  { %1760 = vmatpush.msra.mxu1 %v88_v57  ;;  %1800 = vmatpush.msra.mxu0 %v344_v18  ;;  %v216_v61 = vld [vmem:[#allocation2 + $0x430] sm:$0xff]  ;;  %v241_v57 = vld [vmem:[#allocation2 + $0x4f8] sm:$0xff] }
 0x191   :  { %v472_v62 = vld [vmem:[#allocation2 + $0xc30] sm:$0xff]  ;;  %1779 = vmatpush.msrb.mxu3 %v224_v19  ;;  %1819 = vmatpush.msrb.mxu2 %v480_v58  ;;  %v105_v58 = vld [vmem:[#allocation2 + $0xb8] sm:$0xff] }
 0x192   :  { %v712_v63 = vld [vmem:[#allocation2 + $0x13b0] sm:$0xff]  ;;  %1825 = vmatpush.msrb.mxu1 %v720_v59  ;;  %1879 = vmatpush.msrb.mxu0 %v864_v60  ;;  %v233_v59 = vld [vmem:[#allocation2 + $0x4b8] sm:$0xff] }
 0x193   :  { %v856_v0 = vld [vmem:[#allocation2 + $0x1830] sm:$0xff]  ;;  %1780 = vmatpush.msrb.mxu3 %v216_v61  ;;  %1820 = vmatpush.msrb.mxu2 %v472_v62  ;;  %v97_v62 = vld [vmem:[#allocation2 + $0x78] sm:$0xff] }
 0x194   :  { %v848_v1 = vld [vmem:[#allocation2 + $0x17f0] sm:$0xff]  ;;  %1826 = vmatpush.msrb.mxu1 %v712_v63  ;;  %1880 = vmatpush.msrb.mxu0 %v856_v0  ;;  %v225_v63 = vld [vmem:[#allocation2 + $0x478] sm:$0xff]  ;;  %v2650_v0 = vpop.f32.mrf.mxu2 }
 0x195   :  { %v704_v6 = vld [vmem:[#allocation2 + $0x1370] sm:$0xff]  ;;  %1801 = vmatmul.f32.vlgmr.msra.gmra.mxu0 %v2638_v8  ;;  %1845 = vmatpush.msra.mxu3 %v848_v1  ;;  %v465_v1 = vld [vmem:[#allocation2 + $0xbf8] sm:$0xff] }
 0x196   :  { %v840_v34 = vld [vmem:[#allocation2 + $0x17b0] sm:$0xff]  ;;  %1885 = vmatpush.msra.mxu2 %v209_v3  ;;  %1905 = vmatpush.msra.mxu0 %v337_v4  ;;  %v2652_v4 = vld.sshfl [vmem:[#allocation1 + $0x20] sm:$0xff pattern:$0x73625140] }
 0x197   :  { %v696_v14 = vld [vmem:[#allocation2 + $0x1330] sm:$0xff]  ;;  %1827 = vmatpush.msrb.mxu1 %v704_v6  ;;  %1781 = vmatmul.f32.vlgmr.msrb.gmra.mxu3 %v2641_v7  ;;  %v89_v6 = vld [vmem:[#allocation2 + $0x38] sm:$0xff] }
 0x198   :  { %v832_v15 = vld [vmem:[#allocation2 + $0x1770] sm:$0xff]  ;;  %1846 = vmatpush.msra.mxu3 %v840_v34  ;;  %1886 = vmatpush.msra.mxu2 %v201_v10  ;;  %v217_v34 = vld [vmem:[#allocation2 + $0x438] sm:$0xff]  ;;  %v2655_v10 = vpop.f32.mrf.mxu3 }
 0x199   :  { %v688_v43 = vld [vmem:[#allocation2 + $0x12f0] sm:$0xff]  ;;  %1906 = vmatpush.msra.mxu0 %v329_v11  ;;  %1828 = vmatpush.msrb.mxu1 %v696_v14  ;;  %v457_v11 = vld [vmem:[#allocation2 + $0xbb8] sm:$0xff] }
 0x19a   :  { %1847 = vmatpush.msra.mxu3 %v832_v15  ;;  %1887 = vmatpush.msra.mxu2 %v193_v16  ;;  %v824_v20 = vld [vmem:[#allocation2 + $0x1730] sm:$0xff]  ;;  %v593_v14 = vld [vmem:[#allocation2 + $0xff8] sm:$0xff] }
 0x19b   :  { %1907 = vmatpush.msra.mxu0 %v321_v17  ;;  %1829 = vmatpush.msrb.mxu1 %v688_v43  ;;  %v680_v23 = vld [vmem:[#allocation2 + $0x12b0] sm:$0xff]  ;;  %v721_v15 = vld [vmem:[#allocation2 + $0x13f8] sm:$0xff]  ;;  %v2657_v17 = vld.sshfl [vmem:[#allocation1 + $0x28] sm:$0xff pattern:$0x73625140] }
 0x19c   :  { %1761 = vmatmul.f32.vlgmr.msra.gmra.mxu1 %v2644_v25  ;;  %v2647_v26 = vld.sshfl [vmem:[#allocation1 + $0x18] sm:$0xff pattern:$0x73625140]  ;;  %1848 = vmatpush.msra.mxu3 %v824_v20  ;;  %v849_v16 = vld [vmem:[#allocation2 + $0x17f8] sm:$0xff] }
 0x19d   :  { %1821 = vmatmul.f32.vlgmr.msrb.gmra.mxu2 %v2647_v26  ;;  %v816_v27 = vld [vmem:[#allocation2 + $0x16f0] sm:$0xff]  ;;  %1908 = vmatpush.msra.mxu0 %v313_v22  ;;  %v449_v43 = vld [vmem:[#allocation2 + $0xb78] sm:$0xff]  ;;  %v2662_v22 = vld.sshfl [vmem:[#allocation1 + $0x30] sm:$0xff pattern:$0x73625140] }
 0x19e   :  { %1888 = vmatpush.msra.mxu2 %v185_v21  ;;  %v672_v5 = vld [vmem:[#allocation2 + $0x1270] sm:$0xff]  ;;  %1830 = vmatpush.msrb.mxu1 %v680_v23  ;;  %v585_v20 = vld [vmem:[#allocation2 + $0xfb8] sm:$0xff]  ;;  %v2660_v21 = vpop.f32.mrf.mxu0 }
 0x19f   :  { %v808_v30 = vld [vmem:[#allocation2 + $0x16b0] sm:$0xff]  ;;  %1849 = vmatpush.msra.mxu3 %v816_v27  ;;  %1909 = vmatpush.msra.mxu0 %v305_v29  ;;  %v713_v23 = vld [vmem:[#allocation2 + $0x13b8] sm:$0xff] }
 0x1a0   :  { %1889 = vmatpush.msra.mxu2 %v177_v28  ;;  %v664_v2 = vld [vmem:[#allocation2 + $0x1230] sm:$0xff]  ;;  %1831 = vmatpush.msrb.mxu1 %v672_v5  ;;  %v841_v27 = vld [vmem:[#allocation2 + $0x17b8] sm:$0xff]  ;;  %v2666_v5 = vpop.f32.mrf.mxu2 }
 0x1a1   :  { %v800_v33 = vld [vmem:[#allocation2 + $0x1670] sm:$0xff]  ;;  %1850 = vmatpush.msra.mxu3 %v808_v30  ;;  %1910 = vmatpush.msra.mxu0 %v297_v32  ;;  %v441_v28 = vld [vmem:[#allocation2 + $0xb38] sm:$0xff] }
 0x1a2   :  { %1890 = vmatpush.msra.mxu2 %v169_v31  ;;  %v656_v36 = vld [vmem:[#allocation2 + $0x11f0] sm:$0xff]  ;;  %1832 = vmatpush.msrb.mxu1 %v664_v2  ;;  %v577_v29 = vld [vmem:[#allocation2 + $0xf78] sm:$0xff] }
 0x1a3   :  { %v792_v37 = vld [vmem:[#allocation2 + $0x1630] sm:$0xff]  ;;  %1851 = vmatpush.msra.mxu3 %v800_v33  ;;  %1911 = vmatpush.msra.mxu0 %v289_v12  ;;  %v705_v30 = vld [vmem:[#allocation2 + $0x1378] sm:$0xff]  ;;  %v2668_v33 = vpop.f32.mrf.mxu1 }
 0x1a4   :  { %1891 = vmatpush.msra.mxu2 %v161_v35  ;;  %v648_v40 = vld [vmem:[#allocation2 + $0x11b0] sm:$0xff]  ;;  %1833 = vmatpush.msrb.mxu1 %v656_v36  ;;  %v833_v31 = vld [vmem:[#allocation2 + $0x1778] sm:$0xff]  ;;  %v2670_v35 = vpop.f32.mrf.mxu3 }
 0x1a5   :  { %v784_v53 = vld [vmem:[#allocation2 + $0x15f0] sm:$0xff]  ;;  %1852 = vmatpush.msra.mxu3 %v792_v37  ;;  %1912 = vmatpush.msra.mxu0 %v281_v39  ;;  %v433_v32 = vld [vmem:[#allocation2 + $0xaf8] sm:$0xff] }
 0x1a6   :  { %1892 = vmatpush.msra.mxu2 %v153_v38  ;;  %v640_v44 = vld [vmem:[#allocation2 + $0x1170] sm:$0xff]  ;;  %1834 = vmatpush.msrb.mxu1 %v648_v40  ;;  %v569_v2 = vld [vmem:[#allocation2 + $0xf38] sm:$0xff] }
 0x1a7   :  { %v776_v45 = vld [vmem:[#allocation2 + $0x15b0] sm:$0xff]  ;;  %1853 = vmatpush.msra.mxu3 %v784_v53  ;;  %1913 = vmatpush.msra.mxu0 %v273_v42  ;;  %v697_v12 = vld [vmem:[#allocation2 + $0x1338] sm:$0xff]  ;;  %v2672_v42 = vpop.f32.mrf.mxu0 }
 0x1a8   :  { %1893 = vmatpush.msra.mxu2 %v145_v41  ;;  %v632_v47 = vld [vmem:[#allocation2 + $0x1130] sm:$0xff]  ;;  %1835 = vmatpush.msrb.mxu1 %v640_v44  ;;  %v825_v36 = vld [vmem:[#allocation2 + $0x1738] sm:$0xff] }
 0x1a9   :  { %v768_v13 = vld [vmem:[#allocation2 + $0x1570] sm:$0xff]  ;;  %1854 = vmatpush.msra.mxu3 %v776_v45  ;;  %1914 = vmatpush.msra.mxu0 %v265_v9  ;;  %v425_v37 = vld [vmem:[#allocation2 + $0xab8] sm:$0xff] }
 0x1aa   :  { %1894 = vmatpush.msra.mxu2 %v137_v46  ;;  %v624_v24 = vld [vmem:[#allocation2 + $0x10f0] sm:$0xff]  ;;  %1836 = vmatpush.msrb.mxu1 %v632_v47  ;;  %v561_v38 = vld [vmem:[#allocation2 + $0xef8] sm:$0xff]  ;;  %v2674_v47 = vpop.f32.mrf.mxu2 }
 0x1ab   :  { %v760_v50 = vld [vmem:[#allocation2 + $0x1530] sm:$0xff]  ;;  %1855 = vmatpush.msra.mxu3 %v768_v13  ;;  %1915 = vmatpush.msra.mxu0 %v257_v49  ;;  %v689_v39 = vld [vmem:[#allocation2 + $0x12f8] sm:$0xff] }
 0x1ac   :  { %1895 = vmatpush.msra.mxu2 %v129_v48  ;;  %v616_v54 = vld [vmem:[#allocation2 + $0x10b0] sm:$0xff]  ;;  %1837 = vmatpush.msrb.mxu1 %v624_v24  ;;  %v817_v40 = vld [vmem:[#allocation2 + $0x16f8] sm:$0xff] }
 0x1ad   :  { %v752_v55 = vld [vmem:[#allocation2 + $0x14f0] sm:$0xff]  ;;  %1856 = vmatpush.msra.mxu3 %v760_v50  ;;  %1916 = vmatpush.msra.mxu0 %v249_v52  ;;  %v417_v53 = vld [vmem:[#allocation2 + $0xa78] sm:$0xff]  ;;  %v2676_v50 = vpop.f32.mrf.mxu1 }
 0x1ae   :  { %1896 = vmatpush.msra.mxu2 %v121_v51  ;;  %v608_v18 = vld [vmem:[#allocation2 + $0x1070] sm:$0xff]  ;;  %1838 = vmatpush.msrb.mxu1 %v616_v54  ;;  %v553_v41 = vld [vmem:[#allocation2 + $0xeb8] sm:$0xff] }
 0x1af   :  { %v744_v19 = vld [vmem:[#allocation2 + $0x14b0] sm:$0xff]  ;;  %1857 = vmatpush.msra.mxu3 %v752_v55  ;;  %1917 = vmatpush.msra.mxu0 %v241_v57  ;;  %v681_v44 = vld [vmem:[#allocation2 + $0x12b8] sm:$0xff] }
 0x1b0   :  { %1897 = vmatpush.msra.mxu2 %v113_v56  ;;  %v600_v60 = vld [vmem:[#allocation2 + $0x1030] sm:$0xff]  ;;  %1839 = vmatpush.msrb.mxu1 %v608_v18  ;;  %v809_v45 = vld [vmem:[#allocation2 + $0x16b8] sm:$0xff]  ;;  %v2678_v56 = vpop.f32.mrf.mxu3 }
 0x1b1   :  { %v736_v61 = vld [vmem:[#allocation2 + $0x1470] sm:$0xff]  ;;  %1858 = vmatpush.msra.mxu3 %v744_v19  ;;  %1918 = vmatpush.msra.mxu0 %v233_v59  ;;  %v409_v46 = vld [vmem:[#allocation2 + $0xa38] sm:$0xff]  ;;  %v2680_v59 = vpop.f32.mrf.mxu0 }
 0x1b2   :  { %1898 = vmatpush.msra.mxu2 %v105_v58  ;;  %1840 = vmatpush.msrb.mxu1 %v600_v60  ;;  %v728_v3 = vld [vmem:[#allocation2 + $0x1430] sm:$0xff]  ;;  %v545_v9 = vld [vmem:[#allocation2 + $0xe78] sm:$0xff] }
 0x1b3   :  { %1841 = vmatmul.f32.vlgmr.msrb.gmra.mxu1 %v2652_v4  ;;  %1859 = vmatpush.msra.mxu3 %v736_v61  ;;  %v673_v13 = vld [vmem:[#allocation2 + $0x1278] sm:$0xff] }
 0x1b4   :  { %1899 = vmatpush.msra.mxu2 %v97_v62  ;;  %1919 = vmatpush.msra.mxu0 %v225_v63  ;;  %v801_v48 = vld [vmem:[#allocation2 + $0x1678] sm:$0xff] }
 0x1b5   :  { %1925 = vmatpush.msra.mxu1 %v465_v1  ;;  %1860 = vmatpush.msra.mxu3 %v728_v3  ;;  %v401_v49 = vld [vmem:[#allocation2 + $0x9f8] sm:$0xff] }
 0x1b6   :  { %1900 = vmatpush.msra.mxu2 %v89_v6  ;;  %1920 = vmatpush.msra.mxu0 %v217_v34  ;;  %v537_v24 = vld [vmem:[#allocation2 + $0xe38] sm:$0xff] }
 0x1b7   :  { %1926 = vmatpush.msra.mxu1 %v457_v11  ;;  %1861 = vmatmul.f32.vlgmr.msra.gmra.mxu3 %v2657_v17  ;;  %v665_v51 = vld [vmem:[#allocation2 + $0x1238] sm:$0xff]  ;;  %v2682_v11 = vpop.f32.mrf.mxu1 }
 0x1b8   :  { %2351 = vmatmul.msk.f32.vlgmr.msrb.gmra.mxu0 %vm902_vm0, %v2662_v22  ;;  %1945 = vmatpush.msrb.mxu3 %v593_v14  ;;  %v793_v52 = vld [vmem:[#allocation2 + $0x1638] sm:$0xff]  ;;  %v2684_v14 = vpop.f32.mrf.mxu2 }
 0x1b9   :  { %1965 = vmatpush.msrb.mxu2 %v721_v15  ;;  %1985 = vmatpush.msrb.mxu0 %v849_v16  ;;  %v393_v54 = vld [vmem:[#allocation2 + $0x9b8] sm:$0xff] }
 0x1ba   :  { %1927 = vmatpush.msra.mxu1 %v449_v43  ;;  %1946 = vmatpush.msrb.mxu3 %v585_v20  ;;  %v529_v55 = vld [vmem:[#allocation2 + $0xdf8] sm:$0xff] }
 0x1bb   :  { %1966 = vmatpush.msrb.mxu2 %v713_v23  ;;  %1986 = vmatpush.msrb.mxu0 %v841_v27  ;;  %v657_v57 = vld [vmem:[#allocation2 + $0x11f8] sm:$0xff] }
 0x1bc   :  { %1928 = vmatpush.msra.mxu1 %v441_v28  ;;  %1947 = vmatpush.msrb.mxu3 %v577_v29  ;;  %v785_v18 = vld [vmem:[#allocation2 + $0x15f8] sm:$0xff]  ;;  %v2686_v29 = vpop.f32.mrf.mxu3 }
 0x1bd   :  { %1967 = vmatpush.msrb.mxu2 %v705_v30  ;;  %1987 = vmatpush.msrb.mxu0 %v833_v31  ;;  %v385_v19 = vld [vmem:[#allocation2 + $0x978] sm:$0xff]  ;;  %v2688_v30 = vpop.f32.mrf.mxu0 }
 0x1be   :  { %1929 = vmatpush.msra.mxu1 %v433_v32  ;;  %1948 = vmatpush.msrb.mxu3 %v569_v2  ;;  %v521_v58 = vld [vmem:[#allocation2 + $0xdb8] sm:$0xff] }
 0x1bf   :  { %1968 = vmatpush.msrb.mxu2 %v697_v12  ;;  %1988 = vmatpush.msrb.mxu0 %v825_v36  ;;  %v649_v60 = vld [vmem:[#allocation2 + $0x11b8] sm:$0xff] }
 0x1c0   :  { %1930 = vmatpush.msra.mxu1 %v425_v37  ;;  %1949 = vmatpush.msrb.mxu3 %v561_v38  ;;  %v777_v61 = vld [vmem:[#allocation2 + $0x15b8] sm:$0xff] }
 0x1c1   :  { %1969 = vmatpush.msrb.mxu2 %v689_v39  ;;  %1989 = vmatpush.msrb.mxu0 %v817_v40  ;;  %v377_v62 = vld [vmem:[#allocation2 + $0x938] sm:$0xff]  ;;  %v2691_v40 = vpop.f32.mrf.mxu1 }
 0x1c2   :  { %1931 = vmatpush.msra.mxu1 %v417_v53  ;;  %1950 = vmatpush.msrb.mxu3 %v553_v41  ;;  %v513_v63 = vld [vmem:[#allocation2 + $0xd78] sm:$0xff]  ;;  %v2693_v53 = vpop.f32.mrf.mxu2 }
 0x1c3   :  { %1970 = vmatpush.msrb.mxu2 %v681_v44  ;;  %1990 = vmatpush.msrb.mxu0 %v809_v45  ;;  %v641_v1 = vld [vmem:[#allocation2 + $0x1178] sm:$0xff] }
 0x1c4   :  { %1932 = vmatpush.msra.mxu1 %v409_v46  ;;  %1951 = vmatpush.msrb.mxu3 %v545_v9  ;;  %v769_v3 = vld [vmem:[#allocation2 + $0x1578] sm:$0xff]  ;;  %v2695_v9 = vpop.f32.mrf.mxu3 }
 0x1c5   :  { %1971 = vmatpush.msrb.mxu2 %v673_v13  ;;  %1991 = vmatpush.msrb.mxu0 %v801_v48  ;;  %v369_v6 = vld [vmem:[#allocation2 + $0x8f8] sm:$0xff]  ;;  %v2697_v13 = vpop.f32.mrf.mxu0  ;;  %v2048_v48 = vld [vmem:[#allocation7 + $0x78] sm:$0xff] }
 0x1c6   :  { %1933 = vmatpush.msra.mxu1 %v401_v49  ;;  %1952 = vmatpush.msrb.mxu3 %v537_v24  ;;  %v505_v34 = vld [vmem:[#allocation2 + $0xd38] sm:$0xff]  ;;  %v2080_v49 = vld [vmem:[#allocation7 + $0x178] sm:$0xff] }
 0x1c7   :  { %1972 = vmatpush.msrb.mxu2 %v665_v51  ;;  %1992 = vmatpush.msrb.mxu0 %v793_v52  ;;  %v633_v15 = vld [vmem:[#allocation2 + $0x1138] sm:$0xff]  ;;  %v2699_v24 = vld [vmem:[#allocation5] sm:$0xff] }
 0x1c8   :  { %1934 = vmatpush.msra.mxu1 %v393_v54  ;;  %1953 = vmatpush.msrb.mxu3 %v529_v55  ;;  %v761_v16 = vld [vmem:[#allocation2 + $0x1538] sm:$0xff]  ;;  %v2096_v51 = vld [vmem:[#allocation7 + $0x1f8] sm:$0xff]  ;;  %v869_v52 = vperm.slane %v2699_v24, 1 }
 0x1c9   :  { %1973 = vmatpush.msrb.mxu2 %v657_v57  ;;  %1993 = vmatpush.msrb.mxu0 %v785_v18  ;;  %v361_v43 = vld [vmem:[#allocation2 + $0x8b8] sm:$0xff]  ;;  %v871_v57 = vperm.slane %v2699_v24, 3 }
 0x1ca   :  { %1935 = vmatpush.msra.mxu1 %v385_v19  ;;  %1954 = vmatpush.msrb.mxu3 %v521_v58  ;;  %v497_v20 = vld [vmem:[#allocation2 + $0xcf8] sm:$0xff]  ;;  %v868_v58 = vperm.slane %v2699_v24, 0 }
 0x1cb   :  { %1974 = vmatpush.msrb.mxu2 %v649_v60  ;;  %1994 = vmatpush.msrb.mxu0 %v777_v61  ;;  %v625_v23 = vld [vmem:[#allocation2 + $0x10f8] sm:$0xff]  ;;  %v2707_v60 = vpop.f32.mrf.mxu1  ;;  %v2062_v61 = vld [vmem:[#allocation7 + $0xe8] sm:$0xff] }
 0x1cc   :  { %1936 = vmatpush.msra.mxu1 %v377_v62  ;;  %1955 = vmatpush.msrb.mxu3 %v513_v63  ;;  %v753_v27 = vld [vmem:[#allocation2 + $0x14f8] sm:$0xff]  ;;  %v2094_v62 = vld [vmem:[#allocation7 + $0x1e8] sm:$0xff]  ;;  %v1063_v63 = vadd.f32 %v2670_v35, %v869_v52  ;;  %v2060_v35 = vld [vmem:[#allocation7 + $0xd8] sm:$0xff] }
 0x1cd   :  { %1975 = vmatpush.msrb.mxu2 %v641_v1  ;;  %1995 = vmatpush.msrb.mxu0 %v769_v3  ;;  %v353_v28 = vld [vmem:[#allocation2 + $0x878] sm:$0xff]  ;;  %v2045_v1 = vld [vmem:[#allocation7 + $0x60] sm:$0xff] }
 0x1ce   :  { %1937 = vmatpush.msra.mxu1 %v369_v6  ;;  %1956 = vmatpush.msrb.mxu3 %v505_v34  ;;  %v489_v31 = vld [vmem:[#allocation2 + $0xcb8] sm:$0xff]  ;;  %v2061_v3 = vld [vmem:[#allocation7 + $0xe0] sm:$0xff]  ;;  %v870_v6 = vperm.slane %v2699_v24, 2 }
 0x1cf   :  { %1976 = vmatpush.msrb.mxu2 %v633_v15  ;;  %1996 = vmatpush.msrb.mxu0 %v761_v16  ;;  %v617_v32 = vld [vmem:[#allocation2 + $0x10b8] sm:$0xff]  ;;  %v2077_v15 = vld [vmem:[#allocation7 + $0x160] sm:$0xff] }
 0x1d0   :  { %1938 = vmatpush.msra.mxu1 %v361_v43  ;;  %1957 = vmatpush.msrb.mxu3 %v497_v20  ;;  %v745_v2 = vld [vmem:[#allocation2 + $0x14b8] sm:$0xff]  ;;  %v2093_v16 = vld [vmem:[#allocation7 + $0x1e0] sm:$0xff]  ;;  %v2713_v43 = vpop.f32.mrf.mxu3  ;;  %v1362_v20 = vpop.f32.mrf.mxu0 }
 0x1d1   :  { %1977 = vmatpush.msrb.mxu2 %v625_v23  ;;  %1997 = vmatpush.msrb.mxu0 %v753_v27  ;;  %v345_v12 = vld [vmem:[#allocation2 + $0x838] sm:$0xff]  ;;  %v2044_v23 = vld [vmem:[#allocation7 + $0x58] sm:$0xff]  ;;  %v2089_v52 = vld [vmem:[#allocation7 + $0x1c0] sm:$0xff] }
 0x1d2   :  { %1901 = vmatmul.f32.vlgmr.msra.gmra.mxu2 %v2644_v25  ;;  %1939 = vmatpush.msra.mxu1 %v353_v28  ;;  %v481_v36 = vld [vmem:[#allocation2 + $0xc78] sm:$0xff]  ;;  %v2064_v25 = vld [vmem:[#allocation7 + $0xf8] sm:$0xff] }
 0x1d3   :  { %v609_v37 = vld [vmem:[#allocation2 + $0x1078] sm:$0xff]  ;;  %1958 = vmatpush.msrb.mxu3 %v489_v31  ;;  %1978 = vmatpush.msrb.mxu2 %v617_v32  ;;  %v2076_v27 = vld [vmem:[#allocation7 + $0x158] sm:$0xff]  ;;  %v1083_v31 = vadd.f32 %v2674_v47, %v1063_v63  ;;  %v2042_v47 = vld [vmem:[#allocation7 + $0x48] sm:$0xff] }
 0x1d4   :  { %v737_v38 = vld [vmem:[#allocation2 + $0x1478] sm:$0xff]  ;;  %1998 = vmatpush.msrb.mxu0 %v745_v2  ;;  %1940 = vmatpush.msra.mxu1 %v345_v12  ;;  %v2092_v28 = vld [vmem:[#allocation7 + $0x1d8] sm:$0xff]  ;;  %v1203_v2 = vadd.f32 %v2691_v40, %v870_v6  ;;  %v2074_v40 = vld [vmem:[#allocation7 + $0x148] sm:$0xff] }
 0x1d5   :  { %v865_v39 = vld [vmem:[#allocation2 + $0x1878] sm:$0xff]  ;;  %1959 = vmatpush.msrb.mxu3 %v481_v36  ;;  %1979 = vmatpush.msrb.mxu2 %v609_v37 }
 0x1d6   :  { %v473_v41 = vld [vmem:[#allocation2 + $0xc38] sm:$0xff]  ;;  %1999 = vmatpush.msrb.mxu0 %v737_v38  ;;  %2019 = vmatpush.msrb.mxu1 %v865_v39  ;;  %v1382_v38 = vpop.f32.mrf.mxu1 }
 0x1d7   :  { %v601_v44 = vld [vmem:[#allocation2 + $0x1038] sm:$0xff]  ;;  %1960 = vmatpush.msrb.mxu3 %v473_v41  ;;  %1921 = vmatmul.f32.vlgmr.msra.gmra.mxu0 %v2641_v7  ;;  %v1342_v7 = vpop.f32.mrf.mxu2  ;;  %v2058_v41 = vld [vmem:[#allocation7 + $0xc8] sm:$0xff] }
 0x1d8   :  { %v729_v45 = vld [vmem:[#allocation2 + $0x1438] sm:$0xff]  ;;  %1980 = vmatpush.msrb.mxu2 %v601_v44  ;;  %1941 = vmatmul.f32.vlgmr.msra.gmra.mxu1 %v2638_v8  ;;  %v2046_v8 = vld [vmem:[#allocation7 + $0x68] sm:$0xff]  ;;  %v1343_v34 = vadd.f32 %v1342_v7, %v871_v57  ;;  %v1103_v44 = vadd.f32 %v2680_v59, %v1083_v31  ;;  %v2073_v59 = vld [vmem:[#allocation7 + $0x140] sm:$0xff] }
 0x1d9   :  { %v857_v46 = vld [vmem:[#allocation2 + $0x1838] sm:$0xff]  ;;  %2000 = vmatpush.msrb.mxu0 %v729_v45  ;;  %1961 = vmatmul.f32.vlgmr.msrb.gmra.mxu3 %v2647_v26  ;;  %v2078_v26 = vld [vmem:[#allocation7 + $0x168] sm:$0xff]  ;;  %v2072_v57 = vld [vmem:[#allocation7 + $0x138] sm:$0xff] }
 0x1da   :  { %2020 = vmatpush.msrb.mxu1 %v857_v46  ;;  %v2047_v54 = vld [vmem:[#allocation7 + $0x70] sm:$0xff]  ;;  %2165 = vmatpush.msra.mxu3 %v2048_v48  ;;  %v1363_v12 = vadd.f32 %v1362_v20, %v1343_v34  ;;  %v2090_v45 = vld [vmem:[#allocation7 + $0x1c8] sm:$0xff]  ;;  %v1223_v46 = vadd.f32 %v2695_v9, %v1203_v2  ;;  %v2057_v48 = vld [vmem:[#allocation7 + $0xc0] sm:$0xff]  ;;  %v1123_v9 = vadd.f32 %v2682_v11, %v1103_v44 }
 0x1db   :  { %v2063_v55 = vld [vmem:[#allocation7 + $0xf0] sm:$0xff]  ;;  %2205 = vmatpush.msra.mxu2 %v2080_v49  ;;  %2225 = vmatpush.msra.mxu0 %v2096_v51  ;;  %v1402_v49 = vpop.f32.mrf.mxu3  ;;  %v2038_v11 = vld [vmem:[#allocation7 + $0x28] sm:$0xff]  ;;  %v2037_v34 = vld [vmem:[#allocation7 + $0x20] sm:$0xff] }
 0x1dc   :  { %2185 = vmatpush.msra.mxu1 %v2064_v25  ;;  %v2079_v18 = vld [vmem:[#allocation7 + $0x170] sm:$0xff]  ;;  %1981 = vmatmul.f32.vlgmr.msrb.gmra.mxu2 %v2652_v4  ;;  %v923_v4 = vadd.f32 %v2660_v21, %v868_v58  ;;  %v1383_v25 = vadd.f32 %v1382_v38, %v1363_v12  ;;  %v2069_v20 = vld [vmem:[#allocation7 + $0x120] sm:$0xff]  ;;  %v2084_v31 = vld [vmem:[#allocation7 + $0x198] sm:$0xff] }
 0x1dd   :  { %v2095_v19 = vld [vmem:[#allocation7 + $0x1f0] sm:$0xff]  ;;  %2166 = vmatpush.msra.mxu3 %v2047_v54  ;;  %2206 = vmatpush.msra.mxu2 %v2079_v18  ;;  %v2040_v54 = vld [vmem:[#allocation7 + $0x38] sm:$0xff]  ;;  %v1243_v18 = vadd.f32 %v2688_v30, %v1223_v46  ;;  %v1143_v30 = vadd.f32 %v2678_v56, %v1123_v9  ;;  %v2050_v38 = vld [vmem:[#allocation7 + $0x88] sm:$0xff]  ;;  %v872_v9 = vperm.slane %v2699_v24, 4 }
 0x1de   :  { %2186 = vmatpush.msra.mxu1 %v2063_v55  ;;  %2226 = vmatpush.msra.mxu0 %v2095_v19  ;;  %v2043_v32 = vld [vmem:[#allocation7 + $0x50] sm:$0xff]  ;;  %v943_v37 = vadd.f32 %v2668_v33, %v923_v4  ;;  %v2041_v33 = vld [vmem:[#allocation7 + $0x40] sm:$0xff]  ;;  %v2056_v55 = vld [vmem:[#allocation7 + $0xb8] sm:$0xff]  ;;  %v1403_v19 = vadd.f32 %v1402_v49, %v1383_v25 }
 0x1df   :  { %2167 = vmatpush.msra.mxu3 %v2046_v8  ;;  %2207 = vmatpush.msra.mxu2 %v2078_v26  ;;  %v2059_v21 = vld [vmem:[#allocation7 + $0xd0] sm:$0xff]  ;;  %v1422_v51 = vpop.f32.mrf.mxu2  ;;  %v1442_v8 = vpop.f32.mrf.mxu0  ;;  %v1263_v6 = vadd.f32 %v2693_v53, %v1243_v18  ;;  %v2049_v46 = vld [vmem:[#allocation7 + $0x80] sm:$0xff] }
 0x1e0   :  { %2187 = vmatpush.msra.mxu1 %v2062_v61  ;;  %2227 = vmatpush.msra.mxu0 %v2094_v62  ;;  %v2075_v36 = vld [vmem:[#allocation7 + $0x150] sm:$0xff]  ;;  %v2054_v62 = vld [vmem:[#allocation7 + $0xa8] sm:$0xff] }
 0x1e1   :  { %2168 = vmatpush.msra.mxu3 %v2045_v1  ;;  %2208 = vmatpush.msra.mxu2 %v2077_v15  ;;  %v2091_v39 = vld [vmem:[#allocation7 + $0x1d0] sm:$0xff]  ;;  %v2070_v1 = vld [vmem:[#allocation7 + $0x128] sm:$0xff]  ;;  %v2053_v15 = vld [vmem:[#allocation7 + $0xa0] sm:$0xff]  ;;  %v1283_v56 = vadd.f32 %v2707_v60, %v1263_v6 }
 0x1e2   :  { %2188 = vmatpush.msra.mxu1 %v2061_v3  ;;  %2228 = vmatpush.msra.mxu0 %v2093_v16  ;;  %v2055_v58 = vld [vmem:[#allocation7 + $0xb0] sm:$0xff]  ;;  %v2086_v3 = vld [vmem:[#allocation7 + $0x1a8] sm:$0xff]  ;;  %v1462_v16 = vpop.f32.mrf.mxu1 }
 0x1e3   :  { %2169 = vmatpush.msra.mxu3 %v2044_v23  ;;  %2209 = vmatpush.msra.mxu2 %v2076_v27  ;;  %v2071_v61 = vld [vmem:[#allocation7 + $0x130] sm:$0xff]  ;;  %v2036_v23 = vld [vmem:[#allocation7 + $0x18] sm:$0xff]  ;;  %v1163_v27 = vadd.f32 %v2684_v14, %v1143_v30  ;;  %v1482_v60 = vpop.f32.mrf.mxu3  ;;  %v2034_v14 = vld [vmem:[#allocation7 + $0x8] sm:$0xff] }
 0x1e4   :  { %2189 = vmatpush.msra.mxu1 %v2060_v35  ;;  %2229 = vmatpush.msra.mxu0 %v2092_v28  ;;  %v2087_v26 = vld [vmem:[#allocation7 + $0x1b0] sm:$0xff]  ;;  %v2052_v35 = vld [vmem:[#allocation7 + $0x98] sm:$0xff] }
 0x1e5   :  { %2001 = vmatmul.f32.vlgmr.msrb.gmra.mxu0 %v2657_v17  ;;  %2170 = vmatpush.msra.mxu3 %v2043_v32  ;;  %v963_v17 = vadd.f32 %v2650_v0, %v943_v37  ;;  %v2039_v0 = vld [vmem:[#allocation7 + $0x30] sm:$0xff]  ;;  %v2068_v28 = vld [vmem:[#allocation7 + $0x118] sm:$0xff]  ;;  %v1303_v32 = vadd.f32 %v2713_v43, %v1283_v56  ;;  %v1183_v43 = vadd.f32 %v2686_v29, %v1163_v27  ;;  %v2106_v56 = vld [vmem:[#allocation7 + $0x248] sm:$0xff] }
 0x1e6   :  { %2190 = vmatpush.msra.mxu1 %v2059_v21  ;;  %2210 = vmatpush.msra.mxu2 %v2075_v36  ;;  %v2035_v12 = vld [vmem:[#allocation7 + $0x10] sm:$0xff] }
 0x1e7   :  { %2230 = vmatpush.msra.mxu0 %v2091_v39  ;;  %2352 = vmatmul.msk.f32.vlgmr.msrb.gmra.mxu1 %vm902_vm0, %v2662_v22  ;;  %v2088_v22 = vld [vmem:[#allocation7 + $0x1b8] sm:$0xff]  ;;  %v983_v7 = vadd.f32 %v2655_v10, %v963_v17  ;;  %v1423_v10 = vadd.f32 %v1422_v51, %v1403_v19  ;;  %v2730_v4 = vpop.f32.mrf.mxu2  ;;  %v2051_v21 = vld [vmem:[#allocation7 + $0x90] sm:$0xff]  ;;  %v2736_v36 = vpop.f32.mrf.mxu0  ;;  %v1323_v44 = vadd.f32 %v2697_v13, %v1303_v32  ;;  %v2026_v17 = vmax.f32 %v1183_v43, 0.0  ;;  %v2110_v19 = vld [vmem:[#allocation7 + $0x268] sm:$0xff] }
 0x1e8   :  { %2171 = vmatpush.msra.mxu3 %v2042_v47  ;;  %2191 = vmatpush.msra.mxu1 %v2058_v41  ;;  %v2067_v37 = vld [vmem:[#allocation7 + $0x110] sm:$0xff]  ;;  %v2066_v47 = vld [vmem:[#allocation7 + $0x108] sm:$0xff]  ;;  %v2112_v51 = vld [vmem:[#allocation7 + $0x278] sm:$0xff] }
 0x1e9   :  { %2211 = vmatpush.msra.mxu2 %v2074_v40  ;;  %2231 = vmatpush.msra.mxu0 %v2090_v45  ;;  %v1003_v63 = vadd.f32 %v2672_v42, %v983_v7  ;;  %v2085_v42 = vld [vmem:[#allocation7 + $0x1a0] sm:$0xff]  ;;  %v1443_v2 = vadd.f32 %v1442_v8, %v1423_v10  ;;  %v2082_v41 = vld [vmem:[#allocation7 + $0x188] sm:$0xff]  ;;  %v2027_v49 = vmax.f32 %v1323_v44, 0.0  ;;  %v2144_v8 = vld [vmem:[#allocation7 + $0x378] sm:$0xff] }
 0x1ea   :  { %2172 = vmatpush.msra.mxu3 %v2041_v33  ;;  %2192 = vmatpush.msra.mxu1 %v2057_v48  ;;  %v2033_v45 = vld [vmem:[#allocation7] sm:$0xff]  ;;  %v1502_v25 = vpop.f32.mrf.mxu1  ;;  %v2138_v32 = vld [vmem:[#allocation7 + $0x348] sm:$0xff] }
 0x1eb   :  { %2212 = vmatpush.msra.mxu2 %v2073_v59  ;;  %2232 = vmatpush.msra.mxu0 %v2089_v52  ;;  %v1023_v53 = vadd.f32 %v2676_v50, %v1003_v63  ;;  %v2083_v50 = vld [vmem:[#allocation7 + $0x190] sm:$0xff]  ;;  %v1463_v40 = vadd.f32 %v1462_v16, %v1443_v2  ;;  %v2065_v48 = vld [vmem:[#allocation7 + $0x100] sm:$0xff]  ;;  %v2128_v59 = vld [vmem:[#allocation7 + $0x2f8] sm:$0xff]  ;;  %v873_v52 = vperm.slane %v2699_v24, 5 }
 0x1ec   :  { %2173 = vmatpush.msra.mxu3 %v2040_v54  ;;  %2193 = vmatpush.msra.mxu1 %v2056_v55  ;;  %v2744_v54 = vpop.f32.mrf.mxu3  ;;  %v2142_v63 = vld [vmem:[#allocation7 + $0x368] sm:$0xff]  ;;  %v2141_v10 = vld [vmem:[#allocation7 + $0x360] sm:$0xff]  ;;  %v2123_v16 = vld [vmem:[#allocation7 + $0x2d0] sm:$0xff] }
 0x1ed   :  { %2213 = vmatpush.msra.mxu2 %v2072_v57  ;;  %2233 = vmatpush.msra.mxu0 %v2088_v22  ;;  %v1043_v39 = vadd.f32 %v2666_v5, %v1023_v53  ;;  %v2081_v5 = vld [vmem:[#allocation7 + $0x180] sm:$0xff]  ;;  %v2028_v13 = vmax.f32 %v1463_v40, 0.0  ;;  %v2111_v57 = vld [vmem:[#allocation7 + $0x270] sm:$0xff]  ;;  %v2102_v43 = vld [vmem:[#allocation7 + $0x228] sm:$0xff] }
 0x1ee   :  { %2174 = vmatpush.msra.mxu3 %v2039_v0  ;;  %2194 = vmatpush.msra.mxu1 %v2055_v58  ;;  %v2127_v22 = vld [vmem:[#allocation7 + $0x2f0] sm:$0xff]  ;;  %v2126_v0 = vld [vmem:[#allocation7 + $0x2e8] sm:$0xff]  ;;  %v2101_v44 = vld [vmem:[#allocation7 + $0x220] sm:$0xff] }
 0x1ef   :  { %2214 = vmatpush.msra.mxu2 %v2071_v61  ;;  %2234 = vmatpush.msra.mxu0 %v2087_v26  ;;  %v2741_v33 = vpop.f32.mrf.mxu2  ;;  %v2025_v29 = vmax.f32 %v1043_v39, 0.0  ;;  %v1622_v55 = vpop.f32.mrf.mxu0  ;;  %v2143_v61 = vld [vmem:[#allocation7 + $0x370] sm:$0xff]  ;;  %v1483_v26 = vadd.f32 %v1482_v60, %v872_v9  ;;  %v2117_v40 = vld [vmem:[#allocation7 + $0x2a0] sm:$0xff] }
 0x1f0   :  { %2175 = vmatpush.msra.mxu3 %v2038_v11  ;;  %2195 = vmatpush.msra.mxu1 %v2054_v62  ;;  %v1623_v18 = vadd.f32 %v1622_v55, %v873_v52  ;;  %v2109_v11 = vld [vmem:[#allocation7 + $0x260] sm:$0xff]  ;;  %v2139_v53 = vld [vmem:[#allocation7 + $0x350] sm:$0xff]  ;;  %v2114_v55 = vld [vmem:[#allocation7 + $0x288] sm:$0xff] }
 0x1f1   :  { %2215 = vmatpush.msra.mxu2 %v2070_v1  ;;  %2235 = vmatpush.msra.mxu0 %v2086_v3  ;;  %v2125_v62 = vld [vmem:[#allocation7 + $0x2e0] sm:$0xff]  ;;  %v2108_v1 = vld [vmem:[#allocation7 + $0x258] sm:$0xff] }
 0x1f2   :  { %2176 = vmatpush.msra.mxu3 %v2037_v34  ;;  %2196 = vmatpush.msra.mxu1 %v2053_v15  ;;  %v2747_v58 = vpop.f32.mrf.mxu1  ;;  %v2124_v3 = vld [vmem:[#allocation7 + $0x2d8] sm:$0xff]  ;;  %v1503_v34 = vadd.f32 %v1502_v25, %v1483_v26  ;;  %v2107_v15 = vld [vmem:[#allocation7 + $0x250] sm:$0xff]  ;;  %v2097_v9 = vld [vmem:[#allocation7 + $0x200] sm:$0xff] }
 0x1f3   :  { %2216 = vmatpush.msra.mxu2 %v2069_v20  ;;  %2236 = vmatpush.msra.mxu0 %v2085_v42  ;;  %v2140_v20 = vld [vmem:[#allocation7 + $0x358] sm:$0xff]  ;;  %v2157_v26 = vld [vmem:[#allocation7 + $0x3e0] sm:$0xff] }
 0x1f4   :  { %2177 = vmatpush.msra.mxu3 %v2036_v23  ;;  %2197 = vmatpush.msra.mxu1 %v2052_v35  ;;  %v1662_v6 = vpop.f32.mrf.mxu3  ;;  %v2122_v23 = vld [vmem:[#allocation7 + $0x2c8] sm:$0xff]  ;;  %v1523_v27 = vadd.f32 %v2730_v4, %v1503_v34 }
 0x1f5   :  { %2217 = vmatpush.msra.mxu2 %v2068_v28  ;;  %2237 = vmatpush.msra.mxu0 %v2084_v31  ;;  %v2105_v28 = vld [vmem:[#allocation7 + $0x240] sm:$0xff] }
 0x1f6   :  { %2178 = vmatpush.msra.mxu3 %v2035_v12  ;;  %2198 = vmatpush.msra.mxu1 %v2051_v21  ;;  %v2121_v31 = vld [vmem:[#allocation7 + $0x2c0] sm:$0xff]  ;;  %v2104_v12 = vld [vmem:[#allocation7 + $0x238] sm:$0xff] }
 0x1f7   :  { %2218 = vmatpush.msra.mxu2 %v2067_v37  ;;  %2238 = vmatpush.msra.mxu0 %v2083_v50  ;;  %v1642_v7 = vpop.f32.mrf.mxu2  ;;  %v2120_v21 = vld [vmem:[#allocation7 + $0x2b8] sm:$0xff]  ;;  %v2137_v37 = vld [vmem:[#allocation7 + $0x340] sm:$0xff]  ;;  %v1543_v50 = vadd.f32 %v2736_v36, %v1523_v27  ;;  %v2135_v36 = vld [vmem:[#allocation7 + $0x330] sm:$0xff] }
 0x1f8   :  { %2179 = vmatpush.msra.mxu3 %v2034_v14  ;;  %2199 = vmatpush.msra.mxu1 %v2050_v38  ;;  %v1643_v30 = vadd.f32 %v1642_v7, %v1623_v18  ;;  %v2103_v14 = vld [vmem:[#allocation7 + $0x230] sm:$0xff]  ;;  %v2160_v7 = vld [vmem:[#allocation7 + $0x3f8] sm:$0xff] }
 0x1f9   :  { %2219 = vmatpush.msra.mxu2 %v2066_v47  ;;  %2239 = vmatpush.msra.mxu0 %v2082_v41  ;;  %v2119_v38 = vld [vmem:[#allocation7 + $0x2b0] sm:$0xff]  ;;  %v1563_v4 = vadd.f32 %v2744_v54, %v1543_v50  ;;  %v2118_v47 = vld [vmem:[#allocation7 + $0x2a8] sm:$0xff] }
 0x1fa   :  { %2180 = vmatpush.msra.mxu3 %v2033_v45  ;;  %2200 = vmatpush.msra.mxu1 %v2049_v46  ;;  %v1663_v42 = vadd.f32 %v1662_v6, %v1643_v30  ;;  %v1682_v35 = vpop.f32.mrf.mxu1  ;;  %v2136_v45 = vld [vmem:[#allocation7 + $0x338] sm:$0xff]  ;;  %v2098_v54 = vld [vmem:[#allocation7 + $0x208] sm:$0xff]  ;;  %v2155_v30 = vld [vmem:[#allocation7 + $0x3d0] sm:$0xff] }
 0x1fb   :  { %2220 = vmatpush.msra.mxu2 %v2065_v48  ;;  %2240 = vmatpush.msra.mxu0 %v2081_v5  ;;  %v1583_v46 = vadd.f32 %v2747_v58, %v1563_v4  ;;  %v2100_v48 = vld [vmem:[#allocation7 + $0x218] sm:$0xff]  ;;  %v2129_v58 = vld [vmem:[#allocation7 + $0x300] sm:$0xff]  ;;  %v2146_v50 = vld [vmem:[#allocation7 + $0x388] sm:$0xff] }
 0x1fc   :  { %2181 = vmatmul.f32.vlgmr.msra.gmra.mxu3 %v2025_v29  ;;  %2201 = vmatmul.f32.vlgmr.msra.gmra.mxu1 %v2026_v17  ;;  %v1683_v2 = vadd.f32 %v1682_v35, %v1663_v42  ;;  %v1702_v60 = vpop.f32.mrf.mxu0  ;;  %v2116_v5 = vld [vmem:[#allocation7 + $0x298] sm:$0xff]  ;;  %v2134_v17 = vld [vmem:[#allocation7 + $0x328] sm:$0xff]  ;;  %v2153_v42 = vld [vmem:[#allocation7 + $0x3c0] sm:$0xff] }
 0x1fd   :  { %2221 = vmatmul.f32.vlgmr.msra.gmra.mxu2 %v2027_v49  ;;  %2241 = vmatmul.f32.vlgmr.msra.gmra.mxu0 %v2028_v13  ;;  %v2099_v49 = vld [vmem:[#allocation7 + $0x210] sm:$0xff] }
 0x1fe   :  { %2245 = vmatpush.msrb.mxu3 %v2112_v51  ;;  %2265 = vmatpush.msrb.mxu1 %v2128_v59  ;;  %v1703_v39 = vadd.f32 %v1702_v60, %v1683_v2  ;;  %v2115_v13 = vld [vmem:[#allocation7 + $0x290] sm:$0xff]  ;;  %v2133_v51 = vld [vmem:[#allocation7 + $0x320] sm:$0xff]  ;;  %v1603_v59 = vadd.f32 %v2741_v33, %v1583_v46  ;;  %v2150_v2 = vld [vmem:[#allocation7 + $0x3a8] sm:$0xff] }
 0x1ff   :  { %2285 = vmatpush.msrb.mxu2 %v2144_v8  ;;  %v1722_v41 = vpop.f32.mrf.mxu2  ;;  %v1742_v29 = vpop.f32.mrf.mxu3  ;;  %v2131_v33 = vld [vmem:[#allocation7 + $0x310] sm:$0xff]  ;;  %2305 = vmatpush.msrb.mxu0 %v2160_v7  ;;  %v2148_v60 = vld [vmem:[#allocation7 + $0x398] sm:$0xff] }
 0x200   :  { %2246 = vmatpush.msrb.mxu3 %v2111_v57  ;;  %2266 = vmatpush.msrb.mxu1 %v2127_v22  ;;  %v1723_v25 = vadd.f32 %v1722_v41, %v1703_v39  ;;  %v2113_v57 = vld [vmem:[#allocation7 + $0x280] sm:$0xff]  ;;  %v2029_v22 = vmax.f32 %v1603_v59, 0.0  ;;  %v2159_v8 = vld [vmem:[#allocation7 + $0x3f0] sm:$0xff] }
 0x201   :  { %2286 = vmatpush.msrb.mxu2 %v2143_v61  ;;  %v2158_v61 = vld [vmem:[#allocation7 + $0x3e8] sm:$0xff]  ;;  %2306 = vmatpush.msrb.mxu0 %v2159_v8 }
 0x202   :  { %2247 = vmatpush.msrb.mxu3 %v2110_v19  ;;  %2267 = vmatpush.msrb.mxu1 %v2126_v0  ;;  %v1743_v52 = vadd.f32 %v1742_v29, %v1723_v25  ;;  %v2132_v19 = vld [vmem:[#allocation7 + $0x318] sm:$0xff]  ;;  %v2130_v0 = vld [vmem:[#allocation7 + $0x308] sm:$0xff] }
 0x203   :  { %2287 = vmatpush.msrb.mxu2 %v2142_v63  ;;  %2307 = vmatpush.msrb.mxu0 %v2158_v61 }
 0x204   :  { %2248 = vmatpush.msrb.mxu3 %v2109_v11  ;;  %2268 = vmatpush.msrb.mxu1 %v2125_v62  ;;  %v2030_v18 = vmax.f32 %v1743_v52, 0.0  ;;  %v874_v11 = vperm.slane %v2699_v24, 6  ;;  %v2156_v62 = vld [vmem:[#allocation7 + $0x3d8] sm:$0xff] }
 0x205   :  { %2288 = vmatpush.msrb.mxu2 %v2141_v10  ;;  %2308 = vmatpush.msrb.mxu0 %v2157_v26 }
 0x206   :  { %2249 = vmatpush.msrb.mxu3 %v2108_v1  ;;  %2269 = vmatpush.msrb.mxu1 %v2124_v3  ;;  %v2154_v3 = vld [vmem:[#allocation7 + $0x3c8] sm:$0xff] }
 0x207   :  { %2289 = vmatpush.msrb.mxu2 %v2140_v20  ;;  %2309 = vmatpush.msrb.mxu0 %v2156_v62 }
 0x208   :  { %2250 = vmatpush.msrb.mxu3 %v2107_v15  ;;  %2270 = vmatpush.msrb.mxu1 %v2123_v16 }
 0x209   :  { %2290 = vmatpush.msrb.mxu2 %v2139_v53  ;;  %2310 = vmatpush.msrb.mxu0 %v2155_v30 }
 0x20a   :  { %2251 = vmatpush.msrb.mxu3 %v2106_v56  ;;  %2271 = vmatpush.msrb.mxu1 %v2122_v23  ;;  %v2152_v23 = vld [vmem:[#allocation7 + $0x3b8] sm:$0xff] }
 0x20b   :  { %2291 = vmatpush.msrb.mxu2 %v2138_v32  ;;  %2311 = vmatpush.msrb.mxu0 %v2154_v3 }
 0x20c   :  { %2252 = vmatpush.msrb.mxu3 %v2105_v28  ;;  %2272 = vmatpush.msrb.mxu1 %v2121_v31  ;;  %v2151_v28 = vld [vmem:[#allocation7 + $0x3b0] sm:$0xff] }
 0x20d   :  { %2292 = vmatpush.msrb.mxu2 %v2137_v37  ;;  %2312 = vmatpush.msrb.mxu0 %v2153_v42  ;;  %v2147_v37 = vld [vmem:[#allocation7 + $0x390] sm:$0xff] }
 0x20e   :  { %2253 = vmatpush.msrb.mxu3 %v2104_v12  ;;  %2273 = vmatpush.msrb.mxu1 %v2120_v21  ;;  %v2149_v21 = vld [vmem:[#allocation7 + $0x3a0] sm:$0xff] }
 0x20f   :  { %2293 = vmatpush.msrb.mxu2 %v2136_v45  ;;  %2313 = vmatpush.msrb.mxu0 %v2152_v23 }
 0x210   :  { %2254 = vmatpush.msrb.mxu3 %v2103_v14  ;;  %2274 = vmatpush.msrb.mxu1 %v2119_v38  ;;  %v2145_v14 = vld [vmem:[#allocation7 + $0x380] sm:$0xff]  ;;  %v875_v38 = vperm.slane %v2699_v24, 7 }
 0x211   :  { %2294 = vmatpush.msrb.mxu2 %v2135_v36  ;;  %2314 = vmatpush.msrb.mxu0 %v2151_v28 }
 0x212   :  { %2255 = vmatpush.msrb.mxu3 %v2102_v43  ;;  %2275 = vmatpush.msrb.mxu1 %v2118_v47  ;;  %v1802_v34 = vpop.f32.mrf.mxu0 }
 0x213   :  { %2295 = vmatpush.msrb.mxu2 %v2134_v17  ;;  %2315 = vmatpush.msrb.mxu0 %v2150_v2 }
 0x214   :  { %2256 = vmatpush.msrb.mxu3 %v2101_v44  ;;  %2276 = vmatpush.msrb.mxu1 %v2117_v40 }
 0x215   :  { %2296 = vmatpush.msrb.mxu2 %v2133_v51  ;;  %2316 = vmatpush.msrb.mxu0 %v2149_v21 }
 0x216   :  { %2257 = vmatpush.msrb.mxu3 %v2100_v48  ;;  %2277 = vmatpush.msrb.mxu1 %v2116_v5 }
 0x217   :  { %2297 = vmatpush.msrb.mxu2 %v2132_v19  ;;  %2317 = vmatpush.msrb.mxu0 %v2148_v60 }
 0x218   :  { %2258 = vmatpush.msrb.mxu3 %v2099_v49  ;;  %2278 = vmatpush.msrb.mxu1 %v2115_v13  ;;  %v2362_v49 = vld [vmem:[#allocation8] ss:$0 sm:$0xff] }
 0x219   :  { %2298 = vmatpush.msrb.mxu2 %v2131_v33  ;;  %v1762_v63 = vpop.f32.mrf.mxu1  ;;  %2318 = vmatpush.msrb.mxu0 %v2147_v37 }
 0x21a   :  { %2259 = vmatpush.msrb.mxu3 %v2098_v54  ;;  %2279 = vmatpush.msrb.mxu1 %v2114_v55  ;;  %v1763_v1 = vadd.f32 %v1762_v63, %v874_v11  ;;  %v1782_v6 = vpop.f32.mrf.mxu3 }
 0x21b   :  { %2299 = vmatpush.msrb.mxu2 %v2130_v0  ;;  %2319 = vmatpush.msrb.mxu0 %v2146_v50 }
 0x21c   :  { %2260 = vmatpush.msrb.mxu3 %v2097_v9  ;;  %2280 = vmatpush.msrb.mxu1 %v2113_v57  ;;  %v1783_v10 = vadd.f32 %v1782_v6, %v1763_v1 }
 0x21d   :  { %2261 = vmatmul.f32.vlgmr.msrb.gmra.mxu3 %v2029_v22  ;;  %2281 = vmatmul.f32.vlgmr.msrb.gmra.mxu1 %v2030_v18 }
 0x21e   :  { %2300 = vmatpush.msrb.mxu2 %v2129_v58  ;;  %v1803_v15 = vadd.f32 %v1802_v34, %v1783_v10  ;;  %2320 = vmatpush.msrb.mxu0 %v2145_v14 }
 0x220   :  { %v1822_v16 = vpop.f32.mrf.mxu2 }
 0x221   :  { %v1823_v56 = vadd.f32 %v1822_v16, %v1803_v15 }
 0x230   :  { %v1842_v20 = vpop.f32.mrf.mxu1 }
 0x231   :  { %v1843_v35 = vadd.f32 %v1842_v20, %v1823_v56 }
 0x235   :  { %v1882_v27 = vpop.f32.mrf.mxu0 }
 0x23a   :  { %v1862_v53 = vpop.f32.mrf.mxu3 }
 0x23b   :  { %v1863_v31 = vadd.f32 %v1862_v53, %v1843_v35 }
 0x23d   :  { %v1883_v32 = vadd.f32 %v1882_v27, %v1863_v31 }
 0x23f   :  { %v2031_v12 = vmax.f32 %v1883_v32, 0.0 }
 0x241   :  { %2301 = vmatmul.f32.vlgmr.msrb.gmra.mxu2 %v2031_v12 }
 0x254   :  { %v1922_v43 = vpop.f32.mrf.mxu0 }
 0x255   :  { %v1902_v4 = vpop.f32.mrf.mxu2  ;;  %v1942_v47 = vpop.f32.mrf.mxu1 }
 0x256   :  { %v1903_v39 = vadd.f32 %v1902_v4, %v875_v38 }
 0x258   :  { %v1923_v41 = vadd.f32 %v1922_v43, %v1903_v39 }
 0x25a   :  { %v1943_v44 = vadd.f32 %v1942_v47, %v1923_v41 }
 0x25c   :  { %v1962_v40 = vpop.f32.mrf.mxu3 }
 0x25d   :  { %v1963_v45 = vadd.f32 %v1962_v40, %v1943_v44 }
 0x25f   :  { %v1982_v36 = vpop.f32.mrf.mxu2 }
 0x260   :  { %v1983_v46 = vadd.f32 %v1982_v36, %v1963_v45 }
 0x262   :  { %v2002_v25 = vpop.f32.mrf.mxu0 }
 0x263   :  { %v2003_v48 = vadd.f32 %v2002_v25, %v1983_v46 }
 0x264   :  { %v2022_v5 = vpop.f32.mrf.mxu1 }
 0x265   :  { %v2023_v29 = vadd.f32 %v2022_v5, %v2003_v48 }
 0x267   :  { %v2032_v17 = vmax.f32 %v2023_v29, 0.0 }
 0x269   :  { %2321 = vmatmul.f32.vlgmr.msrb.gmra.mxu0 %v2032_v17 }
 0x279   :  { %v2202_v24 = vpop.f32.mrf.mxu1 }
 0x27a   :  { %v2242_v55 = vpop.f32.mrf.mxu0 }
 0x27f   :  { %v2182_v13 = vpop.f32.mrf.mxu3 }
 0x280   :  { %v2183_v51 = vadd.f32 %v2362_v49, %v2182_v13  ;;  %v2222_v52 = vpop.f32.mrf.mxu2 }
 0x282   :  { %v2203_v59 = vadd.f32 %v2202_v24, %v2183_v51 }
 0x284   :  { %v2223_v54 = vadd.f32 %v2222_v52, %v2203_v59 }
 0x286   :  { %v2243_v57 = vadd.f32 %v2242_v55, %v2223_v54 }
 0x29a   :  { %v2282_v18 = vpop.f32.mrf.mxu1 }
 0x2a0   :  { %v2262_v9 = vpop.f32.mrf.mxu3 }
 0x2a1   :  { %v2263_v22 = vadd.f32 %v2262_v9, %v2243_v57 }
 0x2a3   :  { %v2283_v33 = vadd.f32 %v2282_v18, %v2263_v22 }
 0x2c4   :  { %v2302_v19 = vpop.f32.mrf.mxu2 }
 0x2c5   :  { %v2303_v0 = vadd.f32 %v2302_v19, %v2283_v33 }
 0x2e6   :  { %v2322_v58 = vpop.f32.mrf.mxu0 }
 0x2e7   :  { %v2323_v7 = vadd.f32 %v2322_v58, %v2303_v0 }
 0x2e9   :  { %2325 = vst [vmem:[#allocation10] sm:$0x3] %v2323_v7 }
 0x2ea   :  { %2336 = dma.vmem_to_hbm [thread:$0]  %s2332_s17, 32, %s2334_s20, [#allocation4]  }
 0x2eb   :  { %2503 = dma.done.wait [#allocation4], 32  }
 0x2ec   :  { %2504 = vsyncadd [#allocation4], 4294967264 }
 0x2ed   :  { %2341 = vsyncpa [#allocation3], 1 }
 0x2ee   :  { %2342 = vsyncpa [#allocation6], 1 }
 0x2ef   :  { %2343 = vsyncpa [#allocation9], 1 }
 0x2f0   :  { %2344 = vsyncpa [#allocation4], 1 }

</bundles_post_ra>
